<compile_context>
chip_gen: v7x
topology: tpu7x:2x2x1
jax: 0.10.0
libtpu: 0.0.40
codegen_flags: <defaults>
</compile_context>

<pallas_src>
import math
import functools

import jax
import jax.numpy as jnp
from jax.experimental import pallas as pl
from jax.experimental.pallas import tpu as pltpu


# ----------------------------- config -------------------------------------
# Small but TPU-friendly shapes: every BlockSpec's last dim is a multiple of
# 128 (or the full array) and the second-to-last a multiple of 8, so no kernel
# runs on masked partial vregs.
HIDDEN_SIZE = 256
NUM_HEADS = 4
NUM_KV_HEADS = 2
HEAD_DIM = 128
INTERMEDIATE_SIZE = 512
SEQ_LEN = 16
RMS_EPS = 1e-6
ROPE_THETA = 10000.0

Q_SIZE = NUM_HEADS * HEAD_DIM
KV_SIZE = NUM_KV_HEADS * HEAD_DIM
SCALE = HEAD_DIM ** -0.5

# Matmul tile targets (re-derived for v7x's 64 MiB VMEM; 256-aligned for the
# v6e/v7x 2x256x256 MXU; also fine on v5e's 4x128x128 MXU).
TM, TN, TK = 256, 512, 512


def _pick_tile(dim, target):
    """Largest power-of-two-scaled tile <= target that divides dim (>=128),
    else the full dim (full-array blocks are always legal)."""
    if dim <= target:
        return dim
    t = target
    while dim % t:
        t //= 2
        if t < 128:
            return dim
    return t


# ----------------------------- kernels ------------------------------------
def _norm_matmul_kernel(x_ref, nw_ref, w_ref, o_ref, *, eps):
    # RMSNorm fused into the matmul prologue.  x block is a full-K row strip.
    x = x_ref[...].astype(jnp.float32)
    var = jnp.mean(x * x, axis=-1, keepdims=True)
    h = (x * jax.lax.rsqrt(var + eps) * nw_ref[...].astype(jnp.float32))
    o_ref[...] = jnp.dot(h.astype(w_ref.dtype), w_ref[...],
                         preferred_element_type=jnp.float32).astype(o_ref.dtype)


def _add_norm_matmul_kernel(x_ref, res_ref, nw_ref, w_ref, o_ref, newres_ref,
                            *, eps):
    # residual add + RMSNorm fused into the matmul prologue; new residual is
    # written once per row block (j == 0) into a resident output block.
    y = x_ref[...].astype(jnp.float32) + res_ref[...].astype(jnp.float32)

    @pl.when(pl.program_id(1) == 0)
    def _():
        newres_ref[...] = y.astype(newres_ref.dtype)

    var = jnp.mean(y * y, axis=-1, keepdims=True)
    h = (y * jax.lax.rsqrt(var + eps) * nw_ref[...].astype(jnp.float32))
    o_ref[...] = jnp.dot(h.astype(w_ref.dtype), w_ref[...],
                         preferred_element_type=jnp.float32).astype(o_ref.dtype)


def _add_norm_gateup_gelu_kernel(x_ref, res_ref, nw_ref, wg_ref, wu_ref,
                                 act_ref, newres_ref, *, eps):
    # add + RMSNorm prologue, gate & up matmuls, gelu_tanh(gate)*up epilogue.
    # gate/up are two separate lane-aligned weight refs (no in-kernel column
    # slicing of a [K, 2I] block), so the tanh rides the EUP under the MXU.
    y = x_ref[...].astype(jnp.float32) + res_ref[...].astype(jnp.float32)

    @pl.when(pl.program_id(1) == 0)
    def _():
        newres_ref[...] = y.astype(newres_ref.dtype)

    var = jnp.mean(y * y, axis=-1, keepdims=True)
    h = (y * jax.lax.rsqrt(var + eps) * nw_ref[...].astype(jnp.float32))
    h = h.astype(wg_ref.dtype)
    gate = jnp.dot(h, wg_ref[...], preferred_element_type=jnp.float32)
    up = jnp.dot(h, wu_ref[...], preferred_element_type=jnp.float32)
    c = math.sqrt(2.0 / math.pi)
    g = 0.5 * gate * (1.0 + jnp.tanh(c * (gate + 0.044715 * gate * gate * gate)))
    act_ref[...] = (g * up).astype(act_ref.dtype)


def _matmul_kernel(x_ref, w_ref, o_ref, acc_ref):
    # Plain tiled matmul with f32 VMEM accumulator over the K grid axis.
    @pl.when(pl.program_id(2) == 0)
    def _():
        acc_ref[...] = jnp.zeros_like(acc_ref)

    acc_ref[...] += jnp.dot(x_ref[...], w_ref[...],
                            preferred_element_type=jnp.float32)

    @pl.when(pl.program_id(2) == pl.num_programs(2) - 1)
    def _():
        o_ref[...] = acc_ref[...].astype(o_ref.dtype)


def _attn_rope_kernel(q_ref, k_ref, v_ref, cos_ref, sin_ref, o_ref,
                      *, scale, group, head_dim):
    # One grid step = one KV head; the K/V tile is loaded once and reused by
    # the whole GQA group.  RoPE (neox) is applied in-kernel to the
    # VMEM-resident Q/K tiles.  Output goes straight into the lane-dense
    # [S, NUM_HEADS*HEAD_DIM] slab.
    S = q_ref.shape[0]
    half = head_dim // 2
    cos = cos_ref[...].astype(jnp.float32)   # [S, half]
    sin = sin_ref[...].astype(jnp.float32)   # [S, half]

    def rope_halves(x):
        x1 = x[:, :half].astype(jnp.float32)
        x2 = x[:, half:].astype(jnp.float32)
        return x1 * cos - x2 * sin, x2 * cos + x1 * sin

    k1, k2 = rope_halves(k_ref[...])
    v = v_ref[...].astype(jnp.float32)

    qi = jax.lax.broadcasted_iota(jnp.int32, (S, S), 0)
    ki = jax.lax.broadcasted_iota(jnp.int32, (S, S), 1)
    causal = ki <= qi

    # contract last dims ("sd,td->st") -> no explicit transpose of K.
    contract_last = (((1,), (1,)), ((), ()))
    for g in range(group):                               # static unroll
        q1, q2 = rope_halves(q_ref[:, g * head_dim:(g + 1) * head_dim])
        s = (jax.lax.dot_general(q1, k1, contract_last,
                                 preferred_element_type=jnp.float32)
             + jax.lax.dot_general(q2, k2, contract_last,
                                   preferred_element_type=jnp.float32)) * scale
        s = jnp.where(causal, s, jnp.float32(-1e30))
        p = jnp.exp(s - jnp.max(s, axis=-1, keepdims=True))
        p = p * pl.reciprocal(jnp.sum(p, axis=-1, keepdims=True), approx=True)
        o_ref[:, g * head_dim:(g + 1) * head_dim] = jnp.dot(
            p, v, preferred_element_type=jnp.float32).astype(o_ref.dtype)


# ----------------------------- wrappers ------------------------------------
def norm_matmul(x, norm_w, w, *, eps=RMS_EPS):
    M, K = x.shape
    _, N = w.shape
    tm, tn = _pick_tile(M, TM), _pick_tile(N, TN)
    return pl.pallas_call(
        functools.partial(_norm_matmul_kernel, eps=eps),
        out_shape=jax.ShapeDtypeStruct((M, N), x.dtype),
        grid=(M // tm, N // tn),
        in_specs=[pl.BlockSpec((tm, K), lambda i, j: (i, 0)),
                  pl.BlockSpec((1, K), lambda i, j: (0, 0)),
                  pl.BlockSpec((K, tn), lambda i, j: (0, j))],
        out_specs=pl.BlockSpec((tm, tn), lambda i, j: (i, j)),
        compiler_params=pltpu.CompilerParams(
            dimension_semantics=("parallel", "parallel")),
    )(x, norm_w.reshape(1, -1), w)


def add_norm_matmul(x, res, norm_w, w, *, eps=RMS_EPS):
    M, K = x.shape
    _, N = w.shape
    tm, tn = _pick_tile(M, TM), _pick_tile(N, TN)
    return pl.pallas_call(
        functools.partial(_add_norm_matmul_kernel, eps=eps),
        out_shape=(jax.ShapeDtypeStruct((M, N), x.dtype),
                   jax.ShapeDtypeStruct((M, K), x.dtype)),
        grid=(M // tm, N // tn),
        in_specs=[pl.BlockSpec((tm, K), lambda i, j: (i, 0)),
                  pl.BlockSpec((tm, K), lambda i, j: (i, 0)),
                  pl.BlockSpec((1, K), lambda i, j: (0, 0)),
                  pl.BlockSpec((K, tn), lambda i, j: (0, j))],
        out_specs=(pl.BlockSpec((tm, tn), lambda i, j: (i, j)),
                   pl.BlockSpec((tm, K), lambda i, j: (i, 0))),
        compiler_params=pltpu.CompilerParams(
            dimension_semantics=("parallel", "arbitrary")),
    )(x, res, norm_w.reshape(1, -1), w)


def add_norm_gateup_gelu(x, res, norm_w, wg, wu, *, eps=RMS_EPS):
    M, K = x.shape
    _, N = wg.shape
    tm, tn = _pick_tile(M, TM), _pick_tile(N, TN)
    return pl.pallas_call(
        functools.partial(_add_norm_gateup_gelu_kernel, eps=eps),
        out_shape=(jax.ShapeDtypeStruct((M, N), x.dtype),
                   jax.ShapeDtypeStruct((M, K), x.dtype)),
        grid=(M // tm, N // tn),
        in_specs=[pl.BlockSpec((tm, K), lambda i, j: (i, 0)),
                  pl.BlockSpec((tm, K), lambda i, j: (i, 0)),
                  pl.BlockSpec((1, K), lambda i, j: (0, 0)),
                  pl.BlockSpec((K, tn), lambda i, j: (0, j)),
                  pl.BlockSpec((K, tn), lambda i, j: (0, j))],
        out_specs=(pl.BlockSpec((tm, tn), lambda i, j: (i, j)),
                   pl.BlockSpec((tm, K), lambda i, j: (i, 0))),
        compiler_params=pltpu.CompilerParams(
            dimension_semantics=("parallel", "arbitrary")),
    )(x, res, norm_w.reshape(1, -1), wg, wu)


def matmul(x, w):
    M, K = x.shape
    K2, N = w.shape
    assert K == K2
    tm, tn, tk = _pick_tile(M, TM), _pick_tile(N, TN), _pick_tile(K, TK)
    return pl.pallas_call(
        _matmul_kernel,
        out_shape=jax.ShapeDtypeStruct((M, N), x.dtype),
        grid=(M // tm, N // tn, K // tk),
        in_specs=[pl.BlockSpec((tm, tk), lambda i, j, k: (i, k)),
                  pl.BlockSpec((tk, tn), lambda i, j, k: (k, j))],
        out_specs=pl.BlockSpec((tm, tn), lambda i, j, k: (i, j)),
        scratch_shapes=[pltpu.VMEM((tm, tn), jnp.float32)],
        compiler_params=pltpu.CompilerParams(
            dimension_semantics=("parallel", "parallel", "arbitrary")),
    )(x, w)


def attention(q, k, v, cos, sin, *, scale=SCALE, head_dim=HEAD_DIM):
    # q: [S, num_heads*D] ; k, v: [S, num_kv_heads*D] ; cos/sin: [S, D//2]
    S, q_width = q.shape
    kv_width = k.shape[1]
    num_kv = kv_width // head_dim
    group = q_width // kv_width
    gw = group * head_dim
    return pl.pallas_call(
        functools.partial(_attn_rope_kernel, scale=scale, group=group,
                          head_dim=head_dim),
        grid=(num_kv,),
        in_specs=[pl.BlockSpec((S, gw), lambda h: (0, h)),
                  pl.BlockSpec((S, head_dim), lambda h: (0, h)),
                  pl.BlockSpec((S, head_dim), lambda h: (0, h)),
                  pl.BlockSpec((S, head_dim // 2), lambda h: (0, 0)),
                  pl.BlockSpec((S, head_dim // 2), lambda h: (0, 0))],
        out_specs=pl.BlockSpec((S, gw), lambda h: (0, h)),
        out_shape=jax.ShapeDtypeStruct((S, q_width), q.dtype),
        compiler_params=pltpu.CompilerParams(dimension_semantics=("parallel",)),
    )(q, k, v, cos, sin)


# ----------------------------- glue ----------------------------------------
def _rope_cos_sin(positions, head_dim=HEAD_DIM, theta=ROPE_THETA):
    half = head_dim // 2
    inv_freq = 1.0 / (theta ** (jnp.arange(half, dtype=jnp.float32) / half))
    freqs = positions.astype(jnp.float32)[:, None] * inv_freq[None, :]
    return jnp.cos(freqs), jnp.sin(freqs)          # each [S, half]


def init_params(key):
    ks = jax.random.split(key, 7)

    def w(k, shape):
        return 0.02 * jax.random.normal(k, shape, dtype=jnp.float32)

    return {
        # Gemma RMSNorm stores (1 + w); bake it in at init like vLLM load time.
        "input_ln": 1.0 + w(ks[0], (HIDDEN_SIZE,)),
        "post_ln": 1.0 + w(ks[1], (HIDDEN_SIZE,)),
        "qkv_w": w(ks[2], (HIDDEN_SIZE, Q_SIZE + 2 * KV_SIZE)),
        "o_w": w(ks[3], (Q_SIZE, HIDDEN_SIZE)),
        "gate_w": w(ks[4], (HIDDEN_SIZE, INTERMEDIATE_SIZE)),
        "up_w": w(ks[5], (HIDDEN_SIZE, INTERMEDIATE_SIZE)),
        "down_w": w(ks[6], (INTERMEDIATE_SIZE, HIDDEN_SIZE)),
    }


def gemma_decoder_layer(positions, hidden_states, params, residual=None):
    cos, sin = _rope_cos_sin(positions)

    # ---- input layernorm fused into qkv projection ----
    if residual is None:
        residual = hidden_states
        qkv = norm_matmul(hidden_states, params["input_ln"], params["qkv_w"])
    else:
        qkv, residual = add_norm_matmul(hidden_states, residual,
                                        params["input_ln"], params["qkv_w"])

    # lane-aligned static slices (Q_SIZE / KV_SIZE are multiples of 128)
    q = qkv[:, :Q_SIZE]
    k = qkv[:, Q_SIZE:Q_SIZE + KV_SIZE]
    v = qkv[:, Q_SIZE + KV_SIZE:]

    # ---- causal GQA attention (RoPE fused in-kernel, lane-dense output) ----
    attn = attention(q, k, v, cos, sin)                # [S, Q_SIZE]
    attn_out = matmul(attn, params["o_w"])             # [S, H]

    # ---- post-attn layernorm + gate_up + GeluAndMul fused ----
    act, residual = add_norm_gateup_gelu(attn_out, residual, params["post_ln"],
                                         params["gate_w"], params["up_w"])

    # ---- down projection ----
    mlp_out = matmul(act, params["down_w"])
    return mlp_out, residual


# ----------------------------- reference -----------------------------------
def _ref_layer(positions, x, params, residual=None):
    def rms(h, w):
        var = jnp.mean(h * h, axis=-1, keepdims=True)
        return h * jax.lax.rsqrt(var + RMS_EPS) * w

    def rope(h):
        S = h.shape[0]
        nh = h.shape[1] // HEAD_DIM
        half = HEAD_DIM // 2
        hr = h.reshape(S, nh, HEAD_DIM)
        inv_freq = 1.0 / (ROPE_THETA ** (jnp.arange(half, dtype=jnp.float32) / half))
        f = positions.astype(jnp.float32)[:, None] * inv_freq[None, :]
        cos, sin = jnp.cos(f)[:, None, :], jnp.sin(f)[:, None, :]
        h1, h2 = hr[..., :half], hr[..., half:]
        return jnp.concatenate([h1 * cos - h2 * sin, h2 * cos + h1 * sin],
                               axis=-1).reshape(S, -1)

    if residual is None:
        residual = x
        h = rms(x, params["input_ln"])
    else:
        residual = x + residual
        h = rms(residual, params["input_ln"])

    qkv = h @ params["qkv_w"]
    q, k, v = (qkv[:, :Q_SIZE], qkv[:, Q_SIZE:Q_SIZE + KV_SIZE],
               qkv[:, Q_SIZE + KV_SIZE:])
    q, k = rope(q), rope(k)
    S = x.shape[0]
    group = NUM_HEADS // NUM_KV_HEADS
    qh = q.reshape(S, NUM_HEADS, HEAD_DIM)
    kh = jnp.repeat(k.reshape(S, NUM_KV_HEADS, HEAD_DIM), group, axis=1)
    vh = jnp.repeat(v.reshape(S, NUM_KV_HEADS, HEAD_DIM), group, axis=1)
    s = jnp.einsum("qhd,khd->hqk", qh, kh) * SCALE
    mask = jnp.tril(jnp.ones((S, S), dtype=bool))
    s = jnp.where(mask[None], s, -1e30)
    p = jax.nn.softmax(s, axis=-1)
    attn = jnp.einsum("hqk,khd->qhd", p, vh).reshape(S, Q_SIZE)
    attn_out = attn @ params["o_w"]

    residual2 = attn_out + residual
    h = rms(residual2, params["post_ln"])
    gate, up = h @ params["gate_w"], h @ params["up_w"]
    c = math.sqrt(2.0 / math.pi)
    act = 0.5 * gate * (1.0 + jnp.tanh(c * (gate + 0.044715 * gate ** 3))) * up
    return act @ params["down_w"], residual2


# ----------------------------- main -----------------------------------------
if __name__ == "__main__":
    key = jax.random.PRNGKey(0)
    pkey, xkey = jax.random.split(key)
    params = init_params(pkey)

    positions = jnp.arange(SEQ_LEN, dtype=jnp.int32)
    hidden_states = jax.random.normal(xkey, (SEQ_LEN, HIDDEN_SIZE),
                                      dtype=jnp.float32)

    layer = jax.jit(gemma_decoder_layer)

    # first layer (residual=None path) and a chained second layer
    # (residual-fused path) to exercise both fused-norm kernels.
    out1, res1 = jax.jit(lambda p, x, prm: gemma_decoder_layer(p, x, prm))(
        positions, hidden_states, params)
    out2, res2 = layer(positions, out1, params, res1)
    jax.block_until_ready((out1, res1, out2, res2))

    # correctness vs pure-JAX reference
    ref1, rref1 = _ref_layer(positions, hidden_states, params)
    ref2, rref2 = _ref_layer(positions, ref1, params, rref1)
    for a, b in ((out1, ref1), (res1, rref1), (out2, ref2), (res2, rref2)):
        assert jnp.allclose(a, b, atol=1e-3, rtol=1e-2), \
            float(jnp.max(jnp.abs(a - b)))

    assert out2.shape == (SEQ_LEN, HIDDEN_SIZE)
    assert res2.shape == (SEQ_LEN, HIDDEN_SIZE)
    print("KERNEL_OK")
</pallas_src>

<mosaic_0001>
module attributes {stable_mosaic.version = 11 : i64} {
  func.func @_norm_matmul_kernel(%arg0: i32, %arg1: i32, %arg2: memref<16x256xf32, #tpu.memory_space<vmem>>, %arg3: memref<1x256xf32, #tpu.memory_space<vmem>>, %arg4: memref<256x512xf32, #tpu.memory_space<vmem>>, %arg5: memref<16x512xf32, #tpu.memory_space<vmem>>) attributes {dimension_semantics = [#tpu.dimension_semantics<parallel>, #tpu.dimension_semantics<parallel>], iteration_bounds = array<i64: 1, 2>, scalar_prefetch = 0 : i64, scratch_operands = 0 : i64, tpu.core_type = #tpu.core_type<tc>, window_params = [{transform_indices = @transform_0, window_bounds = array<i64: 16, 256>}, {pipeline_mode = #tpu.pipeline_mode<synchronous>, transform_indices = @transform_1, window_bounds = array<i64: 1, 256>}, {transform_indices = @transform_2, window_bounds = array<i64: 256, 512>}, {transform_indices = @transform_3, window_bounds = array<i64: 16, 512>}]} {
    %c0 = arith.constant 0 : index
    %c0_0 = arith.constant 0 : index
    %0 = vector.load %arg2[%c0, %c0_0] : memref<16x256xf32, #tpu.memory_space<vmem>>, vector<16x256xf32>
    %1 = arith.mulf %0, %0 : vector<16x256xf32>
    %cst = arith.constant dense<0.000000e+00> : vector<16xf32>
    %2 = vector.multi_reduction <add>, %1, %cst [1] : vector<16x256xf32> to vector<16xf32>
    %3 = vector.shape_cast %2 : vector<16xf32> to vector<16x1xf32>
    %cst_1 = arith.constant 2.560000e+02 : f32
    %4 = vector.broadcast %cst_1 : f32 to vector<16x1xf32>
    %5 = arith.divf %3, %4 : vector<16x1xf32>
    %cst_2 = arith.constant 9.99999997E-7 : f32
    %6 = vector.broadcast %cst_2 : f32 to vector<16x1xf32>
    %7 = arith.addf %5, %6 : vector<16x1xf32>
    %8 = math.rsqrt %7 : vector<16x1xf32>
    %9 = vector.broadcast %8 : vector<16x1xf32> to vector<16x256xf32>
    %10 = arith.mulf %0, %9 : vector<16x256xf32>
    %c0_3 = arith.constant 0 : index
    %c0_4 = arith.constant 0 : index
    %11 = vector.load %arg3[%c0_3, %c0_4] : memref<1x256xf32, #tpu.memory_space<vmem>>, vector<1x256xf32>
    %12 = vector.broadcast %11 : vector<1x256xf32> to vector<16x256xf32>
    %13 = arith.mulf %10, %12 : vector<16x256xf32>
    %c0_5 = arith.constant 0 : index
    %c0_6 = arith.constant 0 : index
    %14 = vector.load %arg4[%c0_5, %c0_6] : memref<256x512xf32, #tpu.memory_space<vmem>>, vector<256x512xf32>
    %cst_7 = arith.constant dense<0.000000e+00> : vector<16x512xf32>
    %15 = tpu.matmul %13, %14, %cst_7 {dimension_numbers = #tpu.dot_dimension_numbers<[1], [0], [0], [1], [0, 0, 1, 1], [], []>} : vector<16x256xf32>, vector<256x512xf32>, vector<16x512xf32> -> vector<16x512xf32>
    %c0_8 = arith.constant 0 : index
    %c0_9 = arith.constant 0 : index
    %16 = vector.load %arg5[%c0_8, %c0_9] : memref<16x512xf32, #tpu.memory_space<vmem>>, vector<16x512xf32>
    tpu.vector_store %arg5[%c0_8, %c0_9], %15 {strides = array<i32>} : memref<16x512xf32, #tpu.memory_space<vmem>>, vector<16x512xf32>,
    return
  }
  func.func @transform_0(%arg0: i32, %arg1: i32) -> (i32, i32) {
    %c0_i32 = arith.constant 0 : i32
    %c0_i32_0 = arith.constant 0 : i32
    return %arg0, %c0_i32 : i32, i32
  }
  func.func @transform_1(%arg0: i32, %arg1: i32) -> (i32, i32) {
    %c0_i32 = arith.constant 0 : i32
    %c0_i32_0 = arith.constant 0 : i32
    %c0_i32_1 = arith.constant 0 : i32
    return %c0_i32, %c0_i32_0 : i32, i32
  }
  func.func @transform_2(%arg0: i32, %arg1: i32) -> (i32, i32) {
    %c0_i32 = arith.constant 0 : i32
    %c0_i32_0 = arith.constant 0 : i32
    return %c0_i32, %arg1 : i32, i32
  }
  func.func @transform_3(%arg0: i32, %arg1: i32) -> (i32, i32) {
    %c0_i32 = arith.constant 0 : i32
    return %arg0, %arg1 : i32, i32
  }
}

module attributes {stable_mosaic.version = 11 : i64} {
  func.func @_attn_rope_kernel(%arg0: i32, %arg1: memref<16x256xf32, #tpu.memory_space<vmem>>, %arg2: memref<16x128xf32, #tpu.memory_space<vmem>>, %arg3: memref<16x128xf32, #tpu.memory_space<vmem>>, %arg4: memref<16x64xf32, #tpu.memory_space<vmem>>, %arg5: memref<16x64xf32, #tpu.memory_space<vmem>>, %arg6: memref<16x256xf32, #tpu.memory_space<vmem>>) attributes {dimension_semantics = [#tpu.dimension_semantics<parallel>], iteration_bounds = array<i64: 2>, scalar_prefetch = 0 : i64, scratch_operands = 0 : i64, tpu.core_type = #tpu.core_type<tc>, window_params = [{transform_indices = @transform_0, window_bounds = array<i64: 16, 256>}, {transform_indices = @transform_1, window_bounds = array<i64: 16, 128>}, {transform_indices = @transform_2, window_bounds = array<i64: 16, 128>}, {pipeline_mode = #tpu.pipeline_mode<synchronous>, transform_indices = @transform_3, window_bounds = array<i64: 16, 64>}, {pipeline_mode = #tpu.pipeline_mode<synchronous>, transform_indices = @transform_4, window_bounds = array<i64: 16, 64>}, {transform_indices = @transform_5, window_bounds = array<i64: 16, 256>}]} {
    %c0 = arith.constant 0 : index
    %c0_0 = arith.constant 0 : index
    %0 = vector.load %arg4[%c0, %c0_0] : memref<16x64xf32, #tpu.memory_space<vmem>>, vector<16x64xf32>
    %c0_1 = arith.constant 0 : index
    %c0_2 = arith.constant 0 : index
    %1 = vector.load %arg5[%c0_1, %c0_2] : memref<16x64xf32, #tpu.memory_space<vmem>>, vector<16x64xf32>
    %c0_3 = arith.constant 0 : index
    %c0_4 = arith.constant 0 : index
    %2 = vector.load %arg2[%c0_3, %c0_4] : memref<16x128xf32, #tpu.memory_space<vmem>>, vector<16x128xf32>
    %3 = vector.extract_strided_slice %2 {offsets = [0, 0], sizes = [16, 64], strides = [1, 1]} : vector<16x128xf32> to vector<16x64xf32>
    %4 = vector.extract_strided_slice %2 {offsets = [0, 64], sizes = [16, 64], strides = [1, 1]} : vector<16x128xf32> to vector<16x64xf32>
    %5 = arith.mulf %3, %0 : vector<16x64xf32>
    %6 = arith.mulf %4, %1 : vector<16x64xf32>
    %7 = arith.subf %5, %6 : vector<16x64xf32>
    %8 = arith.mulf %4, %0 : vector<16x64xf32>
    %9 = arith.mulf %3, %1 : vector<16x64xf32>
    %10 = arith.addf %8, %9 : vector<16x64xf32>
    %c0_5 = arith.constant 0 : index
    %c0_6 = arith.constant 0 : index
    %11 = vector.load %arg3[%c0_5, %c0_6] : memref<16x128xf32, #tpu.memory_space<vmem>>, vector<16x128xf32>
    %12 = tpu.iota {dimensions = array<i32: 0>} : vector<16x16xi32>
    %13 = tpu.iota {dimensions = array<i32: 1>} : vector<16x16xi32>
    %14 = arith.cmpi sle, %13, %12 : vector<16x16xi32>
    %c0_7 = arith.constant 0 : index
    %c0_8 = arith.constant 0 : index
    %15 = vector.load %arg1[%c0_7, %c0_8] : memref<16x256xf32, #tpu.memory_space<vmem>>, vector<16x128xf32>
    %16 = vector.extract_strided_slice %15 {offsets = [0, 0], sizes = [16, 64], strides = [1, 1]} : vector<16x128xf32> to vector<16x64xf32>
    %17 = vector.extract_strided_slice %15 {offsets = [0, 64], sizes = [16, 64], strides = [1, 1]} : vector<16x128xf32> to vector<16x64xf32>
    %18 = arith.mulf %16, %0 : vector<16x64xf32>
    %19 = arith.mulf %17, %1 : vector<16x64xf32>
    %20 = arith.subf %18, %19 : vector<16x64xf32>
    %21 = arith.mulf %17, %0 : vector<16x64xf32>
    %22 = arith.mulf %16, %1 : vector<16x64xf32>
    %23 = arith.addf %21, %22 : vector<16x64xf32>
    %cst = arith.constant dense<0.000000e+00> : vector<16x16xf32>
    %24 = tpu.matmul %20, %7, %cst {dimension_numbers = #tpu.dot_dimension_numbers<[1], [1], [0], [0], [0, 0, 1, 0], [], []>} : vector<16x64xf32>, vector<16x64xf32>, vector<16x16xf32> -> vector<16x16xf32>
    %cst_9 = arith.constant dense<0.000000e+00> : vector<16x16xf32>
    %25 = tpu.matmul %23, %10, %cst_9 {dimension_numbers = #tpu.dot_dimension_numbers<[1], [1], [0], [0], [0, 0, 1, 0], [], []>} : vector<16x64xf32>, vector<16x64xf32>, vector<16x16xf32> -> vector<16x16xf32>
    %26 = arith.addf %24, %25 : vector<16x16xf32>
    %cst_10 = arith.constant 0.0883883461 : f32
    %27 = vector.broadcast %cst_10 : f32 to vector<16x16xf32>
    %28 = arith.mulf %26, %27 : vector<16x16xf32>
    %cst_11 = arith.constant -1.000000e+30 : f32
    %29 = vector.broadcast %cst_11 : f32 to vector<16x16xf32>
    %30 = arith.select %14, %28, %29 : vector<16x16xi1>, vector<16x16xf32>
    %cst_12 = arith.constant dense<0xFF800000> : vector<16xf32>
    %31 = vector.multi_reduction <maximumf>, %30, %cst_12 [1] : vector<16x16xf32> to vector<16xf32>
    %32 = vector.shape_cast %31 : vector<16xf32> to vector<16x1xf32>
    %33 = vector.broadcast %32 : vector<16x1xf32> to vector<16x16xf32>
    %34 = arith.subf %30, %33 : vector<16x16xf32>
    %35 = math.exp %34 : vector<16x16xf32>
    %cst_13 = arith.constant dense<0.000000e+00> : vector<16xf32>
    %36 = vector.multi_reduction <add>, %35, %cst_13 [1] : vector<16x16xf32> to vector<16xf32>
    %37 = vector.shape_cast %36 : vector<16xf32> to vector<16x1xf32>
    %38 = tpu.reciprocal %37 {approx = true} : vector<16x1xf32> -> vector<16x1xf32>
    %39 = vector.broadcast %38 : vector<16x1xf32> to vector<16x16xf32>
    %40 = arith.mulf %35, %39 : vector<16x16xf32>
    %cst_14 = arith.constant dense<0.000000e+00> : vector<16x128xf32>
    %41 = tpu.matmul %40, %11, %cst_14 {dimension_numbers = #tpu.dot_dimension_numbers<[1], [0], [0], [1], [0, 0, 1, 1], [], []>} : vector<16x16xf32>, vector<16x128xf32>, vector<16x128xf32> -> vector<16x128xf32>
    %c0_15 = arith.constant 0 : index
    %c0_16 = arith.constant 0 : index
    %42 = vector.load %arg6[%c0_15, %c0_16] : memref<16x256xf32, #tpu.memory_space<vmem>>, vector<16x128xf32>
    tpu.vector_store %arg6[%c0_15, %c0_16], %41 {strides = array<i32>} : memref<16x256xf32, #tpu.memory_space<vmem>>, vector<16x128xf32>,
    %c0_17 = arith.constant 0 : index
    %c128 = arith.constant 128 : index
    %43 = vector.load %arg1[%c0_17, %c128] : memref<16x256xf32, #tpu.memory_space<vmem>>, vector<16x128xf32>
    %44 = vector.extract_strided_slice %43 {offsets = [0, 0], sizes = [16, 64], strides = [1, 1]} : vector<16x128xf32> to vector<16x64xf32>
    %45 = vector.extract_strided_slice %43 {offsets = [0, 64], sizes = [16, 64], strides = [1, 1]} : vector<16x128xf32> to vector<16x64xf32>
    %46 = arith.mulf %44, %0 : vector<16x64xf32>
    %47 = arith.mulf %45, %1 : vector<16x64xf32>
    %48 = arith.subf %46, %47 : vector<16x64xf32>
    %49 = arith.mulf %45, %0 : vector<16x64xf32>
    %50 = arith.mulf %44, %1 : vector<16x64xf32>
    %51 = arith.addf %49, %50 : vector<16x64xf32>
    %cst_18 = arith.constant dense<0.000000e+00> : vector<16x16xf32>
    %52 = tpu.matmul %48, %7, %cst_18 {dimension_numbers = #tpu.dot_dimension_numbers<[1], [1], [0], [0], [0, 0, 1, 0], [], []>} : vector<16x64xf32>, vector<16x64xf32>, vector<16x16xf32> -> vector<16x16xf32>
    %cst_19 = arith.constant dense<0.000000e+00> : vector<16x16xf32>
    %53 = tpu.matmul %51, %10, %cst_19 {dimension_numbers = #tpu.dot_dimension_numbers<[1], [1], [0], [0], [0, 0, 1, 0], [], []>} : vector<16x64xf32>, vector<16x64xf32>, vector<16x16xf32> -> vector<16x16xf32>
    %54 = arith.addf %52, %53 : vector<16x16xf32>
    %cst_20 = arith.constant 0.0883883461 : f32
    %55 = vector.broadcast %cst_20 : f32 to vector<16x16xf32>
    %56 = arith.mulf %54, %55 : vector<16x16xf32>
    %cst_21 = arith.constant -1.000000e+30 : f32
    %57 = vector.broadcast %cst_21 : f32 to vector<16x16xf32>
    %58 = arith.select %14, %56, %57 : vector<16x16xi1>, vector<16x16xf32>
    %cst_22 = arith.constant dense<0xFF800000> : vector<16xf32>
    %59 = vector.multi_reduction <maximumf>, %58, %cst_22 [1] : vector<16x16xf32> to vector<16xf32>
    %60 = vector.shape_cast %59 : vector<16xf32> to vector<16x1xf32>
    %61 = vector.broadcast %60 : vector<16x1xf32> to vector<16x16xf32>
    %62 = arith.subf %58, %61 : vector<16x16xf32>
    %63 = math.exp %62 : vector<16x16xf32>
    %cst_23 = arith.constant dense<0.000000e+00> : vector<16xf32>
    %64 = vector.multi_reduction <add>, %63, %cst_23 [1] : vector<16x16xf32> to vector<16xf32>
    %65 = vector.shape_cast %64 : vector<16xf32> to vector<16x1xf32>
    %66 = tpu.reciprocal %65 {approx = true} : vector<16x1xf32> -> vector<16x1xf32>
    %67 = vector.broadcast %66 : vector<16x1xf32> to vector<16x16xf32>
    %68 = arith.mulf %63, %67 : vector<16x16xf32>
    %cst_24 = arith.constant dense<0.000000e+00> : vector<16x128xf32>
    %69 = tpu.matmul %68, %11, %cst_24 {dimension_numbers = #tpu.dot_dimension_numbers<[1], [0], [0], [1], [0, 0, 1, 1], [], []>} : vector<16x16xf32>, vector<16x128xf32>, vector<16x128xf32> -> vector<16x128xf32>
    %c0_25 = arith.constant 0 : index
    %c128_26 = arith.constant 128 : index
    %70 = vector.load %arg6[%c0_25, %c128_26] : memref<16x256xf32, #tpu.memory_space<vmem>>, vector<16x128xf32>
    tpu.vector_store %arg6[%c0_25, %c128_26], %69 {strides = array<i32>} : memref<16x256xf32, #tpu.memory_space<vmem>>, vector<16x128xf32>,
    return
  }
  func.func @transform_0(%arg0: i32) -> (i32, i32) {
    %c0_i32 = arith.constant 0 : i32
    %c0_i32_0 = arith.constant 0 : i32
    return %c0_i32, %arg0 : i32, i32
  }
  func.func @transform_1(%arg0: i32) -> (i32, i32) {
    %c0_i32 = arith.constant 0 : i32
    %c0_i32_0 = arith.constant 0 : i32
    return %c0_i32, %arg0 : i32, i32
  }
  func.func @transform_2(%arg0: i32) -> (i32, i32) {
    %c0_i32 = arith.constant 0 : i32
    %c0_i32_0 = arith.constant 0 : i32
    return %c0_i32, %arg0 : i32, i32
  }
  func.func @transform_3(%arg0: i32) -> (i32, i32) {
    %c0_i32 = arith.constant 0 : i32
    %c0_i32_0 = arith.constant 0 : i32
    %c0_i32_1 = arith.constant 0 : i32
    return %c0_i32, %c0_i32_0 : i32, i32
  }
  func.func @transform_4(%arg0: i32) -> (i32, i32) {
    %c0_i32 = arith.constant 0 : i32
    %c0_i32_0 = arith.constant 0 : i32
    %c0_i32_1 = arith.constant 0 : i32
    return %c0_i32, %c0_i32_0 : i32, i32
  }
  func.func @transform_5(%arg0: i32) -> (i32, i32) {
    %c0_i32 = arith.constant 0 : i32
    %c0_i32_0 = arith.constant 0 : i32
    return %c0_i32, %arg0 : i32, i32
  }
}

module attributes {stable_mosaic.version = 11 : i64} {
  func.func @_matmul_kernel(%arg0: i32, %arg1: i32, %arg2: i32, %arg3: memref<16x512xf32, #tpu.memory_space<vmem>>, %arg4: memref<512x256xf32, #tpu.memory_space<vmem>>, %arg5: memref<16x256xf32, #tpu.memory_space<vmem>>, %arg6: memref<16x256xf32, #tpu.memory_space<vmem>>) attributes {dimension_semantics = [#tpu.dimension_semantics<parallel>, #tpu.dimension_semantics<parallel>, #tpu.dimension_semantics<arbitrary>], iteration_bounds = array<i64: 1, 1, 1>, scalar_prefetch = 0 : i64, scratch_operands = 1 : i64, tpu.core_type = #tpu.core_type<tc>, window_params = [{transform_indices = @transform_0, window_bounds = array<i64: 16, 512>}, {transform_indices = @transform_1, window_bounds = array<i64: 512, 256>}, {transform_indices = @transform_2, window_bounds = array<i64: 16, 256>}]} {
    %c0_i32 = arith.constant 0 : i32
    %0 = arith.cmpi eq, %arg2, %c0_i32 : i32
    %1 = arith.extui %0 : i1 to i32
    %c0_i32_0 = arith.constant 0 : i32
    %2 = arith.cmpi ne, %1, %c0_i32_0 : i32
    scf.if %2 {
      %cst_10 = arith.constant 0.000000e+00 : f32
      %12 = vector.broadcast %cst_10 : f32 to vector<16x256xf32>
      %c0_11 = arith.constant 0 : index
      %c0_12 = arith.constant 0 : index
      %13 = vector.load %arg6[%c0_11, %c0_12] : memref<16x256xf32, #tpu.memory_space<vmem>>, vector<16x256xf32>
      tpu.vector_store %arg6[%c0_11, %c0_12], %12 {strides = array<i32>} : memref<16x256xf32, #tpu.memory_space<vmem>>, vector<16x256xf32>,
    } else {
    }
    %c0 = arith.constant 0 : index
    %c0_1 = arith.constant 0 : index
    %3 = vector.load %arg6[%c0, %c0_1] : memref<16x256xf32, #tpu.memory_space<vmem>>, vector<16x256xf32>
    %c0_2 = arith.constant 0 : index
    %c0_3 = arith.constant 0 : index
    %4 = vector.load %arg3[%c0_2, %c0_3] : memref<16x512xf32, #tpu.memory_space<vmem>>, vector<16x512xf32>
    %c0_4 = arith.constant 0 : index
    %c0_5 = arith.constant 0 : index
    %5 = vector.load %arg4[%c0_4, %c0_5] : memref<512x256xf32, #tpu.memory_space<vmem>>, vector<512x256xf32>
    %cst = arith.constant dense<0.000000e+00> : vector<16x256xf32>
    %6 = tpu.matmul %4, %5, %cst {dimension_numbers = #tpu.dot_dimension_numbers<[1], [0], [0], [1], [0, 0, 1, 1], [], []>} : vector<16x512xf32>, vector<512x256xf32>, vector<16x256xf32> -> vector<16x256xf32>
    %7 = arith.addf %3, %6 : vector<16x256xf32>
    %c0_6 = arith.constant 0 : index
    %c0_7 = arith.constant 0 : index
    %8 = vector.load %arg6[%c0_6, %c0_7] : memref<16x256xf32, #tpu.memory_space<vmem>>, vector<16x256xf32>
    tpu.vector_store %arg6[%c0_6, %c0_7], %7 {strides = array<i32>} : memref<16x256xf32, #tpu.memory_space<vmem>>, vector<16x256xf32>,
    %c0_i32_8 = arith.constant 0 : i32
    %9 = arith.cmpi eq, %arg2, %c0_i32_8 : i32
    %10 = arith.extui %9 : i1 to i32
    %c0_i32_9 = arith.constant 0 : i32
    %11 = arith.cmpi ne, %10, %c0_i32_9 : i32
    scf.if %11 {
      %c0_10 = arith.constant 0 : index
      %c0_11 = arith.constant 0 : index
      %12 = vector.load %arg6[%c0_10, %c0_11] : memref<16x256xf32, #tpu.memory_space<vmem>>, vector<16x256xf32>
      %c0_12 = arith.constant 0 : index
      %c0_13 = arith.constant 0 : index
      %13 = vector.load %arg5[%c0_12, %c0_13] : memref<16x256xf32, #tpu.memory_space<vmem>>, vector<16x256xf32>
      tpu.vector_store %arg5[%c0_12, %c0_13], %12 {strides = array<i32>} : memref<16x256xf32, #tpu.memory_space<vmem>>, vector<16x256xf32>,
    } else {
    }
    return
  }
  func.func @transform_0(%arg0: i32, %arg1: i32, %arg2: i32) -> (i32, i32) {
    %c0_i32 = arith.constant 0 : i32
    return %arg0, %arg2 : i32, i32
  }
  func.func @transform_1(%arg0: i32, %arg1: i32, %arg2: i32) -> (i32, i32) {
    %c0_i32 = arith.constant 0 : i32
    return %arg2, %arg1 : i32, i32
  }
  func.func @transform_2(%arg0: i32, %arg1: i32, %arg2: i32) -> (i32, i32) {
    %c0_i32 = arith.constant 0 : i32
    return %arg0, %arg1 : i32, i32
  }
}

module attributes {stable_mosaic.version = 11 : i64} {
  func.func @_add_norm_gateup_gelu_kernel(%arg0: i32, %arg1: i32, %arg2: memref<16x256xf32, #tpu.memory_space<vmem>>, %arg3: memref<16x256xf32, #tpu.memory_space<vmem>>, %arg4: memref<1x256xf32, #tpu.memory_space<vmem>>, %arg5: memref<256x512xf32, #tpu.memory_space<vmem>>, %arg6: memref<256x512xf32, #tpu.memory_space<vmem>>, %arg7: memref<16x512xf32, #tpu.memory_space<vmem>>, %arg8: memref<16x256xf32, #tpu.memory_space<vmem>>) attributes {dimension_semantics = [#tpu.dimension_semantics<parallel>, #tpu.dimension_semantics<arbitrary>], iteration_bounds = array<i64: 1, 1>, scalar_prefetch = 0 : i64, scratch_operands = 0 : i64, tpu.core_type = #tpu.core_type<tc>, window_params = [{transform_indices = @transform_0, window_bounds = array<i64: 16, 256>}, {transform_indices = @transform_1, window_bounds = array<i64: 16, 256>}, {pipeline_mode = #tpu.pipeline_mode<synchronous>, transform_indices = @transform_2, window_bounds = array<i64: 1, 256>}, {transform_indices = @transform_3, window_bounds = array<i64: 256, 512>}, {transform_indices = @transform_4, window_bounds = array<i64: 256, 512>}, {transform_indices = @transform_5, window_bounds = array<i64: 16, 512>}, {transform_indices = @transform_6, window_bounds = array<i64: 16, 256>}]} {
    %c0 = arith.constant 0 : index
    %c0_0 = arith.constant 0 : index
    %0 = vector.load %arg2[%c0, %c0_0] : memref<16x256xf32, #tpu.memory_space<vmem>>, vector<16x256xf32>
    %c0_1 = arith.constant 0 : index
    %c0_2 = arith.constant 0 : index
    %1 = vector.load %arg3[%c0_1, %c0_2] : memref<16x256xf32, #tpu.memory_space<vmem>>, vector<16x256xf32>
    %2 = arith.addf %0, %1 : vector<16x256xf32>
    %c0_i32 = arith.constant 0 : i32
    %3 = arith.cmpi eq, %arg1, %c0_i32 : i32
    %4 = arith.extui %3 : i1 to i32
    %c0_i32_3 = arith.constant 0 : i32
    %5 = arith.cmpi ne, %4, %c0_i32_3 : i32
    scf.if %5 {
      %c0_20 = arith.constant 0 : index
      %c0_21 = arith.constant 0 : index
      %38 = vector.load %arg8[%c0_20, %c0_21] : memref<16x256xf32, #tpu.memory_space<vmem>>, vector<16x256xf32>
      tpu.vector_store %arg8[%c0_20, %c0_21], %2 {strides = array<i32>} : memref<16x256xf32, #tpu.memory_space<vmem>>, vector<16x256xf32>,
    } else {
    }
    %6 = arith.mulf %2, %2 : vector<16x256xf32>
    %cst = arith.constant dense<0.000000e+00> : vector<16xf32>
    %7 = vector.multi_reduction <add>, %6, %cst [1] : vector<16x256xf32> to vector<16xf32>
    %8 = vector.shape_cast %7 : vector<16xf32> to vector<16x1xf32>
    %cst_4 = arith.constant 2.560000e+02 : f32
    %9 = vector.broadcast %cst_4 : f32 to vector<16x1xf32>
    %10 = arith.divf %8, %9 : vector<16x1xf32>
    %cst_5 = arith.constant 9.99999997E-7 : f32
    %11 = vector.broadcast %cst_5 : f32 to vector<16x1xf32>
    %12 = arith.addf %10, %11 : vector<16x1xf32>
    %13 = math.rsqrt %12 : vector<16x1xf32>
    %14 = vector.broadcast %13 : vector<16x1xf32> to vector<16x256xf32>
    %15 = arith.mulf %2, %14 : vector<16x256xf32>
    %c0_6 = arith.constant 0 : index
    %c0_7 = arith.constant 0 : index
    %16 = vector.load %arg4[%c0_6, %c0_7] : memref<1x256xf32, #tpu.memory_space<vmem>>, vector<1x256xf32>
    %17 = vector.broadcast %16 : vector<1x256xf32> to vector<16x256xf32>
    %18 = arith.mulf %15, %17 : vector<16x256xf32>
    %c0_8 = arith.constant 0 : index
    %c0_9 = arith.constant 0 : index
    %19 = vector.load %arg5[%c0_8, %c0_9] : memref<256x512xf32, #tpu.memory_space<vmem>>, vector<256x512xf32>
    %cst_10 = arith.constant dense<0.000000e+00> : vector<16x512xf32>
    %20 = tpu.matmul %18, %19, %cst_10 {dimension_numbers = #tpu.dot_dimension_numbers<[1], [0], [0], [1], [0, 0, 1, 1], [], []>} : vector<16x256xf32>, vector<256x512xf32>, vector<16x512xf32> -> vector<16x512xf32>
    %c0_11 = arith.constant 0 : index
    %c0_12 = arith.constant 0 : index
    %21 = vector.load %arg6[%c0_11, %c0_12] : memref<256x512xf32, #tpu.memory_space<vmem>>, vector<256x512xf32>
    %cst_13 = arith.constant dense<0.000000e+00> : vector<16x512xf32>
    %22 = tpu.matmul %18, %21, %cst_13 {dimension_numbers = #tpu.dot_dimension_numbers<[1], [0], [0], [1], [0, 0, 1, 1], [], []>} : vector<16x256xf32>, vector<256x512xf32>, vector<16x512xf32> -> vector<16x512xf32>
    %cst_14 = arith.constant 5.000000e-01 : f32
    %23 = vector.broadcast %cst_14 : f32 to vector<16x512xf32>
    %24 = arith.mulf %23, %20 : vector<16x512xf32>
    %cst_15 = arith.constant 4.471500e-02 : f32
    %25 = vector.broadcast %cst_15 : f32 to vector<16x512xf32>
    %26 = arith.mulf %25, %20 : vector<16x512xf32>
    %27 = arith.mulf %26, %20 : vector<16x512xf32>
    %28 = arith.mulf %27, %20 : vector<16x512xf32>
    %29 = arith.addf %20, %28 : vector<16x512xf32>
    %cst_16 = arith.constant 0.797884583 : f32
    %30 = vector.broadcast %cst_16 : f32 to vector<16x512xf32>
    %31 = arith.mulf %30, %29 : vector<16x512xf32>
    %32 = math.tanh %31 : vector<16x512xf32>
    %cst_17 = arith.constant 1.000000e+00 : f32
    %33 = vector.broadcast %cst_17 : f32 to vector<16x512xf32>
    %34 = arith.addf %33, %32 : vector<16x512xf32>
    %35 = arith.mulf %24, %34 : vector<16x512xf32>
    %36 = arith.mulf %35, %22 : vector<16x512xf32>
    %c0_18 = arith.constant 0 : index
    %c0_19 = arith.constant 0 : index
    %37 = vector.load %arg7[%c0_18, %c0_19] : memref<16x512xf32, #tpu.memory_space<vmem>>, vector<16x512xf32>
    tpu.vector_store %arg7[%c0_18, %c0_19], %36 {strides = array<i32>} : memref<16x512xf32, #tpu.memory_space<vmem>>, vector<16x512xf32>,
    return
  }
  func.func @transform_0(%arg0: i32, %arg1: i32) -> (i32, i32) {
    %c0_i32 = arith.constant 0 : i32
    %c0_i32_0 = arith.constant 0 : i32
    return %arg0, %c0_i32 : i32, i32
  }
  func.func @transform_1(%arg0: i32, %arg1: i32) -> (i32, i32) {
    %c0_i32 = arith.constant 0 : i32
    %c0_i32_0 = arith.constant 0 : i32
    return %arg0, %c0_i32 : i32, i32
  }
  func.func @transform_2(%arg0: i32, %arg1: i32) -> (i32, i32) {
    %c0_i32 = arith.constant 0 : i32
    %c0_i32_0 = arith.constant 0 : i32
    %c0_i32_1 = arith.constant 0 : i32
    return %c0_i32, %c0_i32_0 : i32, i32
  }
  func.func @transform_3(%arg0: i32, %arg1: i32) -> (i32, i32) {
    %c0_i32 = arith.constant 0 : i32
    %c0_i32_0 = arith.constant 0 : i32
    return %c0_i32, %arg1 : i32, i32
  }
  func.func @transform_4(%arg0: i32, %arg1: i32) -> (i32, i32) {
    %c0_i32 = arith.constant 0 : i32
    %c0_i32_0 = arith.constant 0 : i32
    return %c0_i32, %arg1 : i32, i32
  }
  func.func @transform_5(%arg0: i32, %arg1: i32) -> (i32, i32) {
    %c0_i32 = arith.constant 0 : i32
    return %arg0, %arg1 : i32, i32
  }
  func.func @transform_6(%arg0: i32, %arg1: i32) -> (i32, i32) {
    %c0_i32 = arith.constant 0 : i32
    %c0_i32_0 = arith.constant 0 : i32
    return %arg0, %c0_i32 : i32, i32
  }
}

module attributes {stable_mosaic.version = 11 : i64} {
  func.func @_matmul_kernel(%arg0: i32, %arg1: i32, %arg2: i32, %arg3: memref<16x512xf32, #tpu.memory_space<vmem>>, %arg4: memref<512x256xf32, #tpu.memory_space<vmem>>, %arg5: memref<16x256xf32, #tpu.memory_space<vmem>>, %arg6: memref<16x256xf32, #tpu.memory_space<vmem>>) attributes {dimension_semantics = [#tpu.dimension_semantics<parallel>, #tpu.dimension_semantics<parallel>, #tpu.dimension_semantics<arbitrary>], iteration_bounds = array<i64: 1, 1, 1>, scalar_prefetch = 0 : i64, scratch_operands = 1 : i64, tpu.core_type = #tpu.core_type<tc>, window_params = [{transform_indices = @transform_0, window_bounds = array<i64: 16, 512>}, {transform_indices = @transform_1, window_bounds = array<i64: 512, 256>}, {transform_indices = @transform_2, window_bounds = array<i64: 16, 256>}]} {
    %c0_i32 = arith.constant 0 : i32
    %0 = arith.cmpi eq, %arg2, %c0_i32 : i32
    %1 = arith.extui %0 : i1 to i32
    %c0_i32_0 = arith.constant 0 : i32
    %2 = arith.cmpi ne, %1, %c0_i32_0 : i32
    scf.if %2 {
      %cst_10 = arith.constant 0.000000e+00 : f32
      %12 = vector.broadcast %cst_10 : f32 to vector<16x256xf32>
      %c0_11 = arith.constant 0 : index
      %c0_12 = arith.constant 0 : index
      %13 = vector.load %arg6[%c0_11, %c0_12] : memref<16x256xf32, #tpu.memory_space<vmem>>, vector<16x256xf32>
      tpu.vector_store %arg6[%c0_11, %c0_12], %12 {strides = array<i32>} : memref<16x256xf32, #tpu.memory_space<vmem>>, vector<16x256xf32>,
    } else {
    }
    %c0 = arith.constant 0 : index
    %c0_1 = arith.constant 0 : index
    %3 = vector.load %arg6[%c0, %c0_1] : memref<16x256xf32, #tpu.memory_space<vmem>>, vector<16x256xf32>
    %c0_2 = arith.constant 0 : index
    %c0_3 = arith.constant 0 : index
    %4 = vector.load %arg3[%c0_2, %c0_3] : memref<16x512xf32, #tpu.memory_space<vmem>>, vector<16x512xf32>
    %c0_4 = arith.constant 0 : index
    %c0_5 = arith.constant 0 : index
    %5 = vector.load %arg4[%c0_4, %c0_5] : memref<512x256xf32, #tpu.memory_space<vmem>>, vector<512x256xf32>
    %cst = arith.constant dense<0.000000e+00> : vector<16x256xf32>
    %6 = tpu.matmul %4, %5, %cst {dimension_numbers = #tpu.dot_dimension_numbers<[1], [0], [0], [1], [0, 0, 1, 1], [], []>} : vector<16x512xf32>, vector<512x256xf32>, vector<16x256xf32> -> vector<16x256xf32>
    %7 = arith.addf %3, %6 : vector<16x256xf32>
    %c0_6 = arith.constant 0 : index
    %c0_7 = arith.constant 0 : index
    %8 = vector.load %arg6[%c0_6, %c0_7] : memref<16x256xf32, #tpu.memory_space<vmem>>, vector<16x256xf32>
    tpu.vector_store %arg6[%c0_6, %c0_7], %7 {strides = array<i32>} : memref<16x256xf32, #tpu.memory_space<vmem>>, vector<16x256xf32>,
    %c0_i32_8 = arith.constant 0 : i32
    %9 = arith.cmpi eq, %arg2, %c0_i32_8 : i32
    %10 = arith.extui %9 : i1 to i32
    %c0_i32_9 = arith.constant 0 : i32
    %11 = arith.cmpi ne, %10, %c0_i32_9 : i32
    scf.if %11 {
      %c0_10 = arith.constant 0 : index
      %c0_11 = arith.constant 0 : index
      %12 = vector.load %arg6[%c0_10, %c0_11] : memref<16x256xf32, #tpu.memory_space<vmem>>, vector<16x256xf32>
      %c0_12 = arith.constant 0 : index
      %c0_13 = arith.constant 0 : index
      %13 = vector.load %arg5[%c0_12, %c0_13] : memref<16x256xf32, #tpu.memory_space<vmem>>, vector<16x256xf32>
      tpu.vector_store %arg5[%c0_12, %c0_13], %12 {strides = array<i32>} : memref<16x256xf32, #tpu.memory_space<vmem>>, vector<16x256xf32>,
    } else {
    }
    return
  }
  func.func @transform_0(%arg0: i32, %arg1: i32, %arg2: i32) -> (i32, i32) {
    %c0_i32 = arith.constant 0 : i32
    return %arg0, %arg2 : i32, i32
  }
  func.func @transform_1(%arg0: i32, %arg1: i32, %arg2: i32) -> (i32, i32) {
    %c0_i32 = arith.constant 0 : i32
    return %arg2, %arg1 : i32, i32
  }
  func.func @transform_2(%arg0: i32, %arg1: i32, %arg2: i32) -> (i32, i32) {
    %c0_i32 = arith.constant 0 : i32
    return %arg0, %arg1 : i32, i32
  }
}

</mosaic_0001>

<bundles_post_ra>
// kernel: _lambda_.7
= control target key start
LH: loop header
LB: loop body
LE: loop exit
PB: predicated region body
PF: predicated region fallthrough
CT: control target
= control target key end

     0   :  { %s903_s1 = inlined_call_operand.vmem [shape: f32[512,256], index: 1, kind: input, shape index: {}]   ;;  %s904_s0 = inlined_call_operand.vmem [shape: f32[16,512], index: 0, kind: input, shape index: {}]   ;;  %s905_s2 = inlined_call_operand.vmem [shape: f32[16,256], index: 2, kind: output, shape index: {}]  }
   0x1   :  { %v32_v0 = vld [vmem:[%s903_s1 + $0x8] sm:$0xff]  ;;  %v34_v1 = vld [vmem:[%s903_s1 + $0x18] sm:$0xff]  ;;  %v31_v5 = vld [vmem:[%s903_s1] sm:$0xff] }
   0x2   :  { %v96_v2 = vld [vmem:[%s903_s1 + $0x208] sm:$0xff]  ;;  %v336_v3 = vpack.c.bf16 %v34_v1, %v32_v0  ;;  %v98_v4 = vld [vmem:[%s903_s1 + $0x218] sm:$0xff]  ;;  %v33_v6 = vld [vmem:[%s903_s1 + $0x10] sm:$0xff] }
   0x3   :  { %v400_v7 = vpack.c.bf16 %v98_v4, %v96_v2  ;;  %v338_v8 = vpack.c.bf16 %v33_v6, %v31_v5  ;;  %v95_v9 = vld [vmem:[%s903_s1 + $0x200] sm:$0xff]  ;;  %v97_v10 = vld [vmem:[%s903_s1 + $0x210] sm:$0xff]  ;;  %v36_v11 = vld [vmem:[%s903_s1 + $0x28] sm:$0xff] }
   0x4   :  { %337 = vmatprep.subr.bf16.mxu1 %v336_v3  ;;  %v402_v12 = vpack.c.bf16 %v97_v10, %v95_v9  ;;  %v38_v13 = vld [vmem:[%s903_s1 + $0x38] sm:$0xff]  ;;  %v100_v14 = vld [vmem:[%s903_s1 + $0x228] sm:$0xff]  ;;  %v35_v18 = vld [vmem:[%s903_s1 + $0x20] sm:$0xff] }
   0x5   :  { %v102_v15 = vld [vmem:[%s903_s1 + $0x238] sm:$0xff]  ;;  %401 = vmatprep.subr.bf16.mxu0 %v400_v7  ;;  %339 = vmatpush1.bf16.msra.mxu1 %v338_v8  ;;  %v340_v16 = vpack.c.bf16 %v38_v13, %v36_v11  ;;  %v37_v19 = vld [vmem:[%s903_s1 + $0x30] sm:$0xff]  ;;  %v99_v20 = vld [vmem:[%s903_s1 + $0x220] sm:$0xff] }
   0x6   :  { %v404_v17 = vpack.c.bf16 %v102_v15, %v100_v14  ;;  %403 = vmatpush1.bf16.msra.mxu0 %v402_v12  ;;  %v342_v21 = vpack.c.bf16 %v37_v19, %v35_v18  ;;  %v101_v22 = vld [vmem:[%s903_s1 + $0x230] sm:$0xff]  ;;  %v40_v23 = vld [vmem:[%s903_s1 + $0x48] sm:$0xff]  ;;  %v42_v24 = vld [vmem:[%s903_s1 + $0x58] sm:$0xff] }
   0x7   :  { %341 = vmatprep.subr.bf16.mxu1 %v340_v16  ;;  %v406_v25 = vpack.c.bf16 %v101_v22, %v99_v20  ;;  %v344_v26 = vpack.c.bf16 %v42_v24, %v40_v23  ;;  %v104_v27 = vld [vmem:[%s903_s1 + $0x248] sm:$0xff]  ;;  %v106_v28 = vld [vmem:[%s903_s1 + $0x258] sm:$0xff]  ;;  %v39_v29 = vld [vmem:[%s903_s1 + $0x40] sm:$0xff] }
   0x8   :  { %405 = vmatprep.subr.bf16.mxu0 %v404_v17  ;;  %v408_v30 = vpack.c.bf16 %v106_v28, %v104_v27  ;;  %v41_v31 = vld [vmem:[%s903_s1 + $0x50] sm:$0xff]  ;;  %v103_v32 = vld [vmem:[%s903_s1 + $0x240] sm:$0xff]  ;;  %v44_v35 = vld [vmem:[%s903_s1 + $0x68] sm:$0xff] }
   0x9   :  { %v105_v33 = vld [vmem:[%s903_s1 + $0x250] sm:$0xff]  ;;  %343 = vmatpush1.bf16.msra.mxu1 %v342_v21  ;;  %v346_v34 = vpack.c.bf16 %v41_v31, %v39_v29  ;;  %v46_v36 = vld [vmem:[%s903_s1 + $0x78] sm:$0xff]  ;;  %v108_v37 = vld [vmem:[%s903_s1 + $0x268] sm:$0xff] }
   0xa   :  { %407 = vmatpush1.bf16.msra.mxu0 %v406_v25  ;;  %345 = vmatprep.subr.bf16.mxu1 %v344_v26  ;;  %v410_v38 = vpack.c.bf16 %v105_v33, %v103_v32  ;;  %v348_v39 = vpack.c.bf16 %v46_v36, %v44_v35  ;;  %v110_v40 = vld [vmem:[%s903_s1 + $0x278] sm:$0xff]  ;;  %v43_v41 = vld [vmem:[%s903_s1 + $0x60] sm:$0xff]  ;;  %v45_v42 = vld [vmem:[%s903_s1 + $0x70] sm:$0xff] }
   0xb   :  { %409 = vmatprep.subr.bf16.mxu0 %v408_v30  ;;  %v412_v43 = vpack.c.bf16 %v110_v40, %v108_v37  ;;  %v107_v44 = vld [vmem:[%s903_s1 + $0x260] sm:$0xff]  ;;  %v109_v45 = vld [vmem:[%s903_s1 + $0x270] sm:$0xff]  ;;  %v48_v46 = vld [vmem:[%s903_s1 + $0x88] sm:$0xff]  ;;  %v350_v50 = vpack.c.bf16 %v45_v42, %v43_v41 }
   0xc   :  { %v50_v47 = vld [vmem:[%s903_s1 + $0x98] sm:$0xff]  ;;  %v112_v48 = vld [vmem:[%s903_s1 + $0x288] sm:$0xff]  ;;  %v414_v51 = vpack.c.bf16 %v109_v45, %v107_v44  ;;  %v47_v53 = vld [vmem:[%s903_s1 + $0x80] sm:$0xff] }
   0xd   :  { %v114_v49 = vld [vmem:[%s903_s1 + $0x298] sm:$0xff]  ;;  %347 = vmatpush1.bf16.msra.mxu1 %v346_v34  ;;  %v352_v52 = vpack.c.bf16 %v50_v47, %v48_v46  ;;  %v49_v54 = vld [vmem:[%s903_s1 + $0x90] sm:$0xff]  ;;  %v111_v55 = vld [vmem:[%s903_s1 + $0x280] sm:$0xff] }
   0xe   :  { %411 = vmatpush1.bf16.msra.mxu0 %v410_v38  ;;  %349 = vmatprep.subr.bf16.mxu1 %v348_v39  ;;  %v416_v56 = vpack.c.bf16 %v114_v49, %v112_v48  ;;  %v113_v57 = vld [vmem:[%s903_s1 + $0x290] sm:$0xff]  ;;  %v52_v58 = vld [vmem:[%s903_s1 + $0xa8] sm:$0xff]  ;;  %v54_v59 = vld [vmem:[%s903_s1 + $0xb8] sm:$0xff]  ;;  %v354_v62 = vpack.c.bf16 %v49_v54, %v47_v53 }
   0xf   :  { %413 = vmatprep.subr.bf16.mxu0 %v412_v43  ;;  %v116_v60 = vld [vmem:[%s903_s1 + $0x2a8] sm:$0xff]  ;;  %v118_v61 = vld [vmem:[%s903_s1 + $0x2b8] sm:$0xff]  ;;  %v418_v63 = vpack.c.bf16 %v113_v57, %v111_v55  ;;  %v356_v0 = vpack.c.bf16 %v54_v59, %v52_v58  ;;  %v51_v1 = vld [vmem:[%s903_s1 + $0xa0] sm:$0xff] }
  0x10   :  { %v53_v2 = vld [vmem:[%s903_s1 + $0xb0] sm:$0xff]  ;;  %v115_v3 = vld [vmem:[%s903_s1 + $0x2a0] sm:$0xff]  ;;  %v420_v4 = vpack.c.bf16 %v118_v61, %v116_v60  ;;  %v56_v6 = vld [vmem:[%s903_s1 + $0xc8] sm:$0xff] }
  0x11   :  { %351 = vmatpush1.bf16.msra.mxu1 %v350_v50  ;;  %v117_v5 = vld [vmem:[%s903_s1 + $0x2b0] sm:$0xff]  ;;  %v58_v7 = vld [vmem:[%s903_s1 + $0xd8] sm:$0xff]  ;;  %v120_v8 = vld [vmem:[%s903_s1 + $0x2c8] sm:$0xff]  ;;  %v358_v10 = vpack.c.bf16 %v53_v2, %v51_v1 }
  0x12   :  { %415 = vmatpush1.bf16.msra.mxu0 %v414_v51  ;;  %353 = vmatprep.subr.bf16.mxu1 %v352_v52  ;;  %v122_v9 = vld [vmem:[%s903_s1 + $0x2d8] sm:$0xff]  ;;  %v422_v11 = vpack.c.bf16 %v117_v5, %v115_v3  ;;  %v360_v12 = vpack.c.bf16 %v58_v7, %v56_v6  ;;  %v55_v13 = vld [vmem:[%s903_s1 + $0xc0] sm:$0xff]  ;;  %v57_v14 = vld [vmem:[%s903_s1 + $0xd0] sm:$0xff] }
  0x13   :  { %417 = vmatprep.subr.bf16.mxu0 %v416_v56  ;;  %v119_v15 = vld [vmem:[%s903_s1 + $0x2c0] sm:$0xff]  ;;  %v424_v16 = vpack.c.bf16 %v122_v9, %v120_v8  ;;  %v121_v17 = vld [vmem:[%s903_s1 + $0x2d0] sm:$0xff]  ;;  %v60_v18 = vld [vmem:[%s903_s1 + $0xe8] sm:$0xff]  ;;  %v362_v22 = vpack.c.bf16 %v57_v14, %v55_v13 }
  0x14   :  { %v62_v19 = vld [vmem:[%s903_s1 + $0xf8] sm:$0xff]  ;;  %v124_v20 = vld [vmem:[%s903_s1 + $0x2e8] sm:$0xff]  ;;  %v426_v23 = vpack.c.bf16 %v121_v17, %v119_v15  ;;  %v59_v25 = vld [vmem:[%s903_s1 + $0xe0] sm:$0xff] }
  0x15   :  { %355 = vmatpush1.bf16.msra.mxu1 %v354_v62  ;;  %v126_v21 = vld [vmem:[%s903_s1 + $0x2f8] sm:$0xff]  ;;  %v364_v24 = vpack.c.bf16 %v62_v19, %v60_v18  ;;  %v61_v26 = vld [vmem:[%s903_s1 + $0xf0] sm:$0xff]  ;;  %v123_v27 = vld [vmem:[%s903_s1 + $0x2e0] sm:$0xff] }
  0x16   :  { %419 = vmatpush1.bf16.msra.mxu0 %v418_v63  ;;  %357 = vmatprep.subr.bf16.mxu1 %v356_v0  ;;  %v428_v28 = vpack.c.bf16 %v126_v21, %v124_v20  ;;  %v125_v29 = vld [vmem:[%s903_s1 + $0x2f0] sm:$0xff]  ;;  %v64_v30 = vld [vmem:[%s903_s1 + $0x108] sm:$0xff]  ;;  %v66_v31 = vld [vmem:[%s903_s1 + $0x118] sm:$0xff]  ;;  %v366_v34 = vpack.c.bf16 %v61_v26, %v59_v25 }
  0x17   :  { %421 = vmatprep.subr.bf16.mxu0 %v420_v4  ;;  %v128_v32 = vld [vmem:[%s903_s1 + $0x308] sm:$0xff]  ;;  %v130_v33 = vld [vmem:[%s903_s1 + $0x318] sm:$0xff]  ;;  %v430_v35 = vpack.c.bf16 %v125_v29, %v123_v27  ;;  %v368_v36 = vpack.c.bf16 %v66_v31, %v64_v30  ;;  %v63_v37 = vld [vmem:[%s903_s1 + $0x100] sm:$0xff] }
  0x18   :  { %v65_v38 = vld [vmem:[%s903_s1 + $0x110] sm:$0xff]  ;;  %v127_v39 = vld [vmem:[%s903_s1 + $0x300] sm:$0xff]  ;;  %v432_v40 = vpack.c.bf16 %v130_v33, %v128_v32  ;;  %v68_v42 = vld [vmem:[%s903_s1 + $0x128] sm:$0xff] }
  0x19   :  { %359 = vmatpush1.bf16.msra.mxu1 %v358_v10  ;;  %v129_v41 = vld [vmem:[%s903_s1 + $0x310] sm:$0xff]  ;;  %v70_v43 = vld [vmem:[%s903_s1 + $0x138] sm:$0xff]  ;;  %v132_v44 = vld [vmem:[%s903_s1 + $0x328] sm:$0xff]  ;;  %v370_v46 = vpack.c.bf16 %v65_v38, %v63_v37 }
  0x1a   :  { %423 = vmatpush1.bf16.msra.mxu0 %v422_v11  ;;  %361 = vmatprep.subr.bf16.mxu1 %v360_v12  ;;  %v134_v45 = vld [vmem:[%s903_s1 + $0x338] sm:$0xff]  ;;  %v434_v47 = vpack.c.bf16 %v129_v41, %v127_v39  ;;  %v372_v48 = vpack.c.bf16 %v70_v43, %v68_v42  ;;  %v67_v49 = vld [vmem:[%s903_s1 + $0x120] sm:$0xff]  ;;  %v69_v50 = vld [vmem:[%s903_s1 + $0x130] sm:$0xff] }
  0x1b   :  { %425 = vmatprep.subr.bf16.mxu0 %v424_v16  ;;  %v131_v51 = vld [vmem:[%s903_s1 + $0x320] sm:$0xff]  ;;  %v436_v52 = vpack.c.bf16 %v134_v45, %v132_v44  ;;  %v133_v53 = vld [vmem:[%s903_s1 + $0x330] sm:$0xff]  ;;  %v72_v54 = vld [vmem:[%s903_s1 + $0x148] sm:$0xff]  ;;  %v374_v58 = vpack.c.bf16 %v69_v50, %v67_v49 }
  0x1c   :  { %v74_v55 = vld [vmem:[%s903_s1 + $0x158] sm:$0xff]  ;;  %v136_v56 = vld [vmem:[%s903_s1 + $0x348] sm:$0xff]  ;;  %v438_v59 = vpack.c.bf16 %v133_v53, %v131_v51  ;;  %v71_v61 = vld [vmem:[%s903_s1 + $0x140] sm:$0xff] }
  0x1d   :  { %363 = vmatpush1.bf16.msra.mxu1 %v362_v22  ;;  %v138_v57 = vld [vmem:[%s903_s1 + $0x358] sm:$0xff]  ;;  %v376_v60 = vpack.c.bf16 %v74_v55, %v72_v54  ;;  %v73_v62 = vld [vmem:[%s903_s1 + $0x150] sm:$0xff]  ;;  %v135_v63 = vld [vmem:[%s903_s1 + $0x340] sm:$0xff] }
  0x1e   :  { %427 = vmatpush1.bf16.msra.mxu0 %v426_v23  ;;  %365 = vmatprep.subr.bf16.mxu1 %v364_v24  ;;  %v440_v0 = vpack.c.bf16 %v138_v57, %v136_v56  ;;  %v137_v1 = vld [vmem:[%s903_s1 + $0x350] sm:$0xff]  ;;  %v76_v2 = vld [vmem:[%s903_s1 + $0x168] sm:$0xff]  ;;  %v78_v3 = vld [vmem:[%s903_s1 + $0x178] sm:$0xff]  ;;  %v378_v6 = vpack.c.bf16 %v73_v62, %v71_v61 }
  0x1f   :  { %429 = vmatprep.subr.bf16.mxu0 %v428_v28  ;;  %v140_v4 = vld [vmem:[%s903_s1 + $0x368] sm:$0xff]  ;;  %v142_v5 = vld [vmem:[%s903_s1 + $0x378] sm:$0xff]  ;;  %v75_v7 = vld [vmem:[%s903_s1 + $0x160] sm:$0xff]  ;;  %v442_v8 = vpack.c.bf16 %v137_v1, %v135_v63  ;;  %v380_v9 = vpack.c.bf16 %v78_v3, %v76_v2 }
  0x20   :  { %v77_v10 = vld [vmem:[%s903_s1 + $0x170] sm:$0xff]  ;;  %v139_v11 = vld [vmem:[%s903_s1 + $0x360] sm:$0xff]  ;;  %v444_v13 = vpack.c.bf16 %v142_v5, %v140_v4  ;;  %v80_v14 = vld [vmem:[%s903_s1 + $0x188] sm:$0xff] }
  0x21   :  { %367 = vmatpush1.bf16.msra.mxu1 %v366_v34  ;;  %v141_v12 = vld [vmem:[%s903_s1 + $0x370] sm:$0xff]  ;;  %v82_v15 = vld [vmem:[%s903_s1 + $0x198] sm:$0xff]  ;;  %v24_v16 = vld [vmem:[%s904_s0 + $0x8] sm:$0xff]  ;;  %v382_v20 = vpack.c.bf16 %v77_v10, %v75_v7 }
  0x22   :  { %431 = vmatpush1.bf16.msra.mxu0 %v430_v35  ;;  %369 = vmatprep.subr.bf16.mxu1 %v368_v36  ;;  %v144_v17 = vld [vmem:[%s903_s1 + $0x388] sm:$0xff]  ;;  %v146_v18 = vld [vmem:[%s903_s1 + $0x398] sm:$0xff]  ;;  %v446_v21 = vpack.c.bf16 %v141_v12, %v139_v11  ;;  %v384_v22 = vpack.c.bf16 %v82_v15, %v80_v14  ;;  %v79_v23 = vld [vmem:[%s903_s1 + $0x180] sm:$0xff] }
  0x23   :  { %433 = vmatprep.subr.bf16.mxu0 %v432_v40  ;;  %223 = vmatprep.mubr.f32.mxu1 %v24_v16  ;;  %v26_v19 = vld [vmem:[%s904_s0 + $0x18] sm:$0xff]  ;;  %v81_v24 = vld [vmem:[%s903_s1 + $0x190] sm:$0xff]  ;;  %v143_v25 = vld [vmem:[%s903_s1 + $0x380] sm:$0xff]  ;;  %v448_v26 = vpack.c.bf16 %v146_v18, %v144_v17 }
  0x24   :  { %300 = vmatprep.mubr.f32.mxu0 %v26_v19  ;;  %v145_v27 = vld [vmem:[%s903_s1 + $0x390] sm:$0xff]  ;;  %v84_v28 = vld [vmem:[%s903_s1 + $0x1a8] sm:$0xff]  ;;  %v86_v29 = vld [vmem:[%s903_s1 + $0x1b8] sm:$0xff]  ;;  %v386_v32 = vpack.c.bf16 %v81_v24, %v79_v23 }
  0x25   :  { %371 = vmatpush1.bf16.msra.mxu1 %v370_v46  ;;  %v148_v30 = vld [vmem:[%s903_s1 + $0x3a8] sm:$0xff]  ;;  %v150_v31 = vld [vmem:[%s903_s1 + $0x3b8] sm:$0xff]  ;;  %v450_v33 = vpack.c.bf16 %v145_v27, %v143_v25  ;;  %v388_v34 = vpack.c.bf16 %v86_v29, %v84_v28  ;;  %v83_v35 = vld [vmem:[%s903_s1 + $0x1a0] sm:$0xff] }
  0x26   :  { %435 = vmatpush1.bf16.msra.mxu0 %v434_v47  ;;  %373 = vmatprep.subr.bf16.mxu1 %v372_v48  ;;  %v85_v36 = vld [vmem:[%s903_s1 + $0x1b0] sm:$0xff]  ;;  %v147_v37 = vld [vmem:[%s903_s1 + $0x3a0] sm:$0xff]  ;;  %v452_v38 = vpack.c.bf16 %v150_v31, %v148_v30  ;;  %v88_v40 = vld [vmem:[%s903_s1 + $0x1c8] sm:$0xff] }
  0x27   :  { %437 = vmatprep.subr.bf16.mxu0 %v436_v52  ;;  %v149_v39 = vld [vmem:[%s903_s1 + $0x3b0] sm:$0xff]  ;;  %v90_v41 = vld [vmem:[%s903_s1 + $0x1d8] sm:$0xff]  ;;  %v152_v42 = vld [vmem:[%s903_s1 + $0x3c8] sm:$0xff]  ;;  %v390_v44 = vpack.c.bf16 %v85_v36, %v83_v35 }
  0x28   :  { %v154_v43 = vld [vmem:[%s903_s1 + $0x3d8] sm:$0xff]  ;;  %v454_v45 = vpack.c.bf16 %v149_v39, %v147_v37  ;;  %v392_v46 = vpack.c.bf16 %v90_v41, %v88_v40  ;;  %v87_v47 = vld [vmem:[%s903_s1 + $0x1c0] sm:$0xff]  ;;  %v89_v48 = vld [vmem:[%s903_s1 + $0x1d0] sm:$0xff] }
  0x29   :  { %375 = vmatpush1.bf16.msra.mxu1 %v374_v58  ;;  %v151_v49 = vld [vmem:[%s903_s1 + $0x3c0] sm:$0xff]  ;;  %v456_v50 = vpack.c.bf16 %v154_v43, %v152_v42  ;;  %v153_v51 = vld [vmem:[%s903_s1 + $0x3d0] sm:$0xff]  ;;  %v92_v52 = vld [vmem:[%s903_s1 + $0x1e8] sm:$0xff]  ;;  %v394_v56 = vpack.c.bf16 %v89_v48, %v87_v47 }
  0x2a   :  { %439 = vmatpush1.bf16.msra.mxu0 %v438_v59  ;;  %377 = vmatprep.subr.bf16.mxu1 %v376_v60  ;;  %v94_v53 = vld [vmem:[%s903_s1 + $0x1f8] sm:$0xff]  ;;  %v156_v54 = vld [vmem:[%s903_s1 + $0x3e8] sm:$0xff]  ;;  %v458_v57 = vpack.c.bf16 %v153_v51, %v151_v49  ;;  %v91_v59 = vld [vmem:[%s903_s1 + $0x1e0] sm:$0xff] }
  0x2b   :  { %441 = vmatprep.subr.bf16.mxu0 %v440_v0  ;;  %v158_v55 = vld [vmem:[%s903_s1 + $0x3f8] sm:$0xff]  ;;  %v396_v58 = vpack.c.bf16 %v94_v53, %v92_v52  ;;  %v93_v60 = vld [vmem:[%s903_s1 + $0x1f0] sm:$0xff]  ;;  %v155_v62 = vld [vmem:[%s903_s1 + $0x3e0] sm:$0xff] }
  0x2c   :  { %v460_v61 = vpack.c.bf16 %v158_v55, %v156_v54  ;;  %v157_v63 = vld [vmem:[%s903_s1 + $0x3f0] sm:$0xff]  ;;  %v398_v0 = vpack.c.bf16 %v93_v60, %v91_v59  ;;  %v23_v2 = vld [vmem:[%s904_s0] sm:$0xff]  ;;  %v28_v4 = vld [vmem:[%s904_s0 + $0x28] sm:$0xff] }
  0x2d   :  { %379 = vmatpush1.bf16.msra.mxu1 %v378_v6  ;;  %v462_v1 = vpack.c.bf16 %v157_v63, %v155_v62  ;;  %v25_v3 = vld [vmem:[%s904_s0 + $0x10] sm:$0xff]  ;;  %v30_v5 = vld [vmem:[%s904_s0 + $0x38] sm:$0xff]  ;;  %v27_v6 = vld [vmem:[%s904_s0 + $0x20] sm:$0xff] }
  0x2e   :  { %443 = vmatpush1.bf16.msra.mxu0 %v442_v8  ;;  %381 = vmatprep.subr.bf16.mxu1 %v380_v9  ;;  %v29_v7 = vld [vmem:[%s904_s0 + $0x30] sm:$0xff] }
  0x2f   :  { %445 = vmatprep.subr.bf16.mxu0 %v444_v13 }
  0x31   :  { %383 = vmatpush1.bf16.msra.mxu1 %v382_v20 }
  0x32   :  { %447 = vmatpush1.bf16.msra.mxu0 %v446_v21  ;;  %385 = vmatprep.subr.bf16.mxu1 %v384_v22 }
  0x33   :  { %449 = vmatprep.subr.bf16.mxu0 %v448_v26 }
  0x35   :  { %387 = vmatpush1.bf16.msra.mxu1 %v386_v32 }
  0x36   :  { %451 = vmatpush1.bf16.msra.mxu0 %v450_v33  ;;  %389 = vmatprep.subr.bf16.mxu1 %v388_v34 }
  0x37   :  { %453 = vmatprep.subr.bf16.mxu0 %v452_v38 }
  0x39   :  { %391 = vmatpush1.bf16.msra.mxu1 %v390_v44 }
  0x3a   :  { %455 = vmatpush1.bf16.msra.mxu0 %v454_v45  ;;  %393 = vmatprep.subr.bf16.mxu1 %v392_v46 }
  0x3b   :  { %457 = vmatprep.subr.bf16.mxu0 %v456_v50 }
  0x3d   :  { %395 = vmatpush1.bf16.msra.mxu1 %v394_v56 }
  0x3e   :  { %459 = vmatpush1.bf16.msra.mxu0 %v458_v57  ;;  %397 = vmatprep.subr.bf16.mxu1 %v396_v58 }
  0x3f   :  { %461 = vmatprep.subr.bf16.mxu0 %v460_v61 }
  0x41   :  { %399 = vmatpush1.bf16.msra.mxu1 %v398_v0 }
  0x42   :  { %463 = vmatpush1.bf16.msra.mxu0 %v462_v1 }
  0x44   :  { %224 = vmatmul.mubr.f32.vlgmr.msra.gmra.mrb[0].mxu1 %v23_v2 }
  0x45   :  { %301 = vmatmul.mubr.f32.vlgmr.msra.gmra.mrb[0].mxu0 %v25_v3  ;;  %229 = vmatprep.mubr.f32.mxu1 %v28_v4 }
  0x46   :  { %306 = vmatprep.mubr.f32.mxu0 %v30_v5 }
  0x48   :  { %230 = vmatmul.mubr.f32.gmra.mrb[2].mxu1 %v27_v6 }
  0x49   :  { %307 = vmatmul.mubr.f32.gmra.mrb[2].mxu0 %v29_v7 }
 0x117   :  { %v225_v8 = vpop.f32.mrb[0].mxu1 }
 0x118   :  { %v302_v9 = vpop.f32.mrb[0].mxu0  ;;  %v227_v10 = vpop.f32.mrb[1].mxu1 }
 0x119   :  { %v303_v11 = vadd.f32 %v302_v9, %v225_v8  ;;  %v304_v12 = vpop.f32.mrb[1].mxu0 }
 0x11a   :  { %v305_v13 = vadd.f32 %v304_v12, %v227_v10 }
 0x11b   :  { %328 = vst [vmem:[%s905_s2] sm:$0xff] %v303_v11  ;;  %v231_v14 = vpop.f32.mrb[2].mxu1 }
 0x11c   :  { %329 = vst [vmem:[%s905_s2 + $0x8] sm:$0xff] %v305_v13  ;;  %v308_v15 = vpop.f32.mrb[2].mxu0  ;;  %v233_v16 = vpop.f32.mrb[3].mxu1 }
 0x11d   :  { %v309_v17 = vadd.f32 %v308_v15, %v231_v14  ;;  %v310_v18 = vpop.f32.mrb[3].mxu0 }
 0x11e   :  { %v311_v19 = vadd.f32 %v310_v18, %v233_v16 }
 0x11f   :  { %330 = vst [vmem:[%s905_s2 + $0x10] sm:$0xff] %v309_v17 }
 0x120   :  { %331 = vst [vmem:[%s905_s2 + $0x18] sm:$0xff] %v311_v19 }

// kernel: _lambda_.6
= control target key start
LH: loop header
LB: loop body
LE: loop exit
PB: predicated region body
PF: predicated region fallthrough
CT: control target
= control target key end

     0   :  { %s1421_s18 = smov 0   ;;  %s1423_s19 = smov 0   ;;  %s1681_s0 = inlined_call_operand.vmem [shape: f32[16,512], index: 0, kind: input, shape index: {}]   ;;  %s1682_s1 = inlined_call_operand.vmem [shape: f32[16,256], index: 1, kind: input, shape index: {}]   ;;  %s1683_s2 = inlined_call_operand.vmem [shape: f32[16,256], index: 2, kind: input, shape index: {}]   ;;  %s1684_s3 = inlined_call_operand.vmem [shape: f32[16,64], index: 3, kind: input, shape index: {}]   ;;  %s1685_s4 = inlined_call_operand.vmem [shape: f32[16,64], index: 4, kind: input, shape index: {}]   ;;  %s1686_s5 = inlined_call_operand.vmem [shape: f32[16,512], index: 5, kind: output, shape index: {}]  }
   0x1   :  { %s1425_s20 = smov 0  }
   0x2 LB: > { %s1175_s21 = sadd.s32 4294967295, %s1388_s20   ;;  %s1438_s22 = sadd.s32 1, %s1388_s20   ;;  %s1388_s20 = sphi %s1425_s20, %s1693_s20   ;;  %s1384_s19 = sphi %s1423_s19, %s1692_s19   ;;  %s1380_s18 = sphi %s1421_s18, %s1691_s18  }
   0x3   : > { %s19_s23 = ssub.s32 %s1388_s20, %s1438_s22  ;;  %s22_s24 = sadd.s32 1, %s1384_s19 }
   0x4   : > { %p20_p0 = scmp.eq.s32.totalorder %s19_s23, 0  ;;  %p29_p1 = scmp.ne.s32.totalorder %s1384_s19, %s1380_s18 }
   0x5   : > { %p30_p2 = scmp.eq.s32.totalorder %s1388_s20, 0  ;;  %p153_p3 = scmp.eq.s32.totalorder %s1175_s21, 1 }
   0x6   : > { %s1449_s25 = scalar_select %p20_p0, %s1384_s19, %s22_s24  }
   0x7   : > { %p1451_p4 = por %p30_p2, %p29_p1  ;;  %p1455_p5 = por %p153_p3, %p29_p1 }
   0x8   : > { %p1178_p6 = scmp.ge.s32.totalorder %s1388_s20, 2 }
   0xa   : > { %181 = sbr.rel (%p1178_p6) target bundleno = 38 (0x26), region = 24 }
  0x11   : > { %184 = sbr.rel (!%p1451_p4) target bundleno = 24 (0x18), region = 28  ;;  %s186_s28 = sand.u32 (%p1451_p4), 1, %s1384_s19  }
  0x12   : > { %s1216_s29 = sshll.u32 (%p1451_p4), %s1388_s20, 4  ;;  %s1179_s30 = sshll.u32 (%p1451_p4), %s186_s28, 5 }
  0x13   : > { %s191_s8 = scalar_lea.vmem (%p1451_p4), %s1681_s0, %s1216_s29  ;;  %s188_s9 = scalar_lea.vmem (%p1451_p4), [#allocation2], %s1179_s30 }
  0x14   : > { %v204_v0 = vld [vmem:[%s191_s8] sm:$0xff] (%p1451_p4)  ;;  %v206_v1 = vld [vmem:[%s191_s8 + $0x8] sm:$0xff] (%p1451_p4) }
  0x15   : > { %v208_v2 = vld [vmem:[%s191_s8 + $0x20] sm:$0xff] (%p1451_p4)  ;;  %205 = vst [vmem:[%s188_s9] sm:$0xff] (%p1451_p4), %v204_v0  ;;  %207 = vst [vmem:[%s188_s9 + $0x8] sm:$0xff] (%p1451_p4), %v206_v1  ;;  %v210_v3 = vld [vmem:[%s191_s8 + $0x28] sm:$0xff] (%p1451_p4) }
  0x16   : > { %209 = vst [vmem:[%s188_s9 + $0x10] sm:$0xff] (%p1451_p4), %v208_v2  ;;  %211 = vst [vmem:[%s188_s9 + $0x18] sm:$0xff] (%p1451_p4), %v210_v3 }
  0x18 PF: > { %217 = sbr.rel (!%p1451_p4) target bundleno = 31 (0x1f), region = 51  ;;  %s219_s10 = sand.u32 (%p1451_p4), 1, %s1384_s19  }
  0x19   : > { %s1183_s11 = sshll.u32 (%p1451_p4), %s1388_s20, 3  ;;  %s1182_s12 = sshll.u32 (%p1451_p4), %s219_s10, 4 }
  0x1a   : > { %s223_s15 = scalar_lea.vmem (%p1451_p4), %s1682_s1, %s1183_s11  ;;  %s221_s16 = scalar_lea.vmem (%p1451_p4), [#allocation3], %s1182_s12 }
  0x1b   : > { %v253_v4 = vld [vmem:[%s223_s15] sm:$0xff] (%p1451_p4)  ;;  %v255_v5 = vld [vmem:[%s223_s15 + $0x10] sm:$0xff] (%p1451_p4) }
  0x1c   : > { %254 = vst [vmem:[%s221_s16] sm:$0xff] (%p1451_p4), %v253_v4  ;;  %256 = vst [vmem:[%s221_s16 + $0x8] sm:$0xff] (%p1451_p4), %v255_v5 }
  0x1f PF: > { %262 = sbr.rel (!%p1451_p4) target bundleno = 38 (0x26), region = 89  ;;  %s264_s17 = sand.u32 (%p1451_p4), 1, %s1384_s19  }
  0x20   : > { %s1185_s23 = sshll.u32 (%p1451_p4), %s1388_s20, 3  ;;  %s1184_s24 = sshll.u32 (%p1451_p4), %s264_s17, 4 }
  0x21   : > { %s268_s30 = scalar_lea.vmem (%p1451_p4), %s1683_s2, %s1185_s23  ;;  %s266_s6 = scalar_lea.vmem (%p1451_p4), [#allocation4], %s1184_s24 }
  0x22   : > { %v298_v6 = vld [vmem:[%s268_s30] sm:$0xff] (%p1451_p4)  ;;  %v300_v7 = vld [vmem:[%s268_s30 + $0x10] sm:$0xff] (%p1451_p4) }
  0x23   : > { %299 = vst [vmem:[%s266_s6] sm:$0xff] (%p1451_p4), %v298_v6  ;;  %301 = vst [vmem:[%s266_s6 + $0x8] sm:$0xff] (%p1451_p4), %v300_v7 }
  0x26 PF: > { %p1186_p7 = scmp.ge.s32.totalorder %s1388_s20, 1  ;;  %p306_p8 = scmp.lt.s32.totalorder %s1388_s20, 3 }
  0x28   : > { %p307_p9 = pnand %p1186_p7, %p306_p8 }
  0x29   : > { %v1486_v8 = vld [vmem:[%s1684_s3] sm:$0xff] (!%p307_p9)  ;;  %s313_s8 = sand.u32 (!%p307_p9), 1, %s1380_s18   ;;  %s1390_s9 = smov (!%p307_p9), 64   ;;  %v1501_v10 = vld [vmem:[%s1684_s3 + $0x8] sm:$0xff] (!%p307_p9)  ;;  %vm464_vm0 = vcmask (!%p307_p9), 523264   ;;  %v415_v0 = vlaneseq (!%p307_p9)  ;;  %vm639_vm3 = vcmask (!%p307_p9), 130048  }
  0x2a   : > { %310 = sbr.rel (%p307_p9) target bundleno = 1605 (0x645), region = 127  ;;  %393 = vrot.lane.b32.xlu0 (!%p307_p9), %v1486_v8, %s1390_s9  ;;  %s1188_s10 = sshll.u32 (!%p307_p9), %s313_s8, 4  ;;  %v1494_v9 = vld [vmem:[%s1685_s4] sm:$0xff] (!%p307_p9)  ;;  %v1506_v13 = vld [vmem:[%s1685_s4 + $0x8] sm:$0xff] (!%p307_p9)  ;;  %vm1560_vm1 = vmpackc.low (!%p307_p9), %vm464_vm0, %vm464_vm0 }
  0x2b   : > { %s1496_s13 = sshll.u32 (!%p307_p9), %s313_s8, 5  ;;  %s322_s16 = scalar_lea.vmem (!%p307_p9), [#allocation3], %s1188_s10  ;;  %v1589_v1 = vshrl.u32 (!%p307_p9), %v415_v0, 7  ;;  %v1594_v3 = vand.u32 (!%p307_p9), 127, %v415_v0 }
  0x2c   : > { %v367_v11 = vld [vmem:[%s322_s16] sm:$0xff] (!%p307_p9)  ;;  %v368_v12 = vld [vmem:[%s322_s16 + $0x8] sm:$0xff] (!%p307_p9)  ;;  %s1514_s23 = scalar_lea.vmem (!%p307_p9), [#allocation2], %s1496_s13  ;;  %s329_s24 = scalar_lea.vmem (!%p307_p9), [#allocation4], %s1188_s10 }
  0x2d   : > { %v401_v14 = vmul.f32 (!%p307_p9), %v367_v11, %v1494_v9  ;;  %v402_v15 = vmul.f32 (!%p307_p9), %v368_v12, %v1506_v13  ;;  %v422_v16 = vld [vmem:[%s1514_s23] sm:$0xff] (!%p307_p9)  ;;  %v1522_v18 = vld [vmem:[%s1514_s23 + $0x10] sm:$0xff] (!%p307_p9)  ;;  %v414_v22 = vld [vmem:[%s329_s24 + $0x8] sm:$0xff] (!%p307_p9)  ;;  %v369_v45 = vmul.f32 (!%p307_p9), %v367_v11, %v1486_v8  ;;  %v370_v50 = vmul.f32 (!%p307_p9), %v368_v12, %v1501_v10  ;;  %s1642_s28 = scalar_lea.vmem (!%p307_p9), [#allocation5], %s1496_s13 }
  0x2e   : > { %395 = vrot.lane.b32.xlu0 (!%p307_p9), %v1501_v10, %s1390_s9  ;;  %v440_v17 = vmul.f32 (!%p307_p9), %v422_v16, %v1494_v9  ;;  %v441_v19 = vmul.f32 (!%p307_p9), %v1522_v18, %v1506_v13  ;;  %v413_v21 = vld [vmem:[%s329_s24] sm:$0xff] (!%p307_p9)  ;;  %v424_v57 = vmul.f32 (!%p307_p9), %v422_v16, %v1486_v8  ;;  %v425_v61 = vmul.f32 (!%p307_p9), %v1522_v18, %v1501_v10 }
  0x2f   : > { %405 = vrot.lane.b32.xlu1 (!%p307_p9), %v401_v14, %s1390_s9  ;;  %v1296_v23 = vpack.c.bf16 (!%p307_p9), %v414_v22, %v413_v21  ;;  %v1592_v2 = vadd.s32 (!%p307_p9), 8, %v1589_v1  ;;  %vm420_vm4 = vcmp.le.s32.totalorder (!%p307_p9), %v1594_v3, %v1589_v1 }
  0x31   : > { %1297 = vmatprep.subr.bf16.mxu1 %v1296_v23  ;;  %vm421_vm2 = vcmp.le.s32.totalorder %v1594_v3, %v1592_v2  ;;  %s1217_s29 = sshll.u32 (%p1455_p5), %s1175_s21, 4 }
  0x32   : > { %373 = vrot.lane.b32.xlu0 %v1494_v9, %s1390_s9  ;;  %1299 = vmatpush3.bf16.msra.mxu1 %v1296_v23  ;;  %s1059_s26 = scalar_lea.vmem (%p1455_p5), %s1686_s5, %s1217_s29 }
  0x33   : > { %407 = vrot.lane.b32.xlu1 %v402_v15, %s1390_s9 }
  0x36   : > { %444 = vrot.lane.b32.xlu0 %v440_v17, %s1390_s9 }
  0x37   : > { %375 = vrot.lane.b32.xlu1 %v1506_v13, %s1390_s9 }
  0x3b   : > { %446 = vrot.lane.b32.xlu1 %v441_v19, %s1390_s9 }
  0x9c   : > { %v1530_v20 = vpop.permute.xlu0 %393 }
  0x9d   : > { %v399_v26 = vmul.f32 %v1530_v20, %v367_v11  ;;  %v438_v33 = vmul.f32 %v422_v16, %v1530_v20 }
  0xa0   : > { %v1532_v24 = vpop.permute.xlu0 %395 }
  0xa1   : > { %v406_v25 = vpop.permute.xlu1 %405  ;;  %v400_v27 = vmul.f32 %v1532_v24, %v368_v12  ;;  %v439_v41 = vmul.f32 %v1522_v18, %v1532_v24 }
  0xa2   : > { %v411_v31 = vadd.f32 %v406_v25, %v399_v26 }
  0xa4   : > { %v1536_v28 = vpop.permute.xlu0 %373 }
  0xa5   : > { %v379_v29 = vmul.f32 %v1536_v28, %v367_v11  ;;  %v408_v30 = vpop.permute.xlu1 %407  ;;  %v426_v39 = vmul.f32 %v422_v16, %v1536_v28  ;;  %v746_v16 = vld [vmem:[%s1514_s23 + $0x18] sm:$0xff] }
  0xa6   : > { %v412_v32 = vadd.f32 %v408_v30, %v400_v27  ;;  %v764_v17 = vmul.f32 %v746_v16, %v1506_v13 }
  0xa7   : > { %383 = vrot.lane.b32.xlu1 %v379_v29, %s1390_s9 }
  0xa8   : > { %v1345_v34 = vpack.i.bf16 %v412_v32, %v411_v31  ;;  %v445_v35 = vpop.permute.xlu0 %444  ;;  %v762_v32 = vmul.f32 %v746_v16, %v1532_v24 }
  0xa9   : > { %v450_v36 = vadd.f32 %v445_v35, %v438_v33  ;;  %v1541_v37 = vpop.permute.xlu1 %375 }
  0xaa   : > { %v380_v38 = vmul.f32 %v1541_v37, %v368_v12  ;;  %1346 = vrot.lane.b32.xlu0 %v1345_v34, %s1390_s9  ;;  %v427_v43 = vmul.f32 %v1522_v18, %v1541_v37  ;;  %v745_v18 = vld [vmem:[%s1514_s23 + $0x8] sm:$0xff] }
  0xab   : > { %454 = vrot.lane.b32.xlu1 %v450_v36, %s1390_s9  ;;  %v763_v19 = vmul.f32 %v745_v18, %v1494_v9  ;;  %v761_v35 = vmul.f32 %v745_v18, %v1530_v20  ;;  %v749_v36 = vmul.f32 %v745_v18, %v1536_v28 }
  0xad   : > { %v447_v40 = vpop.permute.xlu1 %446 }
  0xae   : > { %385 = vrot.lane.b32.xlu0 %v380_v38, %s1390_s9  ;;  %v451_v42 = vadd.f32 %v447_v40, %v439_v41 }
  0xaf   : > { %430 = vrot.lane.b32.xlu1 %v426_v39, %s1390_s9  ;;  %v750_v39 = vmul.f32 %v746_v16, %v1541_v37  ;;  %v747_v37 = vmul.f32 %v745_v18, %v1486_v8 }
  0xb2   : > { %456 = vrot.lane.b32.xlu0 %v451_v42, %s1390_s9 }
  0xb6   : > { %432 = vrot.lane.b32.xlu0 %v427_v43, %s1390_s9 }
 0x119   : > { %v384_v44 = vpop.permute.xlu1 %383 }
 0x11a   : > { %v389_v52 = vsub.f32 %v369_v45, %v384_v44 }
 0x11c   : > { %v1347_v46 = vpop.permute.xlu0 %1346 }
 0x11d   : > { %v1349_v47 = vunpack.i.h.bf16 %v1347_v46  ;;  %v1348_v48 = vunpack.i.l.bf16 %v1347_v46  ;;  %v455_v49 = vpop.permute.xlu1 %454 }
 0x11e   : > { %1246 = vmatprep.mubr.msk.f32.mxu0 %vm464_vm0, %v455_v49 }
 0x11f   : > { %v1564_v53 = vpack.c.bf16 %v1349_v47, %v1348_v48  ;;  %v748_v47 = vmul.f32 %v746_v16, %v1501_v10 }
 0x120   : > { %v386_v54 = vpop.permute.xlu0 %385 }
 0x121   : > { %v390_v55 = vsub.f32 %v370_v50, %v386_v54  ;;  %1286 = vmatprep.subr.msk.bf16.mxu0 %vm1560_vm1, %v1564_v53  ;;  %1302 = vmatprep.subr.msk.bf16.mxu1 %vm1560_vm1, %v1564_v53  ;;  %v431_v58 = vpop.permute.xlu1 %430 }
 0x122   : > { %1289 = vmatpush3.bf16.xpose.msk.msra.mxu0 %vm1560_vm1, %v1564_v53  ;;  %v436_v60 = vsub.f32 %v424_v57, %v431_v58 }
 0x123   : > { %v1575_v56 = vpack.c.bf16 %v390_v55, %v389_v52 }
 0x124   : > { %v457_v59 = vpop.permute.xlu0 %456 }
 0x125   : > { %1292 = vmatprep.subr.msk.bf16.mxu0 %vm1560_vm1, %v1575_v56 }
 0x128   : > { %v433_v62 = vpop.permute.xlu0 %432 }
 0x129   : > { %1247 = vmatmul.mubr.msk.f32.vlgmr.msra.gmra.mrb[0].mxu0 %vm464_vm0, %v457_v59  ;;  %v437_v63 = vsub.f32 %v425_v61, %v433_v62 }
 0x12a   : > { %1295 = vmatpush3.bf16.xpose.msk.msra.mxu0 %vm1560_vm1, %v1575_v56  ;;  %1253 = vmatprep.mubr.msk.f32.mxu0 %vm464_vm0, %v436_v60 }
 0x12b   : > { %1313 = vmatprep.subr.bf16.mxu0 %v1296_v23 }
 0x131   : > { %1254 = vmatmul.mubr.msk.f32.vlgmr.msra.gmra.mrb[0].mxu0 %vm464_vm0, %v437_v63 }
 0x132   : > { %1315 = vmatpush3.bf16.msra.mxu0 %v1296_v23 }
 0x204   : > { %v1255_v4 = vpop.f32.mrb[0].mxu0 }
 0x205   : > { %v636_v5 = vmul.f32 0.088388346, %v1255_v4  ;;  %v626_v6 = vpop.f32.mrb[1].mxu0 }
 0x206   : > { %v635_v7 = vmul.f32 0.088388346, %v626_v6 }
 0x207   : > { %v638_v11 = vsel %vm421_vm2, %v636_v5, -1e+30 }
 0x208   : > { %v643_v12 = vsel %vm639_vm3, %v638_v11, -inf  ;;  %v637_v14 = vsel %vm420_vm4, %v635_v7, -1e+30 }
 0x209   : > { %644 = vmax.xlane.f32.xlu0 %v643_v12  ;;  %v640_v15 = vsel %vm639_vm3, %v637_v14, -inf }
 0x20a   : > { %641 = vmax.xlane.f32.xlu1 %v640_v15 }
 0x21b   : > { %769 = vrot.lane.b32.xlu1 %v764_v17, %s1390_s9 }
 0x21f   : > { %767 = vrot.lane.b32.xlu0 %v763_v19, %s1390_s9 }
 0x296   : > { %v645_v21 = vpop.xlane.xlu0 %644 }
 0x297   : > { %v647_v22 = vsub.f32 %v638_v11, %v645_v21  ;;  %v642_v23 = vpop.xlane.xlu1 %641 }
 0x298   : > { %v646_v25 = vsub.f32 %v637_v14, %v642_v23 }
 0x299   : > { %v650_v26 = vmul.f32 1.442695, %v647_v22 }
 0x29a   : > { %v648_v27 = vmul.f32 1.442695, %v646_v25  ;;  %v768_v34 = vpop.permute.xlu0 %767 }
 0x29b   : > { %1350 = vpow2.f32 %v650_v26  ;;  %v770_v9 = vpop.permute.xlu1 %769  ;;  %v773_v38 = vadd.f32 %v768_v34, %v761_v35 }
 0x29c   : > { %1352 = vpow2.f32 %v648_v27  ;;  %v774_v33 = vadd.f32 %v770_v9, %v762_v32 }
 0x2a5   : > { %v1351_v29 = vpop.eup %1350 }
 0x2a6   : > { %v1353_v30 = vpop.eup %1352  ;;  %v655_v31 = vsel %vm639_vm3, %v1351_v29, 0.0 }
 0x2a7   : > { %656 = vadd.xlane.f32.xlu0 %v655_v31  ;;  %v652_v13 = vsel %vm639_vm3, %v1353_v30, 0.0 }
 0x2a8   : > { %653 = vadd.xlane.f32.xlu1 %v652_v13 }
 0x2b9   : > { %779 = vrot.lane.b32.xlu1 %v774_v33, %s1390_s9 }
 0x2bd   : > { %777 = vrot.lane.b32.xlu0 %v773_v38, %s1390_s9  ;;  %753 = vrot.lane.b32.xlu1 %v749_v36, %s1390_s9 }
 0x2c1   : > { %755 = vrot.lane.b32.xlu0 %v750_v39, %s1390_s9 }
 0x334   : > { %v657_v40 = vpop.xlane.xlu0 %656 }
 0x335   : > { %1354 = vrcp.f32 %v657_v40  ;;  %v654_v24 = vpop.xlane.xlu1 %653 }
 0x336   : > { %1356 = vrcp.f32 %v654_v24 }
 0x338   : > { %v778_v28 = vpop.permute.xlu0 %777 }
 0x339   : > { %v780_v43 = vpop.permute.xlu1 %779 }
 0x33c   : > { %v756_v48 = vpop.permute.xlu0 %755 }
 0x33d   : > { %v754_v45 = vpop.permute.xlu1 %753  ;;  %v760_v49 = vsub.f32 %v748_v47, %v756_v48 }
 0x33e   : > { %v759_v46 = vsub.f32 %v747_v37, %v754_v45 }
 0x33f   : > { %v1355_v41 = vpop.eup %1354 }
 0x340   : > { %v1357_v42 = vpop.eup %1356  ;;  %v661_v44 = vmul.f32 %v1355_v41, %v1351_v29 }
 0x341   : > { %v660_v20 = vmul.f32 %v1357_v42, %v1353_v30 }
 0x343   : > { %1260 = vmatprep.mubr.msk.f32.mxu1 %vm639_vm3, %v660_v20 }
 0x344   : > { %1261 = vmatmul.mubr.msk.f32.vlgmr.msra.gmra.mrb[0].mxu1 %vm639_vm3, %v661_v44 }
 0x345   : > { %1305 = vmatpush3.bf16.xpose.msk.msra.mxu1 %vm1560_vm1, %v1564_v53  ;;  %1267 = vmatprep.mubr.msk.f32.mxu1 %vm464_vm0, %v778_v28 }
 0x346   : > { %1308 = vmatprep.subr.msk.bf16.mxu1 %vm1560_vm1, %v1575_v56 }
 0x34c   : > { %1268 = vmatmul.mubr.msk.f32.vlgmr.msra.gmra.mrb[2].mxu1 %vm464_vm0, %v780_v43 }
 0x34d   : > { %1311 = vmatpush3.bf16.xpose.msk.msra.mxu1 %vm1560_vm1, %v1575_v56  ;;  %1274 = vmatprep.mubr.msk.f32.mxu1 %vm464_vm0, %v759_v46 }
 0x354   : > { %1275 = vmatmul.mubr.msk.f32.vlgmr.msra.gmra.mrb[2].mxu1 %vm464_vm0, %v760_v49 }
 0x417   : > { %v1262_v50 = vpop.f32.mrb[0].mxu1 }
 0x418   : > { %744 = vst [vmem:[%s1642_s28 + $0x10] sm:$0xff] %v1262_v50  ;;  %v734_v8 = vpop.f32.mrb[1].mxu1 }
 0x419   : > { %743 = vst [vmem:[%s1642_s28] sm:$0xff] %v734_v8 }
 0x41f   : > { %v1076_v18 = vld [vmem:[%s1642_s28 + $0x10] sm:$0xff] (%p1455_p5) }
 0x420   : > { %v1072_v16 = vld [vmem:[%s1642_s28] sm:$0xff] (%p1455_p5)  ;;  %1077 = vst [vmem:[%s1059_s26 + $0x20] sm:$0xff] (%p1455_p5), %v1076_v18 }
 0x421   : > { %1073 = vst [vmem:[%s1059_s26] sm:$0xff] (%p1455_p5), %v1072_v16 }
 0x427   : > { %v1276_v52 = vpop.f32.mrb[2].mxu1 }
 0x428   : > { %v942_v53 = vmul.f32 0.088388346, %v1276_v52  ;;  %v932_v51 = vpop.f32.mrb[3].mxu1 }
 0x429   : > { %v941_v54 = vmul.f32 0.088388346, %v932_v51 }
 0x42a   : > { %v944_v10 = vsel %vm421_vm2, %v942_v53, -1e+30 }
 0x42b   : > { %v948_v55 = vsel %vm639_vm3, %v944_v10, -inf  ;;  %v943_v56 = vsel %vm420_vm4, %v941_v54, -1e+30 }
 0x42c   : > { %949 = vmax.xlane.f32.xlu0 %v948_v55  ;;  %v945_v57 = vsel %vm639_vm3, %v943_v56, -inf }
 0x42d   : > { %946 = vmax.xlane.f32.xlu1 %v945_v57 }
 0x4b9   : > { %v950_v58 = vpop.xlane.xlu0 %949 }
 0x4ba   : > { %v952_v59 = vsub.f32 %v944_v10, %v950_v58  ;;  %v947_v60 = vpop.xlane.xlu1 %946 }
 0x4bb   : > { %v951_v61 = vsub.f32 %v943_v56, %v947_v60 }
 0x4bc   : > { %v955_v62 = vmul.f32 1.442695, %v952_v59 }
 0x4bd   : > { %v953_v63 = vmul.f32 1.442695, %v951_v61 }
 0x4be   : > { %1358 = vpow2.f32 %v955_v62 }
 0x4bf   : > { %1360 = vpow2.f32 %v953_v63 }
 0x4c8   : > { %v1359_v0 = vpop.eup %1358 }
 0x4c9   : > { %v1361_v2 = vpop.eup %1360  ;;  %v960_v4 = vsel %vm639_vm3, %v1359_v0, 0.0 }
 0x4ca   : > { %961 = vadd.xlane.f32.xlu1 %v960_v4  ;;  %v957_v1 = vsel %vm639_vm3, %v1361_v2, 0.0 }
 0x4cb   : > { %958 = vadd.xlane.f32.xlu0 %v957_v1 }
 0x557   : > { %v962_v3 = vpop.xlane.xlu1 %961 }
 0x558   : > { %1362 = vrcp.f32 %v962_v3  ;;  %v959_v5 = vpop.xlane.xlu0 %958 }
 0x559   : > { %1364 = vrcp.f32 %v959_v5 }
 0x562   : > { %v1363_v6 = vpop.eup %1362 }
 0x563   : > { %v1365_v7 = vpop.eup %1364  ;;  %v966_v12 = vmul.f32 %v1363_v6, %v1359_v0 }
 0x564   : > { %v965_v11 = vmul.f32 %v1365_v7, %v1361_v2 }
 0x566   : > { %1281 = vmatprep.mubr.msk.f32.mxu0 %vm639_vm3, %v965_v11 }
 0x567   : > { %1282 = vmatmul.mubr.msk.f32.vlgmr.msra.gmra.mrb[2].mxu0 %vm639_vm3, %v966_v12 }
 0x636   : > { %1056 = sbr.rel (!%p1455_p5) target bundleno = 1605 (0x645), region = 143 }
 0x63a   : > { %v1283_v14 = vpop.f32.mrb[2].mxu0 }
 0x63b   : > { %1049 = vst [vmem:[%s1642_s28 + $0x18] sm:$0xff] %v1283_v14  ;;  %v1039_v15 = vpop.f32.mrb[3].mxu0 }
 0x63c   : > { %1048 = vst [vmem:[%s1642_s28 + $0x8] sm:$0xff] %v1039_v15 }
 0x642   : > { %v1078_v19 = vld [vmem:[%s1642_s28 + $0x18] sm:$0xff] }
 0x643   : > { %v1074_v17 = vld [vmem:[%s1642_s28 + $0x8] sm:$0xff]  ;;  %1079 = vst [vmem:[%s1059_s26 + $0x28] sm:$0xff] %v1078_v19 }
 0x644   : > { %1075 = vst [vmem:[%s1059_s26 + $0x8] sm:$0xff] %v1074_v17 }
 0x645 PF: > { %p12_p10 = scmp.ge.s32.totalorder %s1438_s22, 4   ;;  %s1691_s18 = smov %s1384_s19 }
 0x646   : > { %s1692_s19 = smov %s1449_s25  ;;  %s1693_s20 = smov %s1438_s22 }
 0x647   :  { %14 = sbr.rel (!%p12_p10) target bundleno = 2 (0x2), region = 213 }

// kernel: _lambda_.5
= control target key start
LH: loop header
LB: loop body
LE: loop exit
PB: predicated region body
PF: predicated region fallthrough
CT: control target
= control target key end

     0   :  { %8 = vsyncpa [#allocation3], 0  ;;  %s1404_s0 = inlined_call_operand.hbm [shape: f32[16,256], index: 0, kind: input, shape index: {}]   ;;  %s1405_s1 = inlined_call_operand.vmem [shape: f32[1,256], index: 1, kind: input, shape index: {}]   ;;  %s1406_s2 = inlined_call_operand.hbm [shape: f32[256,1024], index: 2, kind: input, shape index: {}]   ;;  %s1407_s3 = inlined_call_operand.vmem [shape: f32[16,1024], index: 3, kind: output, shape index: {}]  }
   0x1   :  { %9 = vsyncpa [#allocation5], 0 }
   0x2   :  { %11 = vsyncpa [#allocation5 + $0x1], 0  ;;  %s1052_s12 = smov 0   ;;  %s1054_s13 = smov 0  }
   0x3   :  { %s1056_s14 = smov 0   ;;  %s1058_s15 = smov 0  }
   0x4   :  { %s1060_s16 = smov 0   ;;  %s1062_s17 = smov 0  }
   0x5 LB: > { %s689_s18 = sadd.s32 4294967295, %s1023_s17   ;;  %p90_p0 = scmp.ne.s32.totalorder %s1011_s14, %s1007_s13  ;;  %s1023_s17 = sphi %s1062_s17, %s17_s17   ;;  %s1019_s16 = sphi %s1060_s16, %s1430_s16   ;;  %s1015_s15 = sphi %s1058_s15, %s1429_s15   ;;  %s1011_s14 = sphi %s1056_s14, %s1428_s14   ;;  %s1007_s13 = sphi %s1054_s13, %s1427_s13   ;;  %s1003_s12 = sphi %s1052_s12, %s1426_s12  }
   0x6   : > { %p91_p1 = scmp.eq.s32.totalorder %s1023_s17, 0  ;;  %p96_p2 = scmp.ne.s32.totalorder %s1007_s13, %s1003_s12 }
   0x7   : > { %p1085_p3 = scmp.eq.s32.totalorder %s689_s18, 0  ;;  %p122_p4 = scmp.eq.s32.totalorder %s689_s18, 1 }
   0x8   : > { %p92_p5 = por %p91_p1, %p90_p0  ;;  %p691_p6 = scmp.ge.s32.totalorder %s1023_s17, 1 }
   0x9   : > { %s1413_s19 = scalar_select %p1085_p3, 1, 0 }
   0xa   : > { %p1092_p7 = por %p1085_p3, %p96_p2  ;;  %p1096_p8 = por %p122_p4, %p90_p0 }
   0xb   : > { %p135_p9 = scmp.lt.s32.totalorder %s1023_s17, 3  ;;  %s1025_s23 = smov [#allocation2]  }
   0xc   : > { %s1414_s20 = scalar_select %p1092_p7, 1, 0 }
   0xd   : > { %s1415_s21 = scalar_select %p1096_p8, 1, 0 }
   0xe   : > { %p1101_p10 = pnand %p691_p6, %p135_p9  ;;  %s151_s24 = sshll.u32 %s1025_s23, 4  ;;  %s1105_s24 = int_to_ptr.vmem [resolvable:$true] %s151_s24 }
   0xf   : > { %p851_p12 = scmp.lt.s32.totalorder %s1023_s17, 2  ;;  %s26_s27 = sadd.s32 1, %s1019_s16 }
  0x10   : > { %s1416_s22 = scalar_select %p1101_p10, 1, 0 }
  0x11   : > { %p842_p11 = pneg %p1101_p10  ;;  %p1116_p0 = pnand %p851_p12, %p92_p5 }
  0x12   : > { %p1121_p1 = scmp.ge.s32.totalorder %s26_s27, 2  ;;  %s911_s4 = scalar_lea.hbm %s1404_s0, 512 }
  0x13   : > { %p1112_p13 = pnand %p842_p11, %p1085_p3  ;;  %p912_p2 = scmp.ne.s32.totalorder %s1404_s0, %s911_s4 }
  0x14   : > { %s1418_s26 = scalar_select %p1116_p0, 1, 0 }
  0x15   : > { %s1419_s28 = scalar_select %p1121_p1, 1, 0 }
  0x16   : > { %p913_p4 = pneg %p1112_p13  ;;  %p918_p9 = scmp.lt.u32.totalorder %s911_s4, %s1404_s0 }
  0x18   : > { %p914_p6 = pnand %p913_p4, %p912_p2 }
  0x1a   : > { %p915_p5 = pneg %p914_p6 }
  0x1c   : > { %p920_p11 = pnand %p918_p9, %p915_p5 }
  0x1e   : > { %923 = shalt.err (!%p920_p11)
}
  0x1f   : > { %s924_s9 = scalar_lea.vmem %s1105_s24, 512  ;;  %p932_p3 = scmp.lt.s32.totalorder %s1105_s24, %s1105_s24 }
  0x20   : > { %p925_p12 = scmp.ne.s32.totalorder %s1105_s24, %s924_s9  ;;  %p933_p10 = scmp.lt.s32.totalorder %s924_s9, %s924_s9 }
  0x22   : > { %p927_p8 = pnand %p925_p12, %p913_p4  ;;  %p934_p0 = por %p933_p10, %p932_p3 }
  0x24   : > { %p928_p7 = pneg %p927_p8 }
  0x26   : > { %p935_p1 = pnand %p934_p0, %p928_p7 }
  0x28   : > { %938 = shalt.err (!%p935_p1)
}
  0x29   : > { %s1026_s10 = smov 256   ;;  %s1027_s11 = smov 16  }
  0x2a   : > { %845 = dma.hbm_to_vmem [thread:$0]  (!%p1112_p13), %s1404_s0, 512, %s1105_s24, [#allocation3], %s1026_s10, %s1026_s10, %s1027_s11  }
  0x2b   : > { %s83_s23 = sadd.s32 1, %s1011_s14  ;;  %p1420_p3 = scmp.ne.s32.totalorder %s1419_s28, 0 }
  0x2c   : > { %s168_s29 = sand.u32 1, %s1011_s14   ;;  %s706_s30 = sshll.u32 %s1019_s16, 9 }
  0x2d   : > { %s1432_s27 = smov (%p1420_p3, %s26_s27), 0  ;;  %s694_s5 = sshll.u32 %s168_s29, 10 }
  0x2e   : > { %s80_s4 = ssub.s32 %s1019_s16, %s1432_s27  ;;  %s1158_s25 = scalar_lea.hbm %s1406_s2, %s706_s30 }
  0x2f   : > { %p81_p7 = scmp.eq.s32.totalorder %s80_s4, 0  ;;  %s172_s28 = scalar_lea.vmem [#allocation4], %s694_s5 }
  0x30   : > { %s179_s8 = sshll.u32 %s172_s28, 4  ;;  %s1165_s9 = scalar_lea.sflag [#allocation5], %s168_s29  ;;  %s1163_s8 = int_to_ptr.vmem [resolvable:$true] %s179_s8 }
  0x31   : > { %s1161_s24 = scalar_select %p81_p7, %s1011_s14, %s83_s23  }
  0x32   : > { %s939_s10 = scalar_lea.hbm %s1158_s25, 16384  ;;  %p1421_p10 = scmp.ne.s32.totalorder %s1418_s26, 0 }
  0x33   : > { %p940_p8 = scmp.ne.s32.totalorder %s1158_s25, %s939_s10  ;;  %s944_s18 = scalar_lea.hbm %s1406_s2, 32768 }
  0x34   : > { %p941_p13 = pneg %p1421_p10  ;;  %p945_p2 = scmp.lt.u32.totalorder %s1158_s25, %s1406_s2 }
  0x35   : > { %p946_p4 = scmp.lt.u32.totalorder %s944_s18, %s939_s10  ;;  %p948_p5 = scmp.lt.u32.totalorder %s939_s10, %s1158_s25 }
  0x36   : > { %p942_p0 = pnand %p941_p13, %p940_p8 }
  0x37   : > { %p947_p6 = por %p946_p4, %p945_p2 }
  0x38   : > { %p943_p1 = pneg %p942_p0 }
  0x39   : > { %p949_p9 = por %p948_p5, %p947_p6 }
  0x3b   : > { %p950_p11 = pnand %p949_p9, %p943_p1 }
  0x3d   : > { %953 = shalt.err (!%p950_p11)
}
  0x3e   : > { %s954_s29 = scalar_lea.vmem %s1163_s8, 16384  ;;  %s1028_s4 = smov [#allocation4]  }
  0x3f   : > { %p955_p12 = scmp.ne.s32.totalorder %s1163_s8, %s954_s29  ;;  %s959_s5 = sshll.u32 %s1028_s4, 4  ;;  %s960_s5 = int_to_ptr.vmem [resolvable:$false] %s959_s5 }
  0x40   : > { %s961_s6 = scalar_lea.vmem %s960_s5, 32768  ;;  %p962_p8 = scmp.lt.s32.totalorder %s1163_s8, %s960_s5 }
  0x41   : > { %p957_p3 = pnand %p955_p12, %p941_p13  ;;  %p963_p0 = scmp.lt.s32.totalorder %s961_s6, %s954_s29 }
  0x43   : > { %p958_p7 = pneg %p957_p3  ;;  %p964_p2 = por %p963_p0, %p962_p8 }
  0x45   : > { %p965_p4 = pnand %p964_p2, %p958_p7 }
  0x47   : > { %968 = shalt.err (!%p965_p4)
}
  0x48   : > { %s1029_s7 = smov 1024   ;;  %s1030_s28 = smov 512  }
  0x49   : > { %s1031_s10 = smov 32   ;;  %p1422_p13 = scmp.ne.s32.totalorder %s1416_s22, 0 }
  0x4a   : > { %849 = dma.hbm_to_vmem [thread:$0]  (!%p1421_p10), %s1158_s25, 16384, %s1163_s8, %s1165_s9, %s1029_s7, %s1030_s28, %s1031_s10  }
  0x4b   : > { %191 = sbr.rel (%p1422_p13) target bundleno = 480 (0x1e0), region = 32  ;;  %p1423_p1 = scmp.ne.s32.totalorder (!%p1422_p13), %s1413_s19, 0 }
  0x52   : > { %994 = dma.done.wait (%p1423_p1), [#allocation3], 512  }
  0x53   : > { %996 = vsyncadd (%p1423_p1), [#allocation3], 4294966784  ;;  %s1200_s11 = sand.u32 1, %s1007_s13   ;;  %p1424_p10 = scmp.ne.s32.totalorder %s1414_s20, 0 }
  0x54   : > { %s699_s12 = sshll.u32 %s1200_s11, 10  ;;  %s198_s18 = scalar_lea.sflag [#allocation5], %s1200_s11 }
  0x55   : > { %s1204_s23 = scalar_lea.vmem [#allocation4], %s699_s12 }
  0x56   : > { %998 = dma.done.wait (%p1424_p10), %s198_s18, 16384  }
  0x57   : > { %1000 = vsyncadd (%p1424_p10), %s198_s18, 4294950912  ;;  %v1210_v0 = vld [vmem:[#allocation2] sm:$0xff]  ;;  %v1212_v1 = vld [vmem:[#allocation2 + $0x8] sm:$0xff]  ;;  %s700_s22 = sshll.u32 %s1200_s11, 6  ;;  %p1425_p6 = scmp.ne.s32.totalorder %s1415_s21, 0 }
  0x58   : > { %v1214_v2 = vld [vmem:[#allocation2 + $0x10] sm:$0xff]  ;;  %v231_v3 = vmul.f32 %v1210_v0, %v1210_v0  ;;  %v232_v4 = vmul.f32 %v1212_v1, %v1212_v1  ;;  %v1220_v5 = vld [vmem:[#allocation2 + $0x18] sm:$0xff]  ;;  %v269_v7 = vld [vmem:[%s1204_s23 + $0x8] sm:$0xff]  ;;  %s1362_s26 = scalar_lea.vmem [#allocation6], %s700_s22  ;;  %s707_s25 = sshll.u32 (%p1425_p6), %s1015_s15, 5 }
  0x59   : > { %v233_v6 = vmul.f32 %v1214_v2, %v1214_v2  ;;  %v273_v8 = vld [vmem:[%s1204_s23 + $0x28] sm:$0xff]  ;;  %v234_v9 = vmul.f32 %v1220_v5, %v1220_v5  ;;  %v271_v11 = vld [vmem:[%s1204_s23 + $0x18] sm:$0xff]  ;;  %v268_v13 = vld [vmem:[%s1204_s23] sm:$0xff]  ;;  %s570_s30 = scalar_lea.vmem (%p1425_p6), %s1407_s3, %s707_s25 }
  0x5a   : > { %v708_v10 = vpack.c.bf16 %v273_v8, %v269_v7  ;;  %v275_v12 = vld [vmem:[%s1204_s23 + $0x38] sm:$0xff]  ;;  %v235_v14 = vadd.f32 %v232_v4, %v231_v3  ;;  %v272_v16 = vld [vmem:[%s1204_s23 + $0x20] sm:$0xff]  ;;  %v270_v17 = vld [vmem:[%s1204_s23 + $0x10] sm:$0xff] }
  0x5b   : > { %v772_v15 = vpack.c.bf16 %v275_v12, %v271_v11  ;;  %v274_v18 = vld [vmem:[%s1204_s23 + $0x30] sm:$0xff]  ;;  %v710_v19 = vpack.c.bf16 %v272_v16, %v268_v13  ;;  %v277_v21 = vld [vmem:[%s1204_s23 + $0x48] sm:$0xff]  ;;  %v279_v23 = vld [vmem:[%s1204_s23 + $0x58] sm:$0xff]  ;;  %v238_v24 = vadd.f32 %v234_v9, %v233_v6 }
  0x5c   : > { %709 = vmatprep.subr.bf16.mxu0 %v708_v10  ;;  %v774_v20 = vpack.c.bf16 %v274_v18, %v270_v17  ;;  %v281_v22 = vld [vmem:[%s1204_s23 + $0x68] sm:$0xff]  ;;  %236 = vadd.xlane.f32.xlu0 %v235_v14  ;;  %v283_v26 = vld [vmem:[%s1204_s23 + $0x78] sm:$0xff]  ;;  %v276_v27 = vld [vmem:[%s1204_s23 + $0x40] sm:$0xff] }
  0x5d   : > { %773 = vmatprep.subr.bf16.mxu1 %v772_v15  ;;  %v712_v25 = vpack.c.bf16 %v281_v22, %v277_v21  ;;  %v280_v28 = vld [vmem:[%s1204_s23 + $0x60] sm:$0xff]  ;;  %711 = vmatpush1.bf16.msra.mxu0 %v710_v19  ;;  %v776_v29 = vpack.c.bf16 %v283_v26, %v279_v23  ;;  %v278_v31 = vld [vmem:[%s1204_s23 + $0x50] sm:$0xff]  ;;  %v285_v33 = vld [vmem:[%s1204_s23 + $0x88] sm:$0xff] }
  0x5e   : > { %775 = vmatpush1.bf16.msra.mxu1 %v774_v20  ;;  %v714_v30 = vpack.c.bf16 %v280_v28, %v276_v27  ;;  %v282_v32 = vld [vmem:[%s1204_s23 + $0x70] sm:$0xff]  ;;  %v289_v35 = vld [vmem:[%s1204_s23 + $0xa8] sm:$0xff]  ;;  %v287_v36 = vld [vmem:[%s1204_s23 + $0x98] sm:$0xff] }
  0x5f   : > { %713 = vmatprep.subr.bf16.mxu0 %v712_v25  ;;  %v778_v34 = vpack.c.bf16 %v282_v32, %v278_v31  ;;  %v291_v37 = vld [vmem:[%s1204_s23 + $0xb8] sm:$0xff]  ;;  %777 = vmatprep.subr.bf16.mxu1 %v776_v29  ;;  %v716_v38 = vpack.c.bf16 %v289_v35, %v285_v33  ;;  %v284_v40 = vld [vmem:[%s1204_s23 + $0x80] sm:$0xff]  ;;  %v286_v42 = vld [vmem:[%s1204_s23 + $0x90] sm:$0xff] }
  0x60   : > { %v780_v39 = vpack.c.bf16 %v291_v37, %v287_v36  ;;  %v288_v41 = vld [vmem:[%s1204_s23 + $0xa0] sm:$0xff]  ;;  %239 = vadd.xlane.f32.xlu0 %v238_v24  ;;  %v290_v43 = vld [vmem:[%s1204_s23 + $0xb0] sm:$0xff]  ;;  %v293_v44 = vld [vmem:[%s1204_s23 + $0xc8] sm:$0xff] }
  0x61   : > { %v297_v45 = vld [vmem:[%s1204_s23 + $0xe8] sm:$0xff]  ;;  %715 = vmatpush1.bf16.msra.mxu0 %v714_v30  ;;  %v718_v46 = vpack.c.bf16 %v288_v41, %v284_v40  ;;  %v782_v47 = vpack.c.bf16 %v290_v43, %v286_v42  ;;  %v295_v48 = vld [vmem:[%s1204_s23 + $0xd8] sm:$0xff]  ;;  %v292_v50 = vld [vmem:[%s1204_s23 + $0xc0] sm:$0xff] }
  0x62   : > { %779 = vmatpush1.bf16.msra.mxu1 %v778_v34  ;;  %v299_v49 = vld [vmem:[%s1204_s23 + $0xf8] sm:$0xff]  ;;  %717 = vmatprep.subr.bf16.mxu0 %v716_v38  ;;  %v720_v51 = vpack.c.bf16 %v297_v45, %v293_v44  ;;  %v296_v53 = vld [vmem:[%s1204_s23 + $0xe0] sm:$0xff]  ;;  %v294_v54 = vld [vmem:[%s1204_s23 + $0xd0] sm:$0xff] }
  0x63   : > { %781 = vmatprep.subr.bf16.mxu1 %v780_v39  ;;  %v784_v52 = vpack.c.bf16 %v299_v49, %v295_v48  ;;  %v298_v55 = vld [vmem:[%s1204_s23 + $0xf0] sm:$0xff]  ;;  %v301_v56 = vld [vmem:[%s1204_s23 + $0x108] sm:$0xff]  ;;  %v303_v58 = vld [vmem:[%s1204_s23 + $0x118] sm:$0xff]  ;;  %v722_v60 = vpack.c.bf16 %v296_v53, %v292_v50 }
  0x64   : > { %v305_v57 = vld [vmem:[%s1204_s23 + $0x128] sm:$0xff]  ;;  %v307_v59 = vld [vmem:[%s1204_s23 + $0x138] sm:$0xff]  ;;  %v786_v61 = vpack.c.bf16 %v298_v55, %v294_v54  ;;  %v300_v62 = vld [vmem:[%s1204_s23 + $0x100] sm:$0xff] }
  0x65   : > { %719 = vmatpush1.bf16.msra.mxu0 %v718_v46  ;;  %v304_v63 = vld [vmem:[%s1204_s23 + $0x120] sm:$0xff]  ;;  %v724_v3 = vpack.c.bf16 %v305_v57, %v301_v56  ;;  %v788_v4 = vpack.c.bf16 %v307_v59, %v303_v58  ;;  %v302_v6 = vld [vmem:[%s1204_s23 + $0x110] sm:$0xff]  ;;  %v309_v8 = vld [vmem:[%s1204_s23 + $0x148] sm:$0xff] }
  0x66   : > { %783 = vmatpush1.bf16.msra.mxu1 %v782_v47  ;;  %721 = vmatprep.subr.bf16.mxu0 %v720_v51  ;;  %v306_v7 = vld [vmem:[%s1204_s23 + $0x130] sm:$0xff]  ;;  %v313_v9 = vld [vmem:[%s1204_s23 + $0x168] sm:$0xff]  ;;  %v311_v10 = vld [vmem:[%s1204_s23 + $0x158] sm:$0xff]  ;;  %v726_v12 = vpack.c.bf16 %v304_v63, %v300_v62 }
  0x67   : > { %785 = vmatprep.subr.bf16.mxu1 %v784_v52  ;;  %v315_v11 = vld [vmem:[%s1204_s23 + $0x178] sm:$0xff]  ;;  %v790_v13 = vpack.c.bf16 %v306_v7, %v302_v6  ;;  %v308_v14 = vld [vmem:[%s1204_s23 + $0x140] sm:$0xff]  ;;  %v728_v16 = vpack.c.bf16 %v313_v9, %v309_v8  ;;  %v310_v18 = vld [vmem:[%s1204_s23 + $0x150] sm:$0xff] }
  0x68   : > { %v312_v15 = vld [vmem:[%s1204_s23 + $0x160] sm:$0xff]  ;;  %v792_v17 = vpack.c.bf16 %v315_v11, %v311_v10  ;;  %v314_v19 = vld [vmem:[%s1204_s23 + $0x170] sm:$0xff]  ;;  %v317_v20 = vld [vmem:[%s1204_s23 + $0x188] sm:$0xff] }
  0x69   : > { %723 = vmatpush1.bf16.msra.mxu0 %v722_v60  ;;  %v321_v21 = vld [vmem:[%s1204_s23 + $0x1a8] sm:$0xff]  ;;  %v319_v22 = vld [vmem:[%s1204_s23 + $0x198] sm:$0xff]  ;;  %v730_v24 = vpack.c.bf16 %v312_v15, %v308_v14  ;;  %v794_v25 = vpack.c.bf16 %v314_v19, %v310_v18  ;;  %v316_v26 = vld [vmem:[%s1204_s23 + $0x180] sm:$0xff] }
  0x6a   : > { %787 = vmatpush1.bf16.msra.mxu1 %v786_v61  ;;  %725 = vmatprep.subr.bf16.mxu0 %v724_v3  ;;  %v323_v23 = vld [vmem:[%s1204_s23 + $0x1b8] sm:$0xff]  ;;  %v320_v27 = vld [vmem:[%s1204_s23 + $0x1a0] sm:$0xff]  ;;  %v732_v28 = vpack.c.bf16 %v321_v21, %v317_v20  ;;  %v318_v30 = vld [vmem:[%s1204_s23 + $0x190] sm:$0xff] }
  0x6b   : > { %789 = vmatprep.subr.bf16.mxu1 %v788_v4  ;;  %v796_v29 = vpack.c.bf16 %v323_v23, %v319_v22  ;;  %v322_v31 = vld [vmem:[%s1204_s23 + $0x1b0] sm:$0xff]  ;;  %v325_v32 = vld [vmem:[%s1204_s23 + $0x1c8] sm:$0xff]  ;;  %v327_v34 = vld [vmem:[%s1204_s23 + $0x1d8] sm:$0xff]  ;;  %v734_v36 = vpack.c.bf16 %v320_v27, %v316_v26 }
  0x6c   : > { %v329_v33 = vld [vmem:[%s1204_s23 + $0x1e8] sm:$0xff]  ;;  %v331_v35 = vld [vmem:[%s1204_s23 + $0x1f8] sm:$0xff]  ;;  %v798_v37 = vpack.c.bf16 %v322_v31, %v318_v30  ;;  %v324_v38 = vld [vmem:[%s1204_s23 + $0x1c0] sm:$0xff] }
  0x6d   : > { %727 = vmatpush1.bf16.msra.mxu0 %v726_v12  ;;  %v328_v39 = vld [vmem:[%s1204_s23 + $0x1e0] sm:$0xff]  ;;  %v736_v40 = vpack.c.bf16 %v329_v33, %v325_v32  ;;  %v800_v41 = vpack.c.bf16 %v331_v35, %v327_v34  ;;  %v326_v42 = vld [vmem:[%s1204_s23 + $0x1d0] sm:$0xff]  ;;  %v333_v44 = vld [vmem:[%s1204_s23 + $0x208] sm:$0xff] }
  0x6e   : > { %791 = vmatpush1.bf16.msra.mxu1 %v790_v13  ;;  %729 = vmatprep.subr.bf16.mxu0 %v728_v16  ;;  %v330_v43 = vld [vmem:[%s1204_s23 + $0x1f0] sm:$0xff]  ;;  %v337_v45 = vld [vmem:[%s1204_s23 + $0x228] sm:$0xff]  ;;  %v335_v46 = vld [vmem:[%s1204_s23 + $0x218] sm:$0xff]  ;;  %v738_v48 = vpack.c.bf16 %v328_v39, %v324_v38 }
  0x6f   : > { %793 = vmatprep.subr.bf16.mxu1 %v792_v17  ;;  %v339_v47 = vld [vmem:[%s1204_s23 + $0x238] sm:$0xff]  ;;  %v802_v49 = vpack.c.bf16 %v330_v43, %v326_v42  ;;  %v332_v50 = vld [vmem:[%s1204_s23 + $0x200] sm:$0xff]  ;;  %v740_v52 = vpack.c.bf16 %v337_v45, %v333_v44  ;;  %v334_v54 = vld [vmem:[%s1204_s23 + $0x210] sm:$0xff] }
  0x70   : > { %v336_v51 = vld [vmem:[%s1204_s23 + $0x220] sm:$0xff]  ;;  %v804_v53 = vpack.c.bf16 %v339_v47, %v335_v46  ;;  %v338_v55 = vld [vmem:[%s1204_s23 + $0x230] sm:$0xff]  ;;  %v341_v56 = vld [vmem:[%s1204_s23 + $0x248] sm:$0xff] }
  0x71   : > { %731 = vmatpush1.bf16.msra.mxu0 %v730_v24  ;;  %v345_v57 = vld [vmem:[%s1204_s23 + $0x268] sm:$0xff]  ;;  %v343_v58 = vld [vmem:[%s1204_s23 + $0x258] sm:$0xff]  ;;  %v742_v60 = vpack.c.bf16 %v336_v51, %v332_v50  ;;  %v806_v61 = vpack.c.bf16 %v338_v55, %v334_v54  ;;  %v340_v62 = vld [vmem:[%s1204_s23 + $0x240] sm:$0xff] }
  0x72   : > { %795 = vmatpush1.bf16.msra.mxu1 %v794_v25  ;;  %733 = vmatprep.subr.bf16.mxu0 %v732_v28  ;;  %v347_v59 = vld [vmem:[%s1204_s23 + $0x278] sm:$0xff]  ;;  %v344_v63 = vld [vmem:[%s1204_s23 + $0x260] sm:$0xff]  ;;  %v744_v3 = vpack.c.bf16 %v345_v57, %v341_v56  ;;  %v342_v6 = vld [vmem:[%s1204_s23 + $0x250] sm:$0xff] }
  0x73   : > { %797 = vmatprep.subr.bf16.mxu1 %v796_v29  ;;  %v808_v4 = vpack.c.bf16 %v347_v59, %v343_v58  ;;  %v346_v7 = vld [vmem:[%s1204_s23 + $0x270] sm:$0xff]  ;;  %v349_v8 = vld [vmem:[%s1204_s23 + $0x288] sm:$0xff]  ;;  %v351_v10 = vld [vmem:[%s1204_s23 + $0x298] sm:$0xff]  ;;  %v746_v12 = vpack.c.bf16 %v344_v63, %v340_v62 }
  0x74   : > { %v353_v9 = vld [vmem:[%s1204_s23 + $0x2a8] sm:$0xff]  ;;  %v355_v11 = vld [vmem:[%s1204_s23 + $0x2b8] sm:$0xff]  ;;  %v810_v13 = vpack.c.bf16 %v346_v7, %v342_v6  ;;  %v348_v14 = vld [vmem:[%s1204_s23 + $0x280] sm:$0xff] }
  0x75   : > { %735 = vmatpush1.bf16.msra.mxu0 %v734_v36  ;;  %v352_v15 = vld [vmem:[%s1204_s23 + $0x2a0] sm:$0xff]  ;;  %v748_v16 = vpack.c.bf16 %v353_v9, %v349_v8  ;;  %v812_v17 = vpack.c.bf16 %v355_v11, %v351_v10  ;;  %v350_v18 = vld [vmem:[%s1204_s23 + $0x290] sm:$0xff]  ;;  %v357_v20 = vld [vmem:[%s1204_s23 + $0x2c8] sm:$0xff] }
  0x76   : > { %799 = vmatpush1.bf16.msra.mxu1 %v798_v37  ;;  %737 = vmatprep.subr.bf16.mxu0 %v736_v40  ;;  %v354_v19 = vld [vmem:[%s1204_s23 + $0x2b0] sm:$0xff]  ;;  %v361_v21 = vld [vmem:[%s1204_s23 + $0x2e8] sm:$0xff]  ;;  %v359_v22 = vld [vmem:[%s1204_s23 + $0x2d8] sm:$0xff]  ;;  %v750_v24 = vpack.c.bf16 %v352_v15, %v348_v14 }
  0x77   : > { %801 = vmatprep.subr.bf16.mxu1 %v800_v41  ;;  %v363_v23 = vld [vmem:[%s1204_s23 + $0x2f8] sm:$0xff]  ;;  %v814_v25 = vpack.c.bf16 %v354_v19, %v350_v18  ;;  %v356_v26 = vld [vmem:[%s1204_s23 + $0x2c0] sm:$0xff]  ;;  %v752_v28 = vpack.c.bf16 %v361_v21, %v357_v20  ;;  %v358_v30 = vld [vmem:[%s1204_s23 + $0x2d0] sm:$0xff] }
  0x78   : > { %v360_v27 = vld [vmem:[%s1204_s23 + $0x2e0] sm:$0xff]  ;;  %v816_v29 = vpack.c.bf16 %v363_v23, %v359_v22  ;;  %v362_v31 = vld [vmem:[%s1204_s23 + $0x2f0] sm:$0xff]  ;;  %v365_v32 = vld [vmem:[%s1204_s23 + $0x308] sm:$0xff] }
  0x79   : > { %739 = vmatpush1.bf16.msra.mxu0 %v738_v48  ;;  %v369_v33 = vld [vmem:[%s1204_s23 + $0x328] sm:$0xff]  ;;  %v367_v34 = vld [vmem:[%s1204_s23 + $0x318] sm:$0xff]  ;;  %v754_v36 = vpack.c.bf16 %v360_v27, %v356_v26  ;;  %v818_v37 = vpack.c.bf16 %v362_v31, %v358_v30  ;;  %v364_v38 = vld [vmem:[%s1204_s23 + $0x300] sm:$0xff] }
  0x7a   : > { %803 = vmatpush1.bf16.msra.mxu1 %v802_v49  ;;  %741 = vmatprep.subr.bf16.mxu0 %v740_v52  ;;  %v371_v35 = vld [vmem:[%s1204_s23 + $0x338] sm:$0xff]  ;;  %v368_v39 = vld [vmem:[%s1204_s23 + $0x320] sm:$0xff]  ;;  %v756_v40 = vpack.c.bf16 %v369_v33, %v365_v32  ;;  %v366_v42 = vld [vmem:[%s1204_s23 + $0x310] sm:$0xff] }
  0x7b   : > { %805 = vmatprep.subr.bf16.mxu1 %v804_v53  ;;  %v820_v41 = vpack.c.bf16 %v371_v35, %v367_v34  ;;  %v370_v43 = vld [vmem:[%s1204_s23 + $0x330] sm:$0xff]  ;;  %v373_v44 = vld [vmem:[%s1204_s23 + $0x348] sm:$0xff]  ;;  %v375_v46 = vld [vmem:[%s1204_s23 + $0x358] sm:$0xff]  ;;  %v758_v48 = vpack.c.bf16 %v368_v39, %v364_v38 }
  0x7c   : > { %v377_v45 = vld [vmem:[%s1204_s23 + $0x368] sm:$0xff]  ;;  %v379_v47 = vld [vmem:[%s1204_s23 + $0x378] sm:$0xff]  ;;  %v822_v49 = vpack.c.bf16 %v370_v43, %v366_v42  ;;  %v372_v50 = vld [vmem:[%s1204_s23 + $0x340] sm:$0xff] }
  0x7d   : > { %743 = vmatpush1.bf16.msra.mxu0 %v742_v60  ;;  %v376_v51 = vld [vmem:[%s1204_s23 + $0x360] sm:$0xff]  ;;  %v760_v52 = vpack.c.bf16 %v377_v45, %v373_v44  ;;  %v824_v53 = vpack.c.bf16 %v379_v47, %v375_v46  ;;  %v374_v54 = vld [vmem:[%s1204_s23 + $0x350] sm:$0xff]  ;;  %v381_v56 = vld [vmem:[%s1204_s23 + $0x388] sm:$0xff] }
  0x7e   : > { %807 = vmatpush1.bf16.msra.mxu1 %v806_v61  ;;  %745 = vmatprep.subr.bf16.mxu0 %v744_v3  ;;  %v378_v55 = vld [vmem:[%s1204_s23 + $0x370] sm:$0xff]  ;;  %v385_v57 = vld [vmem:[%s1204_s23 + $0x3a8] sm:$0xff]  ;;  %v383_v58 = vld [vmem:[%s1204_s23 + $0x398] sm:$0xff]  ;;  %v762_v60 = vpack.c.bf16 %v376_v51, %v372_v50 }
  0x7f   : > { %809 = vmatprep.subr.bf16.mxu1 %v808_v4  ;;  %v387_v59 = vld [vmem:[%s1204_s23 + $0x3b8] sm:$0xff]  ;;  %v826_v61 = vpack.c.bf16 %v378_v55, %v374_v54  ;;  %v380_v62 = vld [vmem:[%s1204_s23 + $0x380] sm:$0xff]  ;;  %v764_v3 = vpack.c.bf16 %v385_v57, %v381_v56  ;;  %v382_v6 = vld [vmem:[%s1204_s23 + $0x390] sm:$0xff] }
  0x80   : > { %v384_v63 = vld [vmem:[%s1204_s23 + $0x3a0] sm:$0xff]  ;;  %v828_v4 = vpack.c.bf16 %v387_v59, %v383_v58  ;;  %v386_v7 = vld [vmem:[%s1204_s23 + $0x3b0] sm:$0xff]  ;;  %v389_v8 = vld [vmem:[%s1204_s23 + $0x3c8] sm:$0xff] }
  0x81   : > { %747 = vmatpush1.bf16.msra.mxu0 %v746_v12  ;;  %v393_v9 = vld [vmem:[%s1204_s23 + $0x3e8] sm:$0xff]  ;;  %v391_v10 = vld [vmem:[%s1204_s23 + $0x3d8] sm:$0xff]  ;;  %v766_v12 = vpack.c.bf16 %v384_v63, %v380_v62  ;;  %v388_v14 = vld [vmem:[%s1204_s23 + $0x3c0] sm:$0xff] }
  0x82   : > { %811 = vmatpush1.bf16.msra.mxu1 %v810_v13  ;;  %749 = vmatprep.subr.bf16.mxu0 %v748_v16  ;;  %v395_v11 = vld [vmem:[%s1204_s23 + $0x3f8] sm:$0xff]  ;;  %v830_v13 = vpack.c.bf16 %v386_v7, %v382_v6  ;;  %v768_v15 = vpack.c.bf16 %v393_v9, %v389_v8  ;;  %v390_v18 = vld [vmem:[%s1204_s23 + $0x3d0] sm:$0xff]  ;;  %v252_v32 = vld [vmem:[%s1405_s1] sm:$0x3] }
  0x83   : > { %813 = vmatprep.subr.bf16.mxu1 %v812_v17  ;;  %v832_v16 = vpack.c.bf16 %v395_v11, %v391_v10  ;;  %v392_v17 = vld [vmem:[%s1204_s23 + $0x3e0] sm:$0xff]  ;;  %v394_v19 = vld [vmem:[%s1204_s23 + $0x3f0] sm:$0xff] }
  0x84   : > { %v770_v20 = vpack.c.bf16 %v392_v17, %v388_v14  ;;  %v834_v21 = vpack.c.bf16 %v394_v19, %v390_v18 }
  0x85   : > { %751 = vmatpush1.bf16.msra.mxu0 %v750_v24  ;;  %v254_v24 = vlaneseq }
  0x86   : > { %815 = vmatpush1.bf16.msra.mxu1 %v814_v25  ;;  %753 = vmatprep.subr.bf16.mxu0 %v752_v28 }
  0x87   : > { %817 = vmatprep.subr.bf16.mxu1 %v816_v29  ;;  %v255_v28 = vshrl.u32 %v254_v24, 7 }
  0x89   : > { %755 = vmatpush1.bf16.msra.mxu0 %v754_v36  ;;  %v256_v30 = vsub.s32 0, %v255_v28  ;;  %v260_v31 = vsub.s32 1, %v255_v28 }
  0x8a   : > { %819 = vmatpush1.bf16.msra.mxu1 %v818_v37  ;;  %757 = vmatprep.subr.bf16.mxu0 %v756_v40 }
  0x8b   : > { %821 = vmatprep.subr.bf16.mxu1 %v820_v41  ;;  %v257_v33 = vrot.slane %v252_v32, %v256_v30  ;;  %v261_v34 = vrot.slane %v252_v32, %v260_v31 }
  0x8d   : > { %759 = vmatpush1.bf16.msra.mxu0 %v758_v48 }
  0x8e   : > { %823 = vmatpush1.bf16.msra.mxu1 %v822_v49  ;;  %761 = vmatprep.subr.bf16.mxu0 %v760_v52 }
  0x8f   : > { %825 = vmatprep.subr.bf16.mxu1 %v824_v53 }
  0x91   : > { %763 = vmatpush1.bf16.msra.mxu0 %v762_v60 }
  0x92   : > { %827 = vmatpush1.bf16.msra.mxu1 %v826_v61  ;;  %765 = vmatprep.subr.bf16.mxu0 %v764_v3 }
  0x93   : > { %829 = vmatprep.subr.bf16.mxu1 %v828_v4 }
  0x95   : > { %767 = vmatpush1.bf16.msra.mxu0 %v766_v12 }
  0x96   : > { %831 = vmatpush1.bf16.msra.mxu1 %v830_v13  ;;  %769 = vmatprep.subr.bf16.mxu0 %v768_v15 }
  0x97   : > { %833 = vmatprep.subr.bf16.mxu1 %v832_v16 }
  0x99   : > { %771 = vmatpush1.bf16.msra.mxu0 %v770_v20 }
  0x9a   : > { %835 = vmatpush1.bf16.msra.mxu1 %v834_v21 }
  0xe9   : > { %v237_v22 = vpop.xlane.xlu0 %236 }
  0xea   : > { %v242_v23 = vmul.f32 0.00390625, %v237_v22 }
  0xec   : > { %v244_v25 = vadd.f32 1e-06, %v242_v23 }
  0xed   : > { %v240_v26 = vpop.xlane.xlu0 %239 }
  0xee   : > { %907 = vrsqrt.f32 %v244_v25  ;;  %v243_v27 = vmul.f32 0.00390625, %v240_v26 }
  0xf0   : > { %v245_v29 = vadd.f32 1e-06, %v243_v27 }
  0xf2   : > { %909 = vrsqrt.f32 %v245_v29 }
  0xf8   : > { %v908_v35 = vpop.eup %907 }
  0xf9   : > { %v249_v36 = vmul.f32 %v908_v35, %v1212_v1  ;;  %v248_v37 = vmul.f32 %v908_v35, %v1210_v0 }
  0xfb   : > { %v265_v38 = vmul.f32 %v261_v34, %v249_v36  ;;  %v264_v39 = vmul.f32 %v257_v33, %v248_v37 }
  0xfc   : > { %v910_v40 = vpop.eup %909 }
  0xfd   : > { %460 = vmatprep.mubr.f32.mxu0 %v265_v38  ;;  %537 = vmatprep.mubr.f32.mxu1 %v265_v38  ;;  %v251_v41 = vmul.f32 %v910_v40, %v1220_v5  ;;  %v250_v42 = vmul.f32 %v910_v40, %v1214_v2 }
  0xfe   : > { %461 = vmatmul.mubr.f32.vlgmr.msra.gmra.mrb[0].mxu0 %v264_v39  ;;  %538 = vmatmul.mubr.f32.vlgmr.msra.gmra.mrb[0].mxu1 %v264_v39 }
  0xff   : > { %v267_v43 = vmul.f32 %v261_v34, %v251_v41  ;;  %v266_v44 = vmul.f32 %v257_v33, %v250_v42 }
 0x101   : > { %466 = vmatprep.mubr.f32.mxu0 %v267_v43  ;;  %543 = vmatprep.mubr.f32.mxu1 %v267_v43 }
 0x102   : > { %467 = vmatmul.mubr.f32.gmra.mrb[2].mxu0 %v266_v44  ;;  %544 = vmatmul.mubr.f32.gmra.mrb[2].mxu1 %v266_v44 }
 0x1d1   : > { %v462_v0 = vpop.f32.mrb[0].mxu0  ;;  %v539_v1 = vpop.f32.mrb[0].mxu1  ;;  %564 = sbr.rel (!%p1425_p6) target bundleno = 480 (0x1e0), region = 44 }
 0x1d2   : > { %550 = vst [vmem:[%s1362_s26] sm:$0xff] %v462_v0  ;;  %552 = vst [vmem:[%s1362_s26 + $0x10] sm:$0xff] %v539_v1  ;;  %v464_v2 = vpop.f32.mrb[1].mxu0  ;;  %v541_v5 = vpop.f32.mrb[1].mxu1 }
 0x1d3   : > { %551 = vst [vmem:[%s1362_s26 + $0x8] sm:$0xff] %v464_v2  ;;  %553 = vst [vmem:[%s1362_s26 + $0x18] sm:$0xff] %v541_v5 }
 0x1d5   : > { %v468_v45 = vpop.f32.mrb[2].mxu0  ;;  %v545_v46 = vpop.f32.mrb[2].mxu1 }
 0x1d6   : > { %554 = vst [vmem:[%s1362_s26 + $0x20] sm:$0xff] %v468_v45  ;;  %556 = vst [vmem:[%s1362_s26 + $0x30] sm:$0xff] %v545_v46  ;;  %v470_v47 = vpop.f32.mrb[3].mxu0  ;;  %v547_v48 = vpop.f32.mrb[3].mxu1 }
 0x1d7   : > { %555 = vst [vmem:[%s1362_s26 + $0x28] sm:$0xff] %v470_v47  ;;  %557 = vst [vmem:[%s1362_s26 + $0x38] sm:$0xff] %v547_v48 }
 0x1d9   : > { %v583_v49 = vld [vmem:[%s1362_s26] sm:$0xff]  ;;  %v587_v51 = vld [vmem:[%s1362_s26 + $0x10] sm:$0xff] }
 0x1da   : > { %v585_v50 = vld [vmem:[%s1362_s26 + $0x8] sm:$0xff]  ;;  %v589_v52 = vld [vmem:[%s1362_s26 + $0x18] sm:$0xff]  ;;  %584 = vst [vmem:[%s570_s30] sm:$0xff] %v583_v49  ;;  %588 = vst [vmem:[%s570_s30 + $0x10] sm:$0xff] %v587_v51 }
 0x1db   : > { %586 = vst [vmem:[%s570_s30 + $0x8] sm:$0xff] %v585_v50  ;;  %590 = vst [vmem:[%s570_s30 + $0x18] sm:$0xff] %v589_v52 }
 0x1dd   : > { %v591_v53 = vld [vmem:[%s1362_s26 + $0x20] sm:$0xff]  ;;  %v595_v55 = vld [vmem:[%s1362_s26 + $0x30] sm:$0xff] }
 0x1de   : > { %v593_v54 = vld [vmem:[%s1362_s26 + $0x28] sm:$0xff]  ;;  %592 = vst [vmem:[%s570_s30 + $0x40] sm:$0xff] %v591_v53  ;;  %v597_v56 = vld [vmem:[%s1362_s26 + $0x38] sm:$0xff]  ;;  %596 = vst [vmem:[%s570_s30 + $0x50] sm:$0xff] %v595_v55 }
 0x1df   : > { %594 = vst [vmem:[%s570_s30 + $0x48] sm:$0xff] %v593_v54  ;;  %598 = vst [vmem:[%s570_s30 + $0x58] sm:$0xff] %v597_v56 }
 0x1e0 PF: > { %s17_s17 = sadd.s32 1, %s1023_s17   ;;  %s1426_s12 = smov %s1007_s13 }
 0x1e1   : > { %p14_p5 = scmp.ge.s32.totalorder %s17_s17, 4   ;;  %s1427_s13 = smov %s1011_s14 }
 0x1e2   : > { %s1428_s14 = smov %s1161_s24  ;;  %s1429_s15 = smov %s1019_s16 }
 0x1e3   : > { %s1430_s16 = smov %s1432_s27  ;;  %16 = sbr.rel (!%p14_p5) target bundleno = 5 (0x5), region = 101 }
 0x1ea   :  { %614 = vsyncpa [#allocation3], 1 }
 0x1eb   :  { %616 = vsyncpa [#allocation3 + $0x1], 1 }
 0x1ec   :  { %617 = vsyncpa [#allocation5], 1 }
 0x1ed   :  { %619 = vsyncpa [#allocation5 + $0x1], 1 }

// kernel: _lambda_.8
= control target key start
LH: loop header
LB: loop body
LE: loop exit
PB: predicated region body
PF: predicated region fallthrough
CT: control target
= control target key end

     0   :  { %s2022_s0 = inlined_call_operand.vmem [shape: f32[16,256], index: 0, kind: input, shape index: {}]   ;;  %s2023_s1 = inlined_call_operand.vmem [shape: f32[16,256], index: 1, kind: input, shape index: {}]   ;;  %s2024_s2 = inlined_call_operand.vmem [shape: f32[1,256], index: 2, kind: input, shape index: {}]   ;;  %s2025_s3 = inlined_call_operand.vmem [shape: f32[256,512], index: 3, kind: input, shape index: {}]   ;;  %s2026_s4 = inlined_call_operand.vmem [shape: f32[256,512], index: 4, kind: input, shape index: {}]   ;;  %s2027_s5 = inlined_call_operand.vmem [shape: f32[16,512], index: 5, kind: output, shape index: {0}]   ;;  %s2028_s6 = inlined_call_operand.hbm [shape: f32[16,256], index: 6, kind: output, shape index: {1}]  }
   0x1   :  { %v23_v0 = vld [vmem:[%s2022_s0] sm:$0xff]  ;;  %v24_v1 = vld [vmem:[%s2022_s0 + $0x8] sm:$0xff]  ;;  %v25_v5 = vld [vmem:[%s2022_s0 + $0x10] sm:$0xff] }
   0x2   :  { %v27_v2 = vld [vmem:[%s2023_s1] sm:$0xff]  ;;  %v28_v3 = vld [vmem:[%s2023_s1 + $0x8] sm:$0xff]  ;;  %v26_v6 = vld [vmem:[%s2022_s0 + $0x18] sm:$0xff] }
   0x3   :  { %v1105_v4 = vadd.f32 %v27_v2, %v23_v0  ;;  %v1113_v7 = vadd.f32 %v28_v3, %v24_v1  ;;  %v29_v8 = vld [vmem:[%s2023_s1 + $0x10] sm:$0xff]  ;;  %v30_v9 = vld [vmem:[%s2023_s1 + $0x18] sm:$0xff]  ;;  %v81_v10 = vld [vmem:[%s2025_s3 + $0x8] sm:$0xff] }
   0x4   :  { %v1127_v12 = vadd.f32 %v29_v8, %v25_v5  ;;  %v1129_v13 = vadd.f32 %v30_v9, %v26_v6  ;;  %v85_v14 = vld [vmem:[%s2025_s3 + $0x28] sm:$0xff]  ;;  %v83_v15 = vld [vmem:[%s2025_s3 + $0x18] sm:$0xff]  ;;  %v80_v20 = vld [vmem:[%s2025_s3] sm:$0xff] }
   0x5   :  { %v43_v11 = vmul.f32 %v1105_v4, %v1105_v4  ;;  %39 = vst [vmem:[#allocation2] sm:$0xff] %v1105_v4  ;;  %v87_v16 = vld [vmem:[%s2025_s3 + $0x38] sm:$0xff]  ;;  %40 = vst [vmem:[#allocation2 + $0x8] sm:$0xff] %v1113_v7  ;;  %v44_v17 = vmul.f32 %v1113_v7, %v1113_v7  ;;  %v752_v18 = vpack.c.bf16 %v85_v14, %v81_v10  ;;  %v84_v21 = vld [vmem:[%s2025_s3 + $0x20] sm:$0xff] }
   0x6   :  { %v816_v19 = vpack.c.bf16 %v87_v16, %v83_v15  ;;  %v82_v22 = vld [vmem:[%s2025_s3 + $0x10] sm:$0xff]  ;;  %41 = vst [vmem:[#allocation2 + $0x10] sm:$0xff] %v1127_v12  ;;  %42 = vst [vmem:[#allocation2 + $0x18] sm:$0xff] %v1129_v13  ;;  %v45_v23 = vmul.f32 %v1127_v12, %v1127_v12  ;;  %v46_v24 = vmul.f32 %v1129_v13, %v1129_v13  ;;  %v89_v27 = vld [vmem:[%s2025_s3 + $0x48] sm:$0xff] }
   0x7   :  { %v754_v25 = vpack.c.bf16 %v84_v21, %v80_v20  ;;  %v86_v26 = vld [vmem:[%s2025_s3 + $0x30] sm:$0xff]  ;;  %v93_v28 = vld [vmem:[%s2025_s3 + $0x68] sm:$0xff]  ;;  %v47_v29 = vadd.f32 %v44_v17, %v43_v11  ;;  %753 = vmatprep.subr.bf16.mxu0 %v752_v18  ;;  %v91_v32 = vld [vmem:[%s2025_s3 + $0x58] sm:$0xff] }
   0x8   :  { %817 = vmatprep.subr.bf16.mxu1 %v816_v19  ;;  %v818_v30 = vpack.c.bf16 %v86_v26, %v82_v22  ;;  %v756_v31 = vpack.c.bf16 %v93_v28, %v89_v27  ;;  %v95_v33 = vld [vmem:[%s2025_s3 + $0x78] sm:$0xff]  ;;  %v88_v34 = vld [vmem:[%s2025_s3 + $0x40] sm:$0xff]  ;;  %v90_v37 = vld [vmem:[%s2025_s3 + $0x50] sm:$0xff]  ;;  %v50_v39 = vadd.f32 %v46_v24, %v45_v23 }
   0x9   :  { %755 = vmatpush1.bf16.msra.mxu0 %v754_v25  ;;  %v820_v35 = vpack.c.bf16 %v95_v33, %v91_v32  ;;  %v92_v36 = vld [vmem:[%s2025_s3 + $0x60] sm:$0xff]  ;;  %v94_v38 = vld [vmem:[%s2025_s3 + $0x70] sm:$0xff]  ;;  %48 = vadd.xlane.f32.xlu0 %v47_v29  ;;  %v97_v42 = vld [vmem:[%s2025_s3 + $0x88] sm:$0xff] }
   0xa   :  { %819 = vmatpush1.bf16.msra.mxu1 %v818_v30  ;;  %v758_v40 = vpack.c.bf16 %v92_v36, %v88_v34  ;;  %v822_v41 = vpack.c.bf16 %v94_v38, %v90_v37  ;;  %v101_v43 = vld [vmem:[%s2025_s3 + $0xa8] sm:$0xff]  ;;  %v99_v44 = vld [vmem:[%s2025_s3 + $0x98] sm:$0xff]  ;;  %757 = vmatprep.subr.bf16.mxu0 %v756_v31  ;;  %v96_v47 = vld [vmem:[%s2025_s3 + $0x80] sm:$0xff] }
   0xb   :  { %821 = vmatprep.subr.bf16.mxu1 %v820_v35  ;;  %v760_v45 = vpack.c.bf16 %v101_v43, %v97_v42  ;;  %v103_v46 = vld [vmem:[%s2025_s3 + $0xb8] sm:$0xff]  ;;  %v100_v48 = vld [vmem:[%s2025_s3 + $0xa0] sm:$0xff]  ;;  %v98_v50 = vld [vmem:[%s2025_s3 + $0x90] sm:$0xff] }
   0xc   :  { %v824_v49 = vpack.c.bf16 %v103_v46, %v99_v44  ;;  %v102_v51 = vld [vmem:[%s2025_s3 + $0xb0] sm:$0xff]  ;;  %v105_v52 = vld [vmem:[%s2025_s3 + $0xc8] sm:$0xff]  ;;  %v762_v53 = vpack.c.bf16 %v100_v48, %v96_v47  ;;  %v107_v55 = vld [vmem:[%s2025_s3 + $0xd8] sm:$0xff] }
   0xd   :  { %759 = vmatpush1.bf16.msra.mxu0 %v758_v40  ;;  %v109_v54 = vld [vmem:[%s2025_s3 + $0xe8] sm:$0xff]  ;;  %v111_v56 = vld [vmem:[%s2025_s3 + $0xf8] sm:$0xff]  ;;  %51 = vadd.xlane.f32.xlu0 %v50_v39  ;;  %v826_v57 = vpack.c.bf16 %v102_v51, %v98_v50  ;;  %v104_v59 = vld [vmem:[%s2025_s3 + $0xc0] sm:$0xff] }
   0xe   :  { %823 = vmatpush1.bf16.msra.mxu1 %v822_v41  ;;  %v764_v58 = vpack.c.bf16 %v109_v54, %v105_v52  ;;  %v108_v60 = vld [vmem:[%s2025_s3 + $0xe0] sm:$0xff]  ;;  %v106_v61 = vld [vmem:[%s2025_s3 + $0xd0] sm:$0xff]  ;;  %761 = vmatprep.subr.bf16.mxu0 %v760_v45  ;;  %v828_v62 = vpack.c.bf16 %v111_v56, %v107_v55  ;;  %v113_v0 = vld [vmem:[%s2025_s3 + $0x108] sm:$0xff] }
   0xf   :  { %825 = vmatprep.subr.bf16.mxu1 %v824_v49  ;;  %v110_v63 = vld [vmem:[%s2025_s3 + $0xf0] sm:$0xff]  ;;  %v117_v1 = vld [vmem:[%s2025_s3 + $0x128] sm:$0xff]  ;;  %v115_v2 = vld [vmem:[%s2025_s3 + $0x118] sm:$0xff]  ;;  %v766_v5 = vpack.c.bf16 %v108_v60, %v104_v59 }
  0x10   :  { %v119_v3 = vld [vmem:[%s2025_s3 + $0x138] sm:$0xff]  ;;  %v830_v6 = vpack.c.bf16 %v110_v63, %v106_v61  ;;  %v768_v8 = vpack.c.bf16 %v117_v1, %v113_v0  ;;  %v112_v9 = vld [vmem:[%s2025_s3 + $0x100] sm:$0xff]  ;;  %v114_v11 = vld [vmem:[%s2025_s3 + $0x110] sm:$0xff] }
  0x11   :  { %763 = vmatpush1.bf16.msra.mxu0 %v762_v53  ;;  %v116_v10 = vld [vmem:[%s2025_s3 + $0x120] sm:$0xff]  ;;  %v832_v14 = vpack.c.bf16 %v119_v3, %v115_v2  ;;  %v118_v15 = vld [vmem:[%s2025_s3 + $0x130] sm:$0xff]  ;;  %v121_v16 = vld [vmem:[%s2025_s3 + $0x148] sm:$0xff] }
  0x12   :  { %827 = vmatpush1.bf16.msra.mxu1 %v826_v57  ;;  %765 = vmatprep.subr.bf16.mxu0 %v764_v58  ;;  %v125_v17 = vld [vmem:[%s2025_s3 + $0x168] sm:$0xff]  ;;  %v123_v18 = vld [vmem:[%s2025_s3 + $0x158] sm:$0xff]  ;;  %v770_v20 = vpack.c.bf16 %v116_v10, %v112_v9  ;;  %v834_v21 = vpack.c.bf16 %v118_v15, %v114_v11  ;;  %v120_v23 = vld [vmem:[%s2025_s3 + $0x140] sm:$0xff] }
  0x13   :  { %829 = vmatprep.subr.bf16.mxu1 %v828_v62  ;;  %v127_v19 = vld [vmem:[%s2025_s3 + $0x178] sm:$0xff]  ;;  %v772_v22 = vpack.c.bf16 %v125_v17, %v121_v16  ;;  %v124_v24 = vld [vmem:[%s2025_s3 + $0x160] sm:$0xff]  ;;  %v122_v25 = vld [vmem:[%s2025_s3 + $0x150] sm:$0xff] }
  0x14   :  { %v836_v26 = vpack.c.bf16 %v127_v19, %v123_v18  ;;  %v126_v27 = vld [vmem:[%s2025_s3 + $0x170] sm:$0xff]  ;;  %v129_v28 = vld [vmem:[%s2025_s3 + $0x188] sm:$0xff]  ;;  %v131_v30 = vld [vmem:[%s2025_s3 + $0x198] sm:$0xff]  ;;  %v774_v32 = vpack.c.bf16 %v124_v24, %v120_v23 }
  0x15   :  { %767 = vmatpush1.bf16.msra.mxu0 %v766_v5  ;;  %v133_v29 = vld [vmem:[%s2025_s3 + $0x1a8] sm:$0xff]  ;;  %v135_v31 = vld [vmem:[%s2025_s3 + $0x1b8] sm:$0xff]  ;;  %v838_v33 = vpack.c.bf16 %v126_v27, %v122_v25  ;;  %v128_v35 = vld [vmem:[%s2025_s3 + $0x180] sm:$0xff] }
  0x16   :  { %831 = vmatpush1.bf16.msra.mxu1 %v830_v6  ;;  %769 = vmatprep.subr.bf16.mxu0 %v768_v8  ;;  %v776_v34 = vpack.c.bf16 %v133_v29, %v129_v28  ;;  %v132_v36 = vld [vmem:[%s2025_s3 + $0x1a0] sm:$0xff]  ;;  %v130_v37 = vld [vmem:[%s2025_s3 + $0x190] sm:$0xff]  ;;  %v840_v38 = vpack.c.bf16 %v135_v31, %v131_v30  ;;  %v137_v40 = vld [vmem:[%s2025_s3 + $0x1c8] sm:$0xff] }
  0x17   :  { %833 = vmatprep.subr.bf16.mxu1 %v832_v14  ;;  %v134_v39 = vld [vmem:[%s2025_s3 + $0x1b0] sm:$0xff]  ;;  %v141_v41 = vld [vmem:[%s2025_s3 + $0x1e8] sm:$0xff]  ;;  %v139_v42 = vld [vmem:[%s2025_s3 + $0x1d8] sm:$0xff]  ;;  %v778_v44 = vpack.c.bf16 %v132_v36, %v128_v35 }
  0x18   :  { %v143_v43 = vld [vmem:[%s2025_s3 + $0x1f8] sm:$0xff]  ;;  %v842_v45 = vpack.c.bf16 %v134_v39, %v130_v37  ;;  %v780_v46 = vpack.c.bf16 %v141_v41, %v137_v40  ;;  %v136_v47 = vld [vmem:[%s2025_s3 + $0x1c0] sm:$0xff]  ;;  %v138_v49 = vld [vmem:[%s2025_s3 + $0x1d0] sm:$0xff] }
  0x19   :  { %771 = vmatpush1.bf16.msra.mxu0 %v770_v20  ;;  %v140_v48 = vld [vmem:[%s2025_s3 + $0x1e0] sm:$0xff]  ;;  %v844_v50 = vpack.c.bf16 %v143_v43, %v139_v42  ;;  %v142_v51 = vld [vmem:[%s2025_s3 + $0x1f0] sm:$0xff]  ;;  %v145_v52 = vld [vmem:[%s2025_s3 + $0x208] sm:$0xff] }
  0x1a   :  { %835 = vmatpush1.bf16.msra.mxu1 %v834_v21  ;;  %773 = vmatprep.subr.bf16.mxu0 %v772_v22  ;;  %v149_v53 = vld [vmem:[%s2025_s3 + $0x228] sm:$0xff]  ;;  %v147_v54 = vld [vmem:[%s2025_s3 + $0x218] sm:$0xff]  ;;  %v782_v56 = vpack.c.bf16 %v140_v48, %v136_v47  ;;  %v846_v57 = vpack.c.bf16 %v142_v51, %v138_v49  ;;  %v144_v59 = vld [vmem:[%s2025_s3 + $0x200] sm:$0xff] }
  0x1b   :  { %837 = vmatprep.subr.bf16.mxu1 %v836_v26  ;;  %v151_v55 = vld [vmem:[%s2025_s3 + $0x238] sm:$0xff]  ;;  %v784_v58 = vpack.c.bf16 %v149_v53, %v145_v52  ;;  %v148_v60 = vld [vmem:[%s2025_s3 + $0x220] sm:$0xff]  ;;  %v146_v61 = vld [vmem:[%s2025_s3 + $0x210] sm:$0xff] }
  0x1c   :  { %v848_v62 = vpack.c.bf16 %v151_v55, %v147_v54  ;;  %v150_v63 = vld [vmem:[%s2025_s3 + $0x230] sm:$0xff]  ;;  %v153_v0 = vld [vmem:[%s2025_s3 + $0x248] sm:$0xff]  ;;  %v155_v2 = vld [vmem:[%s2025_s3 + $0x258] sm:$0xff]  ;;  %v786_v5 = vpack.c.bf16 %v148_v60, %v144_v59 }
  0x1d   :  { %775 = vmatpush1.bf16.msra.mxu0 %v774_v32  ;;  %v157_v1 = vld [vmem:[%s2025_s3 + $0x268] sm:$0xff]  ;;  %v159_v3 = vld [vmem:[%s2025_s3 + $0x278] sm:$0xff]  ;;  %v850_v6 = vpack.c.bf16 %v150_v63, %v146_v61  ;;  %v152_v9 = vld [vmem:[%s2025_s3 + $0x240] sm:$0xff] }
  0x1e   :  { %839 = vmatpush1.bf16.msra.mxu1 %v838_v33  ;;  %777 = vmatprep.subr.bf16.mxu0 %v776_v34  ;;  %v788_v8 = vpack.c.bf16 %v157_v1, %v153_v0  ;;  %v156_v10 = vld [vmem:[%s2025_s3 + $0x260] sm:$0xff]  ;;  %v154_v11 = vld [vmem:[%s2025_s3 + $0x250] sm:$0xff]  ;;  %v852_v14 = vpack.c.bf16 %v159_v3, %v155_v2  ;;  %v161_v16 = vld [vmem:[%s2025_s3 + $0x288] sm:$0xff] }
  0x1f   :  { %841 = vmatprep.subr.bf16.mxu1 %v840_v38  ;;  %v158_v15 = vld [vmem:[%s2025_s3 + $0x270] sm:$0xff]  ;;  %v165_v17 = vld [vmem:[%s2025_s3 + $0x2a8] sm:$0xff]  ;;  %v163_v18 = vld [vmem:[%s2025_s3 + $0x298] sm:$0xff]  ;;  %v790_v20 = vpack.c.bf16 %v156_v10, %v152_v9 }
  0x20   :  { %v167_v19 = vld [vmem:[%s2025_s3 + $0x2b8] sm:$0xff]  ;;  %v854_v21 = vpack.c.bf16 %v158_v15, %v154_v11  ;;  %v792_v22 = vpack.c.bf16 %v165_v17, %v161_v16  ;;  %v160_v23 = vld [vmem:[%s2025_s3 + $0x280] sm:$0xff]  ;;  %v162_v25 = vld [vmem:[%s2025_s3 + $0x290] sm:$0xff] }
  0x21   :  { %779 = vmatpush1.bf16.msra.mxu0 %v778_v44  ;;  %v164_v24 = vld [vmem:[%s2025_s3 + $0x2a0] sm:$0xff]  ;;  %v856_v26 = vpack.c.bf16 %v167_v19, %v163_v18  ;;  %v166_v27 = vld [vmem:[%s2025_s3 + $0x2b0] sm:$0xff]  ;;  %v169_v28 = vld [vmem:[%s2025_s3 + $0x2c8] sm:$0xff] }
  0x22   :  { %843 = vmatpush1.bf16.msra.mxu1 %v842_v45  ;;  %781 = vmatprep.subr.bf16.mxu0 %v780_v46  ;;  %v173_v29 = vld [vmem:[%s2025_s3 + $0x2e8] sm:$0xff]  ;;  %v171_v30 = vld [vmem:[%s2025_s3 + $0x2d8] sm:$0xff]  ;;  %v794_v32 = vpack.c.bf16 %v164_v24, %v160_v23  ;;  %v858_v33 = vpack.c.bf16 %v166_v27, %v162_v25  ;;  %v168_v35 = vld [vmem:[%s2025_s3 + $0x2c0] sm:$0xff] }
  0x23   :  { %845 = vmatprep.subr.bf16.mxu1 %v844_v50  ;;  %v175_v31 = vld [vmem:[%s2025_s3 + $0x2f8] sm:$0xff]  ;;  %v796_v34 = vpack.c.bf16 %v173_v29, %v169_v28  ;;  %v172_v36 = vld [vmem:[%s2025_s3 + $0x2e0] sm:$0xff]  ;;  %v170_v37 = vld [vmem:[%s2025_s3 + $0x2d0] sm:$0xff] }
  0x24   :  { %v860_v38 = vpack.c.bf16 %v175_v31, %v171_v30  ;;  %v174_v39 = vld [vmem:[%s2025_s3 + $0x2f0] sm:$0xff]  ;;  %v177_v40 = vld [vmem:[%s2025_s3 + $0x308] sm:$0xff]  ;;  %v179_v42 = vld [vmem:[%s2025_s3 + $0x318] sm:$0xff]  ;;  %v798_v44 = vpack.c.bf16 %v172_v36, %v168_v35 }
  0x25   :  { %783 = vmatpush1.bf16.msra.mxu0 %v782_v56  ;;  %v181_v41 = vld [vmem:[%s2025_s3 + $0x328] sm:$0xff]  ;;  %v183_v43 = vld [vmem:[%s2025_s3 + $0x338] sm:$0xff]  ;;  %v862_v45 = vpack.c.bf16 %v174_v39, %v170_v37  ;;  %v176_v47 = vld [vmem:[%s2025_s3 + $0x300] sm:$0xff] }
  0x26   :  { %847 = vmatpush1.bf16.msra.mxu1 %v846_v57  ;;  %785 = vmatprep.subr.bf16.mxu0 %v784_v58  ;;  %v800_v46 = vpack.c.bf16 %v181_v41, %v177_v40  ;;  %v180_v48 = vld [vmem:[%s2025_s3 + $0x320] sm:$0xff]  ;;  %v178_v49 = vld [vmem:[%s2025_s3 + $0x310] sm:$0xff]  ;;  %v864_v50 = vpack.c.bf16 %v183_v43, %v179_v42  ;;  %v185_v52 = vld [vmem:[%s2025_s3 + $0x348] sm:$0xff] }
  0x27   :  { %849 = vmatprep.subr.bf16.mxu1 %v848_v62  ;;  %v182_v51 = vld [vmem:[%s2025_s3 + $0x330] sm:$0xff]  ;;  %v189_v53 = vld [vmem:[%s2025_s3 + $0x368] sm:$0xff]  ;;  %v187_v54 = vld [vmem:[%s2025_s3 + $0x358] sm:$0xff]  ;;  %v802_v56 = vpack.c.bf16 %v180_v48, %v176_v47 }
  0x28   :  { %v191_v55 = vld [vmem:[%s2025_s3 + $0x378] sm:$0xff]  ;;  %v866_v57 = vpack.c.bf16 %v182_v51, %v178_v49  ;;  %v804_v58 = vpack.c.bf16 %v189_v53, %v185_v52  ;;  %v184_v59 = vld [vmem:[%s2025_s3 + $0x340] sm:$0xff]  ;;  %v186_v61 = vld [vmem:[%s2025_s3 + $0x350] sm:$0xff] }
  0x29   :  { %787 = vmatpush1.bf16.msra.mxu0 %v786_v5  ;;  %v188_v60 = vld [vmem:[%s2025_s3 + $0x360] sm:$0xff]  ;;  %v868_v62 = vpack.c.bf16 %v191_v55, %v187_v54  ;;  %v190_v63 = vld [vmem:[%s2025_s3 + $0x370] sm:$0xff]  ;;  %v193_v0 = vld [vmem:[%s2025_s3 + $0x388] sm:$0xff] }
  0x2a   :  { %851 = vmatpush1.bf16.msra.mxu1 %v850_v6  ;;  %789 = vmatprep.subr.bf16.mxu0 %v788_v8  ;;  %v197_v1 = vld [vmem:[%s2025_s3 + $0x3a8] sm:$0xff]  ;;  %v195_v2 = vld [vmem:[%s2025_s3 + $0x398] sm:$0xff]  ;;  %v806_v5 = vpack.c.bf16 %v188_v60, %v184_v59  ;;  %v870_v6 = vpack.c.bf16 %v190_v63, %v186_v61  ;;  %v192_v9 = vld [vmem:[%s2025_s3 + $0x380] sm:$0xff] }
  0x2b   :  { %853 = vmatprep.subr.bf16.mxu1 %v852_v14  ;;  %v199_v3 = vld [vmem:[%s2025_s3 + $0x3b8] sm:$0xff]  ;;  %v808_v8 = vpack.c.bf16 %v197_v1, %v193_v0  ;;  %v196_v10 = vld [vmem:[%s2025_s3 + $0x3a0] sm:$0xff]  ;;  %v194_v11 = vld [vmem:[%s2025_s3 + $0x390] sm:$0xff] }
  0x2c   :  { %v872_v14 = vpack.c.bf16 %v199_v3, %v195_v2  ;;  %v198_v15 = vld [vmem:[%s2025_s3 + $0x3b0] sm:$0xff]  ;;  %v201_v16 = vld [vmem:[%s2025_s3 + $0x3c8] sm:$0xff]  ;;  %v203_v18 = vld [vmem:[%s2025_s3 + $0x3d8] sm:$0xff] }
  0x2d   :  { %791 = vmatpush1.bf16.msra.mxu0 %v790_v20  ;;  %v205_v17 = vld [vmem:[%s2025_s3 + $0x3e8] sm:$0xff]  ;;  %v207_v19 = vld [vmem:[%s2025_s3 + $0x3f8] sm:$0xff]  ;;  %v810_v20 = vpack.c.bf16 %v196_v10, %v192_v9  ;;  %v204_v24 = vld [vmem:[%s2025_s3 + $0x3e0] sm:$0xff] }
  0x2e   :  { %855 = vmatpush1.bf16.msra.mxu1 %v854_v21  ;;  %793 = vmatprep.subr.bf16.mxu0 %v792_v22  ;;  %v200_v21 = vld [vmem:[%s2025_s3 + $0x3c0] sm:$0xff]  ;;  %v874_v22 = vpack.c.bf16 %v198_v15, %v194_v11  ;;  %v812_v23 = vpack.c.bf16 %v205_v17, %v201_v16  ;;  %v202_v25 = vld [vmem:[%s2025_s3 + $0x3d0] sm:$0xff]  ;;  %v876_v27 = vpack.c.bf16 %v207_v19, %v203_v18  ;;  %v363_v28 = vld [vmem:[%s2026_s4 + $0x8] sm:$0xff] }
  0x2f   :  { %857 = vmatprep.subr.bf16.mxu1 %v856_v26  ;;  %v206_v26 = vld [vmem:[%s2025_s3 + $0x3f0] sm:$0xff]  ;;  %v367_v29 = vld [vmem:[%s2026_s4 + $0x28] sm:$0xff] }
  0x31   :  { %795 = vmatpush1.bf16.msra.mxu0 %v794_v32 }
  0x32   :  { %859 = vmatpush1.bf16.msra.mxu1 %v858_v33  ;;  %797 = vmatprep.subr.bf16.mxu0 %v796_v34 }
  0x33   :  { %861 = vmatprep.subr.bf16.mxu1 %v860_v38 }
  0x35   :  { %799 = vmatpush1.bf16.msra.mxu0 %v798_v44 }
  0x36   :  { %863 = vmatpush1.bf16.msra.mxu1 %v862_v45  ;;  %801 = vmatprep.subr.bf16.mxu0 %v800_v46 }
  0x37   :  { %865 = vmatprep.subr.bf16.mxu1 %v864_v50 }
  0x39   :  { %803 = vmatpush1.bf16.msra.mxu0 %v802_v56 }
  0x3a   :  { %867 = vmatpush1.bf16.msra.mxu1 %v866_v57  ;;  %805 = vmatprep.subr.bf16.mxu0 %v804_v58 }
  0x3b   :  { %869 = vmatprep.subr.bf16.mxu1 %v868_v62 }
  0x3d   :  { %807 = vmatpush1.bf16.msra.mxu0 %v806_v5 }
  0x3e   :  { %871 = vmatpush1.bf16.msra.mxu1 %v870_v6  ;;  %809 = vmatprep.subr.bf16.mxu0 %v808_v8 }
  0x3f   :  { %873 = vmatprep.subr.bf16.mxu1 %v872_v14 }
  0x40   :  { %12 = vsyncpa [#allocation3], 0  ;;  %v365_v30 = vld [vmem:[%s2026_s4 + $0x18] sm:$0xff]  ;;  %v814_v32 = vpack.c.bf16 %v204_v24, %v200_v21  ;;  %v878_v33 = vpack.c.bf16 %v206_v26, %v202_v25  ;;  %v880_v34 = vpack.c.bf16 %v367_v29, %v363_v28  ;;  %v66_v38 = vlaneseq  ;;  %v64_v46 = vld [vmem:[%s2024_s2] sm:$0x3] }
  0x41   :  { %v369_v31 = vld [vmem:[%s2026_s4 + $0x38] sm:$0xff]  ;;  %811 = vmatpush1.bf16.msra.mxu0 %v810_v20  ;;  %v362_v49 = vld [vmem:[%s2026_s4] sm:$0xff]  ;;  %v364_v52 = vld [vmem:[%s2026_s4 + $0x10] sm:$0xff] }
  0x42   :  { %875 = vmatpush1.bf16.msra.mxu1 %v874_v22  ;;  %813 = vmatprep.subr.bf16.mxu0 %v812_v23  ;;  %v944_v35 = vpack.c.bf16 %v369_v31, %v365_v30  ;;  %v67_v42 = vshrl.u32 %v66_v38, 7  ;;  %v366_v50 = vld [vmem:[%s2026_s4 + $0x20] sm:$0xff]  ;;  %v368_v53 = vld [vmem:[%s2026_s4 + $0x30] sm:$0xff]  ;;  %v371_v54 = vld [vmem:[%s2026_s4 + $0x48] sm:$0xff] }
  0x43   :  { %877 = vmatprep.subr.bf16.mxu1 %v876_v27  ;;  %v375_v57 = vld [vmem:[%s2026_s4 + $0x68] sm:$0xff]  ;;  %v373_v58 = vld [vmem:[%s2026_s4 + $0x58] sm:$0xff]  ;;  %v882_v62 = vpack.c.bf16 %v366_v50, %v362_v49  ;;  %v946_v63 = vpack.c.bf16 %v368_v53, %v364_v52  ;;  %v372_v3 = vld [vmem:[%s2026_s4 + $0x50] sm:$0xff] }
  0x44   :  { %v72_v44 = vsub.s32 1, %v67_v42  ;;  %v68_v45 = vsub.s32 0, %v67_v42  ;;  %v377_v59 = vld [vmem:[%s2026_s4 + $0x78] sm:$0xff]  ;;  %v884_v1 = vpack.c.bf16 %v375_v57, %v371_v54  ;;  %v376_v5 = vld [vmem:[%s2026_s4 + $0x70] sm:$0xff]  ;;  %v379_v9 = vld [vmem:[%s2026_s4 + $0x88] sm:$0xff] }
  0x45   :  { %815 = vmatpush1.bf16.msra.mxu0 %v814_v32  ;;  %v948_v2 = vpack.c.bf16 %v377_v59, %v373_v58  ;;  %v383_v11 = vld [vmem:[%s2026_s4 + $0xa8] sm:$0xff]  ;;  %v381_v14 = vld [vmem:[%s2026_s4 + $0x98] sm:$0xff]  ;;  %v950_v16 = vpack.c.bf16 %v376_v5, %v372_v3  ;;  %v378_v17 = vld [vmem:[%s2026_s4 + $0x80] sm:$0xff] }
  0x46   :  { %879 = vmatpush1.bf16.msra.mxu1 %v878_v33  ;;  %881 = vmatprep.subr.bf16.mxu0 %v880_v34  ;;  %v73_v47 = vrot.slane %v64_v46, %v72_v44  ;;  %v69_v48 = vrot.slane %v64_v46, %v68_v45  ;;  %v382_v18 = vld [vmem:[%s2026_s4 + $0xa0] sm:$0xff]  ;;  %v380_v19 = vld [vmem:[%s2026_s4 + $0x90] sm:$0xff]  ;;  %v387_v21 = vld [vmem:[%s2026_s4 + $0xc8] sm:$0xff]  ;;  %v888_v22 = vpack.c.bf16 %v383_v11, %v379_v9 }
  0x47   :  { %945 = vmatprep.subr.bf16.mxu1 %v944_v35  ;;  %v384_v20 = vld [vmem:[%s2026_s4 + $0xb0] sm:$0xff]  ;;  %v391_v24 = vld [vmem:[%s2026_s4 + $0xe8] sm:$0xff]  ;;  %v389_v25 = vld [vmem:[%s2026_s4 + $0xd8] sm:$0xff]  ;;  %v890_v27 = vpack.c.bf16 %v382_v18, %v378_v17 }
  0x48   :  { %v393_v26 = vld [vmem:[%s2026_s4 + $0xf8] sm:$0xff]  ;;  %v954_v28 = vpack.c.bf16 %v384_v20, %v380_v19  ;;  %v386_v29 = vld [vmem:[%s2026_s4 + $0xc0] sm:$0xff]  ;;  %v892_v31 = vpack.c.bf16 %v391_v24, %v387_v21  ;;  %v388_v33 = vld [vmem:[%s2026_s4 + $0xd0] sm:$0xff] }
  0x49   :  { %v390_v30 = vld [vmem:[%s2026_s4 + $0xe0] sm:$0xff]  ;;  %v956_v32 = vpack.c.bf16 %v393_v26, %v389_v25  ;;  %v392_v34 = vld [vmem:[%s2026_s4 + $0xf0] sm:$0xff]  ;;  %v395_v35 = vld [vmem:[%s2026_s4 + $0x108] sm:$0xff] }
  0x4a   :  { %v401_v38 = vld [vmem:[%s2026_s4 + $0x138] sm:$0xff]  ;;  %v398_v42 = vld [vmem:[%s2026_s4 + $0x120] sm:$0xff]  ;;  %v396_v45 = vld [vmem:[%s2026_s4 + $0x110] sm:$0xff] }
  0x4b   :  { %v400_v46 = vld [vmem:[%s2026_s4 + $0x130] sm:$0xff]  ;;  %v405_v49 = vld [vmem:[%s2026_s4 + $0x158] sm:$0xff]  ;;  %v402_v53 = vld [vmem:[%s2026_s4 + $0x140] sm:$0xff] }
  0x4c   :  { %v409_v50 = vld [vmem:[%s2026_s4 + $0x178] sm:$0xff]  ;;  %v962_v52 = vpack.c.bf16 %v400_v46, %v396_v45  ;;  %v406_v54 = vld [vmem:[%s2026_s4 + $0x160] sm:$0xff]  ;;  %v404_v57 = vld [vmem:[%s2026_s4 + $0x150] sm:$0xff] }
  0x4d   :  { %v408_v58 = vld [vmem:[%s2026_s4 + $0x170] sm:$0xff]  ;;  %v411_v59 = vld [vmem:[%s2026_s4 + $0x188] sm:$0xff]  ;;  %v425_v11 = vld [vmem:[%s2026_s4 + $0x1f8] sm:$0xff] }
  0x4e   :  { %v412_v5 = vld [vmem:[%s2026_s4 + $0x190] sm:$0xff]  ;;  %v423_v9 = vld [vmem:[%s2026_s4 + $0x1e8] sm:$0xff]  ;;  %v422_v17 = vld [vmem:[%s2026_s4 + $0x1e0] sm:$0xff] }
  0x4f   :  { %v420_v20 = vld [vmem:[%s2026_s4 + $0x1d0] sm:$0xff]  ;;  %v429_v24 = vld [vmem:[%s2026_s4 + $0x218] sm:$0xff]  ;;  %v443_v46 = vld [vmem:[%s2026_s4 + $0x288] sm:$0xff] }
  0x50   :  { %v424_v21 = vld [vmem:[%s2026_s4 + $0x1f0] sm:$0xff]  ;;  %v433_v25 = vld [vmem:[%s2026_s4 + $0x238] sm:$0xff] }
  0x51   :  { %v440_v45 = vld [vmem:[%s2026_s4 + $0x270] sm:$0xff] }
  0x96   :  { %v49_v36 = vpop.xlane.xlu0 %48 }
  0x97   :  { %v54_v37 = vmul.f32 0.00390625, %v49_v36  ;;  %v399_v36 = vld [vmem:[%s2026_s4 + $0x128] sm:$0xff] }
  0x99   :  { %v56_v39 = vadd.f32 1e-06, %v54_v37  ;;  %v397_v37 = vld [vmem:[%s2026_s4 + $0x118] sm:$0xff] }
  0x9a   :  { %v52_v40 = vpop.xlane.xlu0 %51  ;;  %v960_v44 = vpack.c.bf16 %v401_v38, %v397_v37  ;;  %v441_v37 = vld [vmem:[%s2026_s4 + $0x278] sm:$0xff] }
  0x9b   :  { %1011 = vrsqrt.f32 %v56_v39  ;;  %v55_v41 = vmul.f32 0.00390625, %v52_v40  ;;  %v894_v39 = vpack.c.bf16 %v390_v30, %v386_v29  ;;  %v958_v40 = vpack.c.bf16 %v392_v34, %v388_v33  ;;  %v430_v29 = vld [vmem:[%s2026_s4 + $0x220] sm:$0xff]  ;;  %v432_v33 = vld [vmem:[%s2026_s4 + $0x230] sm:$0xff]  ;;  %v435_v34 = vld [vmem:[%s2026_s4 + $0x248] sm:$0xff] }
  0x9d   :  { %v57_v43 = vadd.f32 1e-06, %v55_v41  ;;  %v394_v41 = vld [vmem:[%s2026_s4 + $0x100] sm:$0xff] }
  0x9f   :  { %1013 = vrsqrt.f32 %v57_v43  ;;  %v896_v43 = vpack.c.bf16 %v399_v36, %v395_v35  ;;  %v439_v35 = vld [vmem:[%s2026_s4 + $0x268] sm:$0xff]  ;;  %v437_v36 = vld [vmem:[%s2026_s4 + $0x258] sm:$0xff] }
  0xa5   :  { %v1012_v51 = vpop.eup %1011 }
  0xa6   :  { %v61_v55 = vmul.f32 %v1012_v51, %v1113_v7  ;;  %v60_v56 = vmul.f32 %v1012_v51, %v1105_v4  ;;  %v370_v4 = vld [vmem:[%s2026_s4 + $0x40] sm:$0xff]  ;;  %v898_v51 = vpack.c.bf16 %v398_v42, %v394_v41  ;;  %v916_v42 = vpack.c.bf16 %v439_v35, %v435_v34  ;;  %v479_v34 = vld [vmem:[%s2026_s4 + $0x3a8] sm:$0xff]  ;;  %v477_v35 = vld [vmem:[%s2026_s4 + $0x398] sm:$0xff] }
  0xa7   :  { %v374_v7 = vld [vmem:[%s2026_s4 + $0x60] sm:$0xff] }
  0xa8   :  { %v77_v60 = vmul.f32 %v73_v47, %v61_v55  ;;  %v1562_v61 = vmul.f32 %v69_v48, %v60_v56  ;;  %v886_v10 = vpack.c.bf16 %v374_v7, %v370_v4  ;;  %v964_v56 = vpack.c.bf16 %v409_v50, %v405_v49  ;;  %v438_v41 = vld [vmem:[%s2026_s4 + $0x260] sm:$0xff]  ;;  %v449_v49 = vld [vmem:[%s2026_s4 + $0x2b8] sm:$0xff] }
  0xa9   :  { %v1014_v0 = vpop.eup %1013  ;;  %v902_v4 = vpack.c.bf16 %v406_v54, %v402_v53  ;;  %v966_v7 = vpack.c.bf16 %v408_v58, %v404_v57  ;;  %v446_v53 = vld [vmem:[%s2026_s4 + $0x2a0] sm:$0xff]  ;;  %v448_v57 = vld [vmem:[%s2026_s4 + $0x2b0] sm:$0xff]  ;;  %v451_v58 = vld [vmem:[%s2026_s4 + $0x2c8] sm:$0xff] }
  0xaa   :  { %272 = vmatprep.mubr.f32.mxu0 %v77_v60  ;;  %349 = vmatprep.mubr.f32.mxu1 %v77_v60  ;;  %v63_v6 = vmul.f32 %v1014_v0, %v1129_v13  ;;  %v62_v8 = vmul.f32 %v1014_v0, %v1127_v12  ;;  %v385_v12 = vld [vmem:[%s2026_s4 + $0xb8] sm:$0xff]  ;;  %v410_v0 = vld [vmem:[%s2026_s4 + $0x180] sm:$0xff] }
  0xab   :  { %273 = vmatmul.mubr.f32.vlgmr.msra.gmra.mrb[0].mxu0 %v1562_v61  ;;  %350 = vmatmul.mubr.f32.vlgmr.msra.gmra.mrb[0].mxu1 %v1562_v61  ;;  %v952_v23 = vpack.c.bf16 %v385_v12, %v381_v14 }
  0xac   :  { %883 = vmatpush1.bf16.msra.mxu0 %v882_v62  ;;  %947 = vmatpush1.bf16.msra.mxu1 %v946_v63  ;;  %v1592_v13 = vmul.f32 %v73_v47, %v63_v6  ;;  %v1594_v15 = vmul.f32 %v69_v48, %v62_v8  ;;  %v403_v47 = vld [vmem:[%s2026_s4 + $0x148] sm:$0xff]  ;;  %v413_v62 = vld [vmem:[%s2026_s4 + $0x198] sm:$0xff]  ;;  %v416_v6 = vld [vmem:[%s2026_s4 + $0x1b0] sm:$0xff] }
  0xad   :  { %885 = vmatprep.subr.bf16.mxu0 %v884_v1  ;;  %949 = vmatprep.subr.bf16.mxu1 %v948_v2  ;;  %v407_v48 = vld [vmem:[%s2026_s4 + $0x168] sm:$0xff]  ;;  %v417_v63 = vld [vmem:[%s2026_s4 + $0x1b8] sm:$0xff]  ;;  %v414_v1 = vld [vmem:[%s2026_s4 + $0x1a0] sm:$0xff]  ;;  %v970_v12 = vpack.c.bf16 %v416_v6, %v412_v5 }
  0xae   :  { %278 = vmatprep.mubr.f32.mxu0 %v1592_v13  ;;  %355 = vmatprep.mubr.f32.mxu1 %v1592_v13  ;;  %v900_v55 = vpack.c.bf16 %v407_v48, %v403_v47  ;;  %v968_v3 = vpack.c.bf16 %v417_v63, %v413_v62  ;;  %v419_v8 = vld [vmem:[%s2026_s4 + $0x1c8] sm:$0xff]  ;;  %v906_v14 = vpack.c.bf16 %v414_v1, %v410_v0  ;;  %v445_v48 = vld [vmem:[%s2026_s4 + $0x298] sm:$0xff]  ;;  %v454_v0 = vld [vmem:[%s2026_s4 + $0x2e0] sm:$0xff] }
  0xaf   :  { %279 = vmatmul.mubr.f32.gmra.mrb[2].mxu0 %v1594_v15  ;;  %356 = vmatmul.mubr.f32.gmra.mrb[2].mxu1 %v1594_v15  ;;  %v908_v18 = vpack.c.bf16 %v423_v9, %v419_v8  ;;  %v447_v47 = vld [vmem:[%s2026_s4 + $0x2a8] sm:$0xff]  ;;  %v457_v62 = vld [vmem:[%s2026_s4 + $0x2f8] sm:$0xff]  ;;  %v456_v5 = vld [vmem:[%s2026_s4 + $0x2f0] sm:$0xff] }
  0xb0   :  { %887 = vmatpush1.bf16.msra.mxu0 %v886_v10  ;;  %951 = vmatpush1.bf16.msra.mxu1 %v950_v16  ;;  %v421_v10 = vld [vmem:[%s2026_s4 + $0x1d8] sm:$0xff]  ;;  %v418_v16 = vld [vmem:[%s2026_s4 + $0x1c0] sm:$0xff]  ;;  %v920_v54 = vpack.c.bf16 %v447_v47, %v443_v46  ;;  %v459_v6 = vld [vmem:[%s2026_s4 + $0x308] sm:$0xff] }
  0xb1   :  { %554 = vmatprep.mubr.f32.mxu0 %v77_v60  ;;  %631 = vmatprep.mubr.f32.mxu1 %v77_v60  ;;  %v415_v60 = vld [vmem:[%s2026_s4 + $0x1a8] sm:$0xff]  ;;  %v972_v19 = vpack.c.bf16 %v425_v11, %v421_v10  ;;  %v910_v26 = vpack.c.bf16 %v422_v17, %v418_v16  ;;  %v461_v9 = vld [vmem:[%s2026_s4 + $0x318] sm:$0xff]  ;;  %v462_v16 = vld [vmem:[%s2026_s4 + $0x320] sm:$0xff] }
  0xb2   :  { %889 = vmatprep.subr.bf16.mxu0 %v888_v22  ;;  %953 = vmatprep.subr.bf16.mxu1 %v952_v23  ;;  %v904_v2 = vpack.c.bf16 %v415_v60, %v411_v59  ;;  %v427_v22 = vld [vmem:[%s2026_s4 + $0x208] sm:$0xff]  ;;  %v453_v60 = vld [vmem:[%s2026_s4 + $0x2d8] sm:$0xff] }
  0xb3   :  { %v431_v23 = vld [vmem:[%s2026_s4 + $0x228] sm:$0xff]  ;;  %v465_v10 = vld [vmem:[%s2026_s4 + $0x338] sm:$0xff] }
  0xb4   :  { %891 = vmatpush1.bf16.msra.mxu0 %v890_v27  ;;  %955 = vmatpush1.bf16.msra.mxu1 %v954_v28  ;;  %v974_v27 = vpack.c.bf16 %v424_v21, %v420_v20  ;;  %v426_v28 = vld [vmem:[%s2026_s4 + $0x200] sm:$0xff]  ;;  %v912_v30 = vpack.c.bf16 %v431_v23, %v427_v22  ;;  %v455_v59 = vld [vmem:[%s2026_s4 + $0x2e8] sm:$0xff]  ;;  %v464_v20 = vld [vmem:[%s2026_s4 + $0x330] sm:$0xff] }
  0xb5   :  { %893 = vmatprep.subr.bf16.mxu0 %v892_v31  ;;  %957 = vmatprep.subr.bf16.mxu1 %v956_v32  ;;  %v976_v31 = vpack.c.bf16 %v433_v25, %v429_v24  ;;  %v428_v32 = vld [vmem:[%s2026_s4 + $0x210] sm:$0xff]  ;;  %v914_v38 = vpack.c.bf16 %v430_v29, %v426_v28  ;;  %v924_v1 = vpack.c.bf16 %v455_v59, %v451_v58  ;;  %v463_v8 = vld [vmem:[%s2026_s4 + $0x328] sm:$0xff]  ;;  %v469_v23 = vld [vmem:[%s2026_s4 + $0x358] sm:$0xff] }
  0xb6   :  { %v928_v17 = vpack.c.bf16 %v463_v8, %v459_v6  ;;  %v467_v21 = vld [vmem:[%s2026_s4 + $0x348] sm:$0xff]  ;;  %v473_v24 = vld [vmem:[%s2026_s4 + $0x378] sm:$0xff]  ;;  %v470_v28 = vld [vmem:[%s2026_s4 + $0x360] sm:$0xff] }
  0xb7   :  { %v471_v22 = vld [vmem:[%s2026_s4 + $0x368] sm:$0xff]  ;;  %v485_v47 = vld [vmem:[%s2026_s4 + $0x3d8] sm:$0xff] }
  0xb8   :  { %895 = vmatpush1.bf16.msra.mxu0 %v894_v39  ;;  %959 = vmatpush1.bf16.msra.mxu1 %v958_v40  ;;  %v978_v39 = vpack.c.bf16 %v432_v33, %v428_v32  ;;  %v434_v40 = vld [vmem:[%s2026_s4 + $0x240] sm:$0xff]  ;;  %v932_v29 = vpack.c.bf16 %v471_v22, %v467_v21  ;;  %v472_v32 = vld [vmem:[%s2026_s4 + $0x370] sm:$0xff]  ;;  %v475_v33 = vld [vmem:[%s2026_s4 + $0x388] sm:$0xff] }
  0xb9   :  { %897 = vmatprep.subr.bf16.mxu0 %v896_v43  ;;  %961 = vmatprep.subr.bf16.mxu1 %v960_v44  ;;  %v980_v43 = vpack.c.bf16 %v441_v37, %v437_v36  ;;  %v436_v44 = vld [vmem:[%s2026_s4 + $0x250] sm:$0xff]  ;;  %v918_v50 = vpack.c.bf16 %v438_v41, %v434_v40  ;;  %v481_v36 = vld [vmem:[%s2026_s4 + $0x3b8] sm:$0xff]  ;;  %v478_v40 = vld [vmem:[%s2026_s4 + $0x3a0] sm:$0xff]  ;;  %v936_v41 = vpack.c.bf16 %v479_v34, %v475_v33 }
  0xba   :  { %v487_v46 = vld [vmem:[%s2026_s4 + $0x3e8] sm:$0xff] }
  0xbc   :  { %899 = vmatpush1.bf16.msra.mxu0 %v898_v51  ;;  %963 = vmatpush1.bf16.msra.mxu1 %v962_v52  ;;  %v982_v51 = vpack.c.bf16 %v440_v45, %v436_v44  ;;  %v442_v52 = vld [vmem:[%s2026_s4 + $0x280] sm:$0xff]  ;;  %v480_v44 = vld [vmem:[%s2026_s4 + $0x3b0] sm:$0xff]  ;;  %v483_v45 = vld [vmem:[%s2026_s4 + $0x3c8] sm:$0xff] }
  0xbd   :  { %901 = vmatprep.subr.bf16.mxu0 %v900_v55  ;;  %965 = vmatprep.subr.bf16.mxu1 %v964_v56  ;;  %v984_v55 = vpack.c.bf16 %v449_v49, %v445_v48  ;;  %v444_v56 = vld [vmem:[%s2026_s4 + $0x290] sm:$0xff]  ;;  %v922_v63 = vpack.c.bf16 %v446_v53, %v442_v52  ;;  %v489_v48 = vld [vmem:[%s2026_s4 + $0x3f8] sm:$0xff]  ;;  %v940_v52 = vpack.c.bf16 %v487_v46, %v483_v45 }
  0xbe   :  { %v1004_v53 = vpack.c.bf16 %v489_v48, %v485_v47 }
  0xc0   :  { %903 = vmatpush1.bf16.msra.mxu0 %v902_v4  ;;  %967 = vmatpush1.bf16.msra.mxu1 %v966_v7  ;;  %v986_v4 = vpack.c.bf16 %v448_v57, %v444_v56  ;;  %v450_v7 = vld [vmem:[%s2026_s4 + $0x2c0] sm:$0xff]  ;;  %v488_v56 = vld [vmem:[%s2026_s4 + $0x3f0] sm:$0xff] }
  0xc1   :  { %905 = vmatprep.subr.bf16.mxu0 %v904_v2  ;;  %969 = vmatprep.subr.bf16.mxu1 %v968_v3  ;;  %v988_v2 = vpack.c.bf16 %v457_v62, %v453_v60  ;;  %v452_v3 = vld [vmem:[%s2026_s4 + $0x2d0] sm:$0xff]  ;;  %v926_v11 = vpack.c.bf16 %v454_v0, %v450_v7 }
  0xc4   :  { %907 = vmatpush1.bf16.msra.mxu0 %v906_v14  ;;  %971 = vmatpush1.bf16.msra.mxu1 %v970_v12  ;;  %v990_v14 = vpack.c.bf16 %v456_v5, %v452_v3  ;;  %v458_v12 = vld [vmem:[%s2026_s4 + $0x300] sm:$0xff] }
  0xc5   :  { %909 = vmatprep.subr.bf16.mxu0 %v908_v18  ;;  %973 = vmatprep.subr.bf16.mxu1 %v972_v19  ;;  %v992_v18 = vpack.c.bf16 %v465_v10, %v461_v9  ;;  %v460_v19 = vld [vmem:[%s2026_s4 + $0x310] sm:$0xff]  ;;  %v930_v25 = vpack.c.bf16 %v462_v16, %v458_v12 }
  0xc8   :  { %911 = vmatpush1.bf16.msra.mxu0 %v910_v26  ;;  %975 = vmatpush1.bf16.msra.mxu1 %v974_v27  ;;  %v994_v26 = vpack.c.bf16 %v464_v20, %v460_v19  ;;  %v466_v27 = vld [vmem:[%s2026_s4 + $0x340] sm:$0xff] }
  0xc9   :  { %913 = vmatprep.subr.bf16.mxu0 %v912_v30  ;;  %977 = vmatprep.subr.bf16.mxu1 %v976_v31  ;;  %v996_v30 = vpack.c.bf16 %v473_v24, %v469_v23  ;;  %v468_v31 = vld [vmem:[%s2026_s4 + $0x350] sm:$0xff]  ;;  %v934_v37 = vpack.c.bf16 %v470_v28, %v466_v27 }
  0xcc   :  { %915 = vmatpush1.bf16.msra.mxu0 %v914_v38  ;;  %979 = vmatpush1.bf16.msra.mxu1 %v978_v39  ;;  %v998_v38 = vpack.c.bf16 %v472_v32, %v468_v31  ;;  %v474_v39 = vld [vmem:[%s2026_s4 + $0x380] sm:$0xff] }
  0xcd   :  { %917 = vmatprep.subr.bf16.mxu0 %v916_v42  ;;  %981 = vmatprep.subr.bf16.mxu1 %v980_v43  ;;  %v1000_v42 = vpack.c.bf16 %v481_v36, %v477_v35  ;;  %v476_v43 = vld [vmem:[%s2026_s4 + $0x390] sm:$0xff]  ;;  %v938_v49 = vpack.c.bf16 %v478_v40, %v474_v39 }
  0xd0   :  { %919 = vmatpush1.bf16.msra.mxu0 %v918_v50  ;;  %983 = vmatpush1.bf16.msra.mxu1 %v982_v51  ;;  %v1002_v50 = vpack.c.bf16 %v480_v44, %v476_v43  ;;  %v482_v51 = vld [vmem:[%s2026_s4 + $0x3c0] sm:$0xff] }
  0xd1   :  { %921 = vmatprep.subr.bf16.mxu0 %v920_v54  ;;  %985 = vmatprep.subr.bf16.mxu1 %v984_v55  ;;  %v486_v54 = vld [vmem:[%s2026_s4 + $0x3e0] sm:$0xff]  ;;  %v484_v55 = vld [vmem:[%s2026_s4 + $0x3d0] sm:$0xff]  ;;  %s1055_s4 = smov [#allocation2]  }
  0xd2   :  { %v942_v57 = vpack.c.bf16 %v486_v54, %v482_v51  ;;  %v1006_v58 = vpack.c.bf16 %v488_v56, %v484_v55  ;;  %s739_s0 = sshll.u32 %s1055_s4, 4  ;;  %s740_s0 = int_to_ptr.vmem [resolvable:$true] %s739_s0 }
  0xd3   :  { %s1031_s15 = scalar_lea.vmem %s740_s0, 512  ;;  %p1036_p1 = scmp.lt.s32.totalorder %s740_s0, %s740_s0 }
  0xd4   :  { %923 = vmatpush1.bf16.msra.mxu0 %v922_v63  ;;  %987 = vmatpush1.bf16.msra.mxu1 %v986_v4  ;;  %p1032_p0 = scmp.ne.s32.totalorder %s740_s0, %s1031_s15  ;;  %p1037_p2 = scmp.lt.s32.totalorder %s1031_s15, %s1031_s15 }
  0xd5   :  { %925 = vmatprep.subr.bf16.mxu0 %v924_v1  ;;  %989 = vmatprep.subr.bf16.mxu1 %v988_v2 }
  0xd6   :  { %p1038_p3 = por %p1037_p2, %p1036_p1 }
  0xd8   :  { %927 = vmatpush1.bf16.msra.mxu0 %v926_v11  ;;  %991 = vmatpush1.bf16.msra.mxu1 %v990_v14  ;;  %p1039_p4 = pnand %p1038_p3, %p1032_p0 }
  0xd9   :  { %929 = vmatprep.subr.bf16.mxu0 %v928_v17  ;;  %993 = vmatprep.subr.bf16.mxu1 %v992_v18 }
  0xdc   :  { %931 = vmatpush1.bf16.msra.mxu0 %v930_v25  ;;  %995 = vmatpush1.bf16.msra.mxu1 %v994_v26 }
  0xdd   :  { %933 = vmatprep.subr.bf16.mxu0 %v932_v29  ;;  %997 = vmatprep.subr.bf16.mxu1 %v996_v30 }
  0xe0   :  { %935 = vmatpush1.bf16.msra.mxu0 %v934_v37  ;;  %999 = vmatpush1.bf16.msra.mxu1 %v998_v38 }
  0xe1   :  { %937 = vmatprep.subr.bf16.mxu0 %v936_v41  ;;  %1001 = vmatprep.subr.bf16.mxu1 %v1000_v42 }
  0xe4   :  { %939 = vmatpush1.bf16.msra.mxu0 %v938_v49  ;;  %1003 = vmatpush1.bf16.msra.mxu1 %v1002_v50 }
  0xe5   :  { %941 = vmatprep.subr.bf16.mxu0 %v940_v52  ;;  %1005 = vmatprep.subr.bf16.mxu1 %v1004_v53 }
  0xe8   :  { %943 = vmatpush1.bf16.msra.mxu0 %v942_v57  ;;  %1007 = vmatpush1.bf16.msra.mxu1 %v1006_v58 }
  0xeb   :  { %555 = vmatmul.mubr.f32.vlgmr.msra.gmra.mrb[4].mxu0 %v1562_v61  ;;  %632 = vmatmul.mubr.f32.vlgmr.msra.gmra.mrb[4].mxu1 %v1562_v61 }
  0xec   :  { %560 = vmatprep.mubr.f32.mxu0 %v1592_v13  ;;  %637 = vmatprep.mubr.f32.mxu1 %v1592_v13 }
  0xef   :  { %561 = vmatmul.mubr.f32.gmra.mrb[6].mxu0 %v1594_v15  ;;  %638 = vmatmul.mubr.f32.gmra.mrb[6].mxu1 %v1594_v15 }
  0xf0   :  { %1042 = shalt.err (!%p1039_p4)
}
  0xf1   :  { %s1043_s17 = scalar_lea.hbm %s2028_s6, 512 }
  0xf2   :  { %p1044_p5 = scmp.ne.s32.totalorder %s2028_s6, %s1043_s17  ;;  %p1047_p6 = scmp.lt.u32.totalorder %s1043_s17, %s2028_s6 }
  0xf4   :  { %p1049_p7 = pnand %p1047_p6, %p1044_p5 }
  0xf6   :  { %1052 = shalt.err (!%p1049_p7)
}
  0xf7   :  { %s1056_s21 = smov 256   ;;  %s1057_s22 = smov 16  }
  0xf8   :  { %745 = dma.vmem_to_hbm [thread:$0]  %s740_s0, 512, %s2028_s6, [#allocation3], %s1056_s21, %s1056_s21, %s1057_s22  }
 0x17e   :  { %v1942_v61 = vpop.f32.mrb[0].mxu0  ;;  %v1944_v13 = vpop.f32.mrb[0].mxu1 }
 0x17f   :  { %v1946_v15 = vpop.f32.mrb[1].mxu0  ;;  %v1948_v59 = vpop.f32.mrb[1].mxu1  ;;  %v652_v7 = vmul.f32 0.044715, %v1942_v61  ;;  %v654_v0 = vmul.f32 0.044715, %v1944_v13 }
 0x180   :  { %v653_v1 = vmul.f32 0.044715, %v1946_v15  ;;  %v655_v2 = vmul.f32 0.044715, %v1948_v59  ;;  %v644_v55 = vmul.f32 0.5, %v1942_v61  ;;  %v646_v56 = vmul.f32 0.5, %v1944_v13 }
 0x181   :  { %v660_v3 = vmul.f32 %v652_v7, %v1942_v61  ;;  %v662_v6 = vmul.f32 %v654_v0, %v1944_v13  ;;  %v645_v57 = vmul.f32 0.5, %v1946_v15  ;;  %v647_v58 = vmul.f32 0.5, %v1948_v59 }
 0x182   :  { %v1950_v60 = vpop.f32.mrb[2].mxu0  ;;  %v1952_v62 = vpop.f32.mrb[2].mxu1  ;;  %v661_v9 = vmul.f32 %v653_v1, %v1946_v15  ;;  %v663_v11 = vmul.f32 %v655_v2, %v1948_v59 }
 0x183   :  { %v1954_v63 = vpop.f32.mrb[3].mxu0  ;;  %v1956_v4 = vpop.f32.mrb[3].mxu1  ;;  %v656_v5 = vmul.f32 0.044715, %v1950_v60  ;;  %v658_v8 = vmul.f32 0.044715, %v1952_v62  ;;  %v668_v12 = vmul.f32 %v660_v3, %v1942_v61  ;;  %v670_v17 = vmul.f32 %v662_v6, %v1944_v13 }
 0x184   :  { %v657_v10 = vmul.f32 0.044715, %v1954_v63  ;;  %v659_v14 = vmul.f32 0.044715, %v1956_v4  ;;  %v669_v19 = vmul.f32 %v661_v9, %v1946_v15  ;;  %v671_v21 = vmul.f32 %v663_v11, %v1948_v59 }
 0x185   :  { %v664_v16 = vmul.f32 %v656_v5, %v1950_v60  ;;  %v666_v18 = vmul.f32 %v658_v8, %v1952_v62  ;;  %v676_v24 = vadd.f32 %v668_v12, %v1942_v61  ;;  %v678_v26 = vadd.f32 %v670_v17, %v1944_v13 }
 0x186   :  { %v665_v20 = vmul.f32 %v657_v10, %v1954_v63  ;;  %v667_v22 = vmul.f32 %v659_v14, %v1956_v4  ;;  %v677_v28 = vadd.f32 %v669_v19, %v1946_v15  ;;  %v679_v30 = vadd.f32 %v671_v21, %v1948_v59 }
 0x187   :  { %v672_v23 = vmul.f32 %v664_v16, %v1950_v60  ;;  %v674_v25 = vmul.f32 %v666_v18, %v1952_v62  ;;  %v684_v31 = vmul.f32 0.7978846, %v676_v24  ;;  %v686_v33 = vmul.f32 0.7978846, %v678_v26 }
 0x188   :  { %v673_v27 = vmul.f32 %v665_v20, %v1954_v63  ;;  %v675_v29 = vmul.f32 %v667_v22, %v1956_v4  ;;  %v685_v35 = vmul.f32 0.7978846, %v677_v28  ;;  %v687_v37 = vmul.f32 0.7978846, %v679_v30 }
 0x189   :  { %v680_v32 = vadd.f32 %v672_v23, %v1950_v60  ;;  %v682_v34 = vadd.f32 %v674_v25, %v1952_v62  ;;  %1015 = vtanh.f32 %v684_v31  ;;  %v648_v7 = vmul.f32 0.5, %v1950_v60 }
 0x18a   :  { %v681_v36 = vadd.f32 %v673_v27, %v1954_v63  ;;  %v683_v38 = vadd.f32 %v675_v29, %v1956_v4  ;;  %1017 = vtanh.f32 %v686_v33  ;;  %v650_v0 = vmul.f32 0.5, %v1952_v62 }
 0x18b   :  { %v688_v39 = vmul.f32 0.7978846, %v680_v32  ;;  %v690_v40 = vmul.f32 0.7978846, %v682_v34  ;;  %1019 = vtanh.f32 %v685_v35  ;;  %v649_v1 = vmul.f32 0.5, %v1954_v63 }
 0x18c   :  { %v689_v41 = vmul.f32 0.7978846, %v681_v36  ;;  %1021 = vtanh.f32 %v687_v37  ;;  %v691_v42 = vmul.f32 0.7978846, %v683_v38  ;;  %v651_v2 = vmul.f32 0.5, %v1956_v4 }
 0x18d   :  { %1023 = vtanh.f32 %v688_v39 }
 0x18e   :  { %1025 = vtanh.f32 %v690_v40 }
 0x18f   :  { %1027 = vtanh.f32 %v689_v41 }
 0x190   :  { %1029 = vtanh.f32 %v691_v42 }
 0x193   :  { %v1016_v43 = vpop.eup %1015 }
 0x194   :  { %v1018_v44 = vpop.eup %1017  ;;  %v700_v49 = vadd.f32 1.0, %v1016_v43 }
 0x195   :  { %v1020_v45 = vpop.eup %1019  ;;  %v702_v50 = vadd.f32 1.0, %v1018_v44 }
 0x196   :  { %v1022_v46 = vpop.eup %1021  ;;  %v701_v52 = vadd.f32 1.0, %v1020_v45  ;;  %v708_v3 = vmul.f32 %v700_v49, %v644_v55 }
 0x197   :  { %v1024_v47 = vpop.eup %1023  ;;  %v703_v53 = vadd.f32 1.0, %v1022_v46  ;;  %v710_v5 = vmul.f32 %v702_v50, %v646_v56 }
 0x198   :  { %v1026_v48 = vpop.eup %1025  ;;  %v704_v6 = vadd.f32 1.0, %v1024_v47  ;;  %v709_v10 = vmul.f32 %v701_v52, %v645_v57 }
 0x199   :  { %v1028_v51 = vpop.eup %1027  ;;  %v706_v8 = vadd.f32 1.0, %v1026_v48  ;;  %v711_v13 = vmul.f32 %v703_v53, %v647_v58 }
 0x19a   :  { %v1030_v54 = vpop.eup %1029  ;;  %v705_v11 = vadd.f32 1.0, %v1028_v51  ;;  %v712_v63 = vmul.f32 %v704_v6, %v648_v7 }
 0x19b   :  { %v707_v15 = vadd.f32 1.0, %v1030_v54  ;;  %v714_v4 = vmul.f32 %v706_v8, %v650_v0 }
 0x19c   :  { %v713_v19 = vmul.f32 %v705_v11, %v649_v1 }
 0x19d   :  { %v715_v20 = vmul.f32 %v707_v15, %v651_v2 }
 0x1be   :  { %v556_v9 = vpop.f32.mrb[4].mxu0  ;;  %v633_v61 = vpop.f32.mrb[4].mxu1 }
 0x1bf   :  { %v716_v14 = vmul.f32 %v708_v3, %v556_v9  ;;  %v718_v59 = vmul.f32 %v710_v5, %v633_v61  ;;  %v558_v12 = vpop.f32.mrb[5].mxu0  ;;  %v635_v60 = vpop.f32.mrb[5].mxu1 }
 0x1c0   :  { %v717_v16 = vmul.f32 %v709_v10, %v558_v12  ;;  %v719_v62 = vmul.f32 %v711_v13, %v635_v60 }
 0x1c1   :  { %724 = vst [vmem:[%s2027_s5] sm:$0xff] %v716_v14  ;;  %726 = vst [vmem:[%s2027_s5 + $0x10] sm:$0xff] %v718_v59 }
 0x1c2   :  { %725 = vst [vmem:[%s2027_s5 + $0x8] sm:$0xff] %v717_v16  ;;  %727 = vst [vmem:[%s2027_s5 + $0x18] sm:$0xff] %v719_v62  ;;  %v562_v17 = vpop.f32.mrb[6].mxu0  ;;  %v639_v18 = vpop.f32.mrb[6].mxu1 }
 0x1c3   :  { %v720_v21 = vmul.f32 %v712_v63, %v562_v17  ;;  %v722_v22 = vmul.f32 %v714_v4, %v639_v18  ;;  %v564_v23 = vpop.f32.mrb[7].mxu0  ;;  %v641_v24 = vpop.f32.mrb[7].mxu1 }
 0x1c4   :  { %v721_v25 = vmul.f32 %v713_v19, %v564_v23  ;;  %v723_v26 = vmul.f32 %v715_v20, %v641_v24 }
 0x1c5   :  { %728 = vst [vmem:[%s2027_s5 + $0x20] sm:$0xff] %v720_v21  ;;  %730 = vst [vmem:[%s2027_s5 + $0x30] sm:$0xff] %v722_v22 }
 0x1c6   :  { %729 = vst [vmem:[%s2027_s5 + $0x28] sm:$0xff] %v721_v25  ;;  %731 = vst [vmem:[%s2027_s5 + $0x38] sm:$0xff] %v723_v26 }
 0x1c7   :  { %1053 = dma.done.wait [#allocation3], 512  }
 0x1c8   :  { %1054 = vsyncadd [#allocation3], 4294966784 }
 0x1c9   :  { %751 = vsyncpa [#allocation3], 1 }

// kernel: _lambda_.9
= control target key start
LH: loop header
LB: loop body
LE: loop exit
PB: predicated region body
PF: predicated region fallthrough
CT: control target
= control target key end

     0   :  { %s946_s0 = inlined_call_operand.vmem [shape: f32[16,512], index: 0, kind: input, shape index: {}]   ;;  %s947_s1 = inlined_call_operand.vmem [shape: f32[512,256], index: 1, kind: input, shape index: {}]   ;;  %s948_s2 = inlined_call_operand.hbm [shape: f32[16,256], index: 2, kind: output, shape index: {}]  }
   0x1   :  { %v33_v0 = vld [vmem:[%s947_s1 + $0x8] sm:$0xff]  ;;  %v35_v1 = vld [vmem:[%s947_s1 + $0x18] sm:$0xff]  ;;  %v32_v5 = vld [vmem:[%s947_s1] sm:$0xff] }
   0x2   :  { %v97_v2 = vld [vmem:[%s947_s1 + $0x208] sm:$0xff]  ;;  %v349_v3 = vpack.c.bf16 %v35_v1, %v33_v0  ;;  %v99_v4 = vld [vmem:[%s947_s1 + $0x218] sm:$0xff]  ;;  %v34_v6 = vld [vmem:[%s947_s1 + $0x10] sm:$0xff] }
   0x3   :  { %v413_v7 = vpack.c.bf16 %v99_v4, %v97_v2  ;;  %v351_v8 = vpack.c.bf16 %v34_v6, %v32_v5  ;;  %v96_v9 = vld [vmem:[%s947_s1 + $0x200] sm:$0xff]  ;;  %v98_v10 = vld [vmem:[%s947_s1 + $0x210] sm:$0xff]  ;;  %v37_v11 = vld [vmem:[%s947_s1 + $0x28] sm:$0xff] }
   0x4   :  { %350 = vmatprep.subr.bf16.mxu1 %v349_v3  ;;  %v415_v12 = vpack.c.bf16 %v98_v10, %v96_v9  ;;  %v39_v13 = vld [vmem:[%s947_s1 + $0x38] sm:$0xff]  ;;  %v101_v14 = vld [vmem:[%s947_s1 + $0x228] sm:$0xff]  ;;  %v36_v18 = vld [vmem:[%s947_s1 + $0x20] sm:$0xff] }
   0x5   :  { %v103_v15 = vld [vmem:[%s947_s1 + $0x238] sm:$0xff]  ;;  %414 = vmatprep.subr.bf16.mxu0 %v413_v7  ;;  %352 = vmatpush1.bf16.msra.mxu1 %v351_v8  ;;  %v353_v16 = vpack.c.bf16 %v39_v13, %v37_v11  ;;  %v38_v19 = vld [vmem:[%s947_s1 + $0x30] sm:$0xff]  ;;  %v100_v20 = vld [vmem:[%s947_s1 + $0x220] sm:$0xff] }
   0x6   :  { %v417_v17 = vpack.c.bf16 %v103_v15, %v101_v14  ;;  %416 = vmatpush1.bf16.msra.mxu0 %v415_v12  ;;  %v355_v21 = vpack.c.bf16 %v38_v19, %v36_v18  ;;  %v102_v22 = vld [vmem:[%s947_s1 + $0x230] sm:$0xff]  ;;  %v41_v23 = vld [vmem:[%s947_s1 + $0x48] sm:$0xff]  ;;  %v43_v24 = vld [vmem:[%s947_s1 + $0x58] sm:$0xff] }
   0x7   :  { %354 = vmatprep.subr.bf16.mxu1 %v353_v16  ;;  %v419_v25 = vpack.c.bf16 %v102_v22, %v100_v20  ;;  %v357_v26 = vpack.c.bf16 %v43_v24, %v41_v23  ;;  %v105_v27 = vld [vmem:[%s947_s1 + $0x248] sm:$0xff]  ;;  %v107_v28 = vld [vmem:[%s947_s1 + $0x258] sm:$0xff]  ;;  %v40_v29 = vld [vmem:[%s947_s1 + $0x40] sm:$0xff] }
   0x8   :  { %418 = vmatprep.subr.bf16.mxu0 %v417_v17  ;;  %v421_v30 = vpack.c.bf16 %v107_v28, %v105_v27  ;;  %v42_v31 = vld [vmem:[%s947_s1 + $0x50] sm:$0xff]  ;;  %v104_v32 = vld [vmem:[%s947_s1 + $0x240] sm:$0xff]  ;;  %v45_v35 = vld [vmem:[%s947_s1 + $0x68] sm:$0xff] }
   0x9   :  { %v106_v33 = vld [vmem:[%s947_s1 + $0x250] sm:$0xff]  ;;  %356 = vmatpush1.bf16.msra.mxu1 %v355_v21  ;;  %v359_v34 = vpack.c.bf16 %v42_v31, %v40_v29  ;;  %v47_v36 = vld [vmem:[%s947_s1 + $0x78] sm:$0xff]  ;;  %v109_v37 = vld [vmem:[%s947_s1 + $0x268] sm:$0xff] }
   0xa   :  { %420 = vmatpush1.bf16.msra.mxu0 %v419_v25  ;;  %358 = vmatprep.subr.bf16.mxu1 %v357_v26  ;;  %v423_v38 = vpack.c.bf16 %v106_v33, %v104_v32  ;;  %v361_v39 = vpack.c.bf16 %v47_v36, %v45_v35  ;;  %v111_v40 = vld [vmem:[%s947_s1 + $0x278] sm:$0xff]  ;;  %v44_v41 = vld [vmem:[%s947_s1 + $0x60] sm:$0xff]  ;;  %v46_v42 = vld [vmem:[%s947_s1 + $0x70] sm:$0xff] }
   0xb   :  { %422 = vmatprep.subr.bf16.mxu0 %v421_v30  ;;  %v425_v43 = vpack.c.bf16 %v111_v40, %v109_v37  ;;  %v108_v44 = vld [vmem:[%s947_s1 + $0x260] sm:$0xff]  ;;  %v110_v45 = vld [vmem:[%s947_s1 + $0x270] sm:$0xff]  ;;  %v49_v46 = vld [vmem:[%s947_s1 + $0x88] sm:$0xff]  ;;  %v363_v50 = vpack.c.bf16 %v46_v42, %v44_v41 }
   0xc   :  { %v51_v47 = vld [vmem:[%s947_s1 + $0x98] sm:$0xff]  ;;  %v113_v48 = vld [vmem:[%s947_s1 + $0x288] sm:$0xff]  ;;  %v427_v51 = vpack.c.bf16 %v110_v45, %v108_v44  ;;  %v48_v53 = vld [vmem:[%s947_s1 + $0x80] sm:$0xff] }
   0xd   :  { %v115_v49 = vld [vmem:[%s947_s1 + $0x298] sm:$0xff]  ;;  %360 = vmatpush1.bf16.msra.mxu1 %v359_v34  ;;  %v365_v52 = vpack.c.bf16 %v51_v47, %v49_v46  ;;  %v50_v54 = vld [vmem:[%s947_s1 + $0x90] sm:$0xff]  ;;  %v112_v55 = vld [vmem:[%s947_s1 + $0x280] sm:$0xff] }
   0xe   :  { %424 = vmatpush1.bf16.msra.mxu0 %v423_v38  ;;  %362 = vmatprep.subr.bf16.mxu1 %v361_v39  ;;  %v429_v56 = vpack.c.bf16 %v115_v49, %v113_v48  ;;  %v114_v57 = vld [vmem:[%s947_s1 + $0x290] sm:$0xff]  ;;  %v53_v58 = vld [vmem:[%s947_s1 + $0xa8] sm:$0xff]  ;;  %v55_v59 = vld [vmem:[%s947_s1 + $0xb8] sm:$0xff]  ;;  %v367_v62 = vpack.c.bf16 %v50_v54, %v48_v53 }
   0xf   :  { %426 = vmatprep.subr.bf16.mxu0 %v425_v43  ;;  %v117_v60 = vld [vmem:[%s947_s1 + $0x2a8] sm:$0xff]  ;;  %v119_v61 = vld [vmem:[%s947_s1 + $0x2b8] sm:$0xff]  ;;  %v431_v63 = vpack.c.bf16 %v114_v57, %v112_v55  ;;  %v369_v0 = vpack.c.bf16 %v55_v59, %v53_v58  ;;  %v52_v1 = vld [vmem:[%s947_s1 + $0xa0] sm:$0xff] }
  0x10   :  { %v54_v2 = vld [vmem:[%s947_s1 + $0xb0] sm:$0xff]  ;;  %v116_v3 = vld [vmem:[%s947_s1 + $0x2a0] sm:$0xff]  ;;  %v433_v4 = vpack.c.bf16 %v119_v61, %v117_v60  ;;  %v57_v6 = vld [vmem:[%s947_s1 + $0xc8] sm:$0xff] }
  0x11   :  { %364 = vmatpush1.bf16.msra.mxu1 %v363_v50  ;;  %v118_v5 = vld [vmem:[%s947_s1 + $0x2b0] sm:$0xff]  ;;  %v59_v7 = vld [vmem:[%s947_s1 + $0xd8] sm:$0xff]  ;;  %v121_v8 = vld [vmem:[%s947_s1 + $0x2c8] sm:$0xff]  ;;  %v371_v10 = vpack.c.bf16 %v54_v2, %v52_v1 }
  0x12   :  { %428 = vmatpush1.bf16.msra.mxu0 %v427_v51  ;;  %366 = vmatprep.subr.bf16.mxu1 %v365_v52  ;;  %v123_v9 = vld [vmem:[%s947_s1 + $0x2d8] sm:$0xff]  ;;  %v435_v11 = vpack.c.bf16 %v118_v5, %v116_v3  ;;  %v373_v12 = vpack.c.bf16 %v59_v7, %v57_v6  ;;  %v56_v13 = vld [vmem:[%s947_s1 + $0xc0] sm:$0xff]  ;;  %v58_v14 = vld [vmem:[%s947_s1 + $0xd0] sm:$0xff] }
  0x13   :  { %430 = vmatprep.subr.bf16.mxu0 %v429_v56  ;;  %v120_v15 = vld [vmem:[%s947_s1 + $0x2c0] sm:$0xff]  ;;  %v437_v16 = vpack.c.bf16 %v123_v9, %v121_v8  ;;  %v122_v17 = vld [vmem:[%s947_s1 + $0x2d0] sm:$0xff]  ;;  %v61_v18 = vld [vmem:[%s947_s1 + $0xe8] sm:$0xff]  ;;  %v375_v22 = vpack.c.bf16 %v58_v14, %v56_v13 }
  0x14   :  { %v63_v19 = vld [vmem:[%s947_s1 + $0xf8] sm:$0xff]  ;;  %v125_v20 = vld [vmem:[%s947_s1 + $0x2e8] sm:$0xff]  ;;  %v439_v23 = vpack.c.bf16 %v122_v17, %v120_v15  ;;  %v60_v25 = vld [vmem:[%s947_s1 + $0xe0] sm:$0xff] }
  0x15   :  { %368 = vmatpush1.bf16.msra.mxu1 %v367_v62  ;;  %v127_v21 = vld [vmem:[%s947_s1 + $0x2f8] sm:$0xff]  ;;  %v377_v24 = vpack.c.bf16 %v63_v19, %v61_v18  ;;  %v62_v26 = vld [vmem:[%s947_s1 + $0xf0] sm:$0xff]  ;;  %v124_v27 = vld [vmem:[%s947_s1 + $0x2e0] sm:$0xff] }
  0x16   :  { %432 = vmatpush1.bf16.msra.mxu0 %v431_v63  ;;  %370 = vmatprep.subr.bf16.mxu1 %v369_v0  ;;  %v441_v28 = vpack.c.bf16 %v127_v21, %v125_v20  ;;  %v126_v29 = vld [vmem:[%s947_s1 + $0x2f0] sm:$0xff]  ;;  %v65_v30 = vld [vmem:[%s947_s1 + $0x108] sm:$0xff]  ;;  %v67_v31 = vld [vmem:[%s947_s1 + $0x118] sm:$0xff]  ;;  %v379_v34 = vpack.c.bf16 %v62_v26, %v60_v25 }
  0x17   :  { %434 = vmatprep.subr.bf16.mxu0 %v433_v4  ;;  %v129_v32 = vld [vmem:[%s947_s1 + $0x308] sm:$0xff]  ;;  %v131_v33 = vld [vmem:[%s947_s1 + $0x318] sm:$0xff]  ;;  %v443_v35 = vpack.c.bf16 %v126_v29, %v124_v27  ;;  %v381_v36 = vpack.c.bf16 %v67_v31, %v65_v30  ;;  %v64_v37 = vld [vmem:[%s947_s1 + $0x100] sm:$0xff] }
  0x18   :  { %v66_v38 = vld [vmem:[%s947_s1 + $0x110] sm:$0xff]  ;;  %v128_v39 = vld [vmem:[%s947_s1 + $0x300] sm:$0xff]  ;;  %v445_v40 = vpack.c.bf16 %v131_v33, %v129_v32  ;;  %v69_v42 = vld [vmem:[%s947_s1 + $0x128] sm:$0xff] }
  0x19   :  { %372 = vmatpush1.bf16.msra.mxu1 %v371_v10  ;;  %v130_v41 = vld [vmem:[%s947_s1 + $0x310] sm:$0xff]  ;;  %v71_v43 = vld [vmem:[%s947_s1 + $0x138] sm:$0xff]  ;;  %v133_v44 = vld [vmem:[%s947_s1 + $0x328] sm:$0xff]  ;;  %v383_v46 = vpack.c.bf16 %v66_v38, %v64_v37 }
  0x1a   :  { %436 = vmatpush1.bf16.msra.mxu0 %v435_v11  ;;  %374 = vmatprep.subr.bf16.mxu1 %v373_v12  ;;  %v135_v45 = vld [vmem:[%s947_s1 + $0x338] sm:$0xff]  ;;  %v447_v47 = vpack.c.bf16 %v130_v41, %v128_v39  ;;  %v385_v48 = vpack.c.bf16 %v71_v43, %v69_v42  ;;  %v68_v49 = vld [vmem:[%s947_s1 + $0x120] sm:$0xff]  ;;  %v70_v50 = vld [vmem:[%s947_s1 + $0x130] sm:$0xff] }
  0x1b   :  { %438 = vmatprep.subr.bf16.mxu0 %v437_v16  ;;  %v132_v51 = vld [vmem:[%s947_s1 + $0x320] sm:$0xff]  ;;  %v449_v52 = vpack.c.bf16 %v135_v45, %v133_v44  ;;  %v134_v53 = vld [vmem:[%s947_s1 + $0x330] sm:$0xff]  ;;  %v73_v54 = vld [vmem:[%s947_s1 + $0x148] sm:$0xff]  ;;  %v387_v58 = vpack.c.bf16 %v70_v50, %v68_v49 }
  0x1c   :  { %v75_v55 = vld [vmem:[%s947_s1 + $0x158] sm:$0xff]  ;;  %v137_v56 = vld [vmem:[%s947_s1 + $0x348] sm:$0xff]  ;;  %v451_v59 = vpack.c.bf16 %v134_v53, %v132_v51  ;;  %v72_v61 = vld [vmem:[%s947_s1 + $0x140] sm:$0xff] }
  0x1d   :  { %376 = vmatpush1.bf16.msra.mxu1 %v375_v22  ;;  %v139_v57 = vld [vmem:[%s947_s1 + $0x358] sm:$0xff]  ;;  %v389_v60 = vpack.c.bf16 %v75_v55, %v73_v54  ;;  %v74_v62 = vld [vmem:[%s947_s1 + $0x150] sm:$0xff]  ;;  %v136_v63 = vld [vmem:[%s947_s1 + $0x340] sm:$0xff] }
  0x1e   :  { %440 = vmatpush1.bf16.msra.mxu0 %v439_v23  ;;  %378 = vmatprep.subr.bf16.mxu1 %v377_v24  ;;  %v453_v0 = vpack.c.bf16 %v139_v57, %v137_v56  ;;  %v138_v1 = vld [vmem:[%s947_s1 + $0x350] sm:$0xff]  ;;  %v77_v2 = vld [vmem:[%s947_s1 + $0x168] sm:$0xff]  ;;  %v79_v3 = vld [vmem:[%s947_s1 + $0x178] sm:$0xff]  ;;  %v391_v6 = vpack.c.bf16 %v74_v62, %v72_v61 }
  0x1f   :  { %442 = vmatprep.subr.bf16.mxu0 %v441_v28  ;;  %v141_v4 = vld [vmem:[%s947_s1 + $0x368] sm:$0xff]  ;;  %v143_v5 = vld [vmem:[%s947_s1 + $0x378] sm:$0xff]  ;;  %v76_v7 = vld [vmem:[%s947_s1 + $0x160] sm:$0xff]  ;;  %v455_v8 = vpack.c.bf16 %v138_v1, %v136_v63  ;;  %v393_v9 = vpack.c.bf16 %v79_v3, %v77_v2 }
  0x20   :  { %v78_v10 = vld [vmem:[%s947_s1 + $0x170] sm:$0xff]  ;;  %v140_v11 = vld [vmem:[%s947_s1 + $0x360] sm:$0xff]  ;;  %v457_v13 = vpack.c.bf16 %v143_v5, %v141_v4  ;;  %v81_v14 = vld [vmem:[%s947_s1 + $0x188] sm:$0xff] }
  0x21   :  { %380 = vmatpush1.bf16.msra.mxu1 %v379_v34  ;;  %v142_v12 = vld [vmem:[%s947_s1 + $0x370] sm:$0xff]  ;;  %v83_v15 = vld [vmem:[%s947_s1 + $0x198] sm:$0xff]  ;;  %v25_v16 = vld [vmem:[%s946_s0 + $0x8] sm:$0xff]  ;;  %v395_v20 = vpack.c.bf16 %v78_v10, %v76_v7 }
  0x22   :  { %444 = vmatpush1.bf16.msra.mxu0 %v443_v35  ;;  %382 = vmatprep.subr.bf16.mxu1 %v381_v36  ;;  %v145_v17 = vld [vmem:[%s947_s1 + $0x388] sm:$0xff]  ;;  %v147_v18 = vld [vmem:[%s947_s1 + $0x398] sm:$0xff]  ;;  %v80_v21 = vld [vmem:[%s947_s1 + $0x180] sm:$0xff]  ;;  %v459_v22 = vpack.c.bf16 %v142_v12, %v140_v11  ;;  %v397_v23 = vpack.c.bf16 %v83_v15, %v81_v14 }
  0x23   :  { %446 = vmatprep.subr.bf16.mxu0 %v445_v40  ;;  %224 = vmatprep.mubr.f32.mxu1 %v25_v16  ;;  %v27_v19 = vld [vmem:[%s946_s0 + $0x18] sm:$0xff]  ;;  %v82_v24 = vld [vmem:[%s947_s1 + $0x190] sm:$0xff]  ;;  %v144_v25 = vld [vmem:[%s947_s1 + $0x380] sm:$0xff] }
  0x24   :  { %301 = vmatprep.mubr.f32.mxu0 %v27_v19 }
  0x25   :  { %384 = vmatpush1.bf16.msra.mxu1 %v383_v46 }
  0x26   :  { %448 = vmatpush1.bf16.msra.mxu0 %v447_v47  ;;  %386 = vmatprep.subr.bf16.mxu1 %v385_v48 }
  0x27   :  { %450 = vmatprep.subr.bf16.mxu0 %v449_v52 }
  0x29   :  { %388 = vmatpush1.bf16.msra.mxu1 %v387_v58 }
  0x2a   :  { %452 = vmatpush1.bf16.msra.mxu0 %v451_v59  ;;  %390 = vmatprep.subr.bf16.mxu1 %v389_v60 }
  0x2b   :  { %454 = vmatprep.subr.bf16.mxu0 %v453_v0 }
  0x2d   :  { %392 = vmatpush1.bf16.msra.mxu1 %v391_v6 }
  0x2e   :  { %456 = vmatpush1.bf16.msra.mxu0 %v455_v8  ;;  %394 = vmatprep.subr.bf16.mxu1 %v393_v9 }
  0x2f   :  { %7 = vsyncpa [#allocation4], 0  ;;  %458 = vmatprep.subr.bf16.mxu0 %v457_v13  ;;  %v461_v26 = vpack.c.bf16 %v147_v18, %v145_v17  ;;  %v146_v27 = vld [vmem:[%s947_s1 + $0x390] sm:$0xff]  ;;  %v85_v28 = vld [vmem:[%s947_s1 + $0x1a8] sm:$0xff]  ;;  %v399_v32 = vpack.c.bf16 %v82_v24, %v80_v21  ;;  %s508_s28 = smov [#allocation3]  }
  0x30   :  { %v87_v29 = vld [vmem:[%s947_s1 + $0x1b8] sm:$0xff]  ;;  %v149_v30 = vld [vmem:[%s947_s1 + $0x3a8] sm:$0xff]  ;;  %v463_v33 = vpack.c.bf16 %v146_v27, %v144_v25  ;;  %v84_v35 = vld [vmem:[%s947_s1 + $0x1a0] sm:$0xff]  ;;  %s338_s29 = sshll.u32 %s508_s28, 4  ;;  %s339_s29 = int_to_ptr.vmem [resolvable:$true] %s338_s29 }
  0x31   :  { %v151_v31 = vld [vmem:[%s947_s1 + $0x3b8] sm:$0xff]  ;;  %396 = vmatpush1.bf16.msra.mxu1 %v395_v20  ;;  %v401_v34 = vpack.c.bf16 %v87_v29, %v85_v28  ;;  %v86_v36 = vld [vmem:[%s947_s1 + $0x1b0] sm:$0xff]  ;;  %v148_v37 = vld [vmem:[%s947_s1 + $0x3a0] sm:$0xff]  ;;  %p489_p1 = scmp.lt.s32.totalorder %s339_s29, %s339_s29 }
  0x32   :  { %460 = vmatpush1.bf16.msra.mxu0 %v459_v22  ;;  %398 = vmatprep.subr.bf16.mxu1 %v397_v23  ;;  %v465_v38 = vpack.c.bf16 %v151_v31, %v149_v30  ;;  %v150_v39 = vld [vmem:[%s947_s1 + $0x3b0] sm:$0xff]  ;;  %v89_v40 = vld [vmem:[%s947_s1 + $0x1c8] sm:$0xff]  ;;  %v91_v41 = vld [vmem:[%s947_s1 + $0x1d8] sm:$0xff]  ;;  %v403_v44 = vpack.c.bf16 %v86_v36, %v84_v35 }
  0x33   :  { %462 = vmatprep.subr.bf16.mxu0 %v461_v26  ;;  %v153_v42 = vld [vmem:[%s947_s1 + $0x3c8] sm:$0xff]  ;;  %v155_v43 = vld [vmem:[%s947_s1 + $0x3d8] sm:$0xff]  ;;  %v467_v45 = vpack.c.bf16 %v150_v39, %v148_v37  ;;  %v405_v46 = vpack.c.bf16 %v91_v41, %v89_v40  ;;  %v88_v47 = vld [vmem:[%s947_s1 + $0x1c0] sm:$0xff] }
  0x34   :  { %v90_v48 = vld [vmem:[%s947_s1 + $0x1d0] sm:$0xff]  ;;  %v152_v49 = vld [vmem:[%s947_s1 + $0x3c0] sm:$0xff]  ;;  %v469_v50 = vpack.c.bf16 %v155_v43, %v153_v42  ;;  %v93_v52 = vld [vmem:[%s947_s1 + $0x1e8] sm:$0xff] }
  0x35   :  { %400 = vmatpush1.bf16.msra.mxu1 %v399_v32  ;;  %v154_v51 = vld [vmem:[%s947_s1 + $0x3d0] sm:$0xff]  ;;  %v95_v53 = vld [vmem:[%s947_s1 + $0x1f8] sm:$0xff]  ;;  %v157_v54 = vld [vmem:[%s947_s1 + $0x3e8] sm:$0xff]  ;;  %v407_v56 = vpack.c.bf16 %v90_v48, %v88_v47 }
  0x36   :  { %464 = vmatpush1.bf16.msra.mxu0 %v463_v33  ;;  %402 = vmatprep.subr.bf16.mxu1 %v401_v34  ;;  %v159_v55 = vld [vmem:[%s947_s1 + $0x3f8] sm:$0xff]  ;;  %v471_v57 = vpack.c.bf16 %v154_v51, %v152_v49  ;;  %v409_v58 = vpack.c.bf16 %v95_v53, %v93_v52  ;;  %v92_v59 = vld [vmem:[%s947_s1 + $0x1e0] sm:$0xff]  ;;  %v94_v60 = vld [vmem:[%s947_s1 + $0x1f0] sm:$0xff] }
  0x37   :  { %466 = vmatprep.subr.bf16.mxu0 %v465_v38  ;;  %v473_v61 = vpack.c.bf16 %v159_v55, %v157_v54  ;;  %v156_v62 = vld [vmem:[%s947_s1 + $0x3e0] sm:$0xff]  ;;  %v158_v63 = vld [vmem:[%s947_s1 + $0x3f0] sm:$0xff]  ;;  %v411_v0 = vpack.c.bf16 %v94_v60, %v92_v59  ;;  %v29_v4 = vld [vmem:[%s946_s0 + $0x28] sm:$0xff] }
  0x38   :  { %v475_v1 = vpack.c.bf16 %v158_v63, %v156_v62  ;;  %v24_v2 = vld [vmem:[%s946_s0] sm:$0xff]  ;;  %v26_v3 = vld [vmem:[%s946_s0 + $0x10] sm:$0xff]  ;;  %v31_v5 = vld [vmem:[%s946_s0 + $0x38] sm:$0xff] }
  0x39   :  { %404 = vmatpush1.bf16.msra.mxu1 %v403_v44  ;;  %v28_v6 = vld [vmem:[%s946_s0 + $0x20] sm:$0xff]  ;;  %v30_v7 = vld [vmem:[%s946_s0 + $0x30] sm:$0xff]  ;;  %s484_s0 = scalar_lea.vmem %s339_s29, 512 }
  0x3a   :  { %468 = vmatpush1.bf16.msra.mxu0 %v467_v45  ;;  %406 = vmatprep.subr.bf16.mxu1 %v405_v46  ;;  %p485_p0 = scmp.ne.s32.totalorder %s339_s29, %s484_s0  ;;  %p490_p2 = scmp.lt.s32.totalorder %s484_s0, %s484_s0 }
  0x3b   :  { %470 = vmatprep.subr.bf16.mxu0 %v469_v50 }
  0x3c   :  { %p491_p3 = por %p490_p2, %p489_p1 }
  0x3d   :  { %408 = vmatpush1.bf16.msra.mxu1 %v407_v56 }
  0x3e   :  { %472 = vmatpush1.bf16.msra.mxu0 %v471_v57  ;;  %410 = vmatprep.subr.bf16.mxu1 %v409_v58  ;;  %p492_p4 = pnand %p491_p3, %p485_p0 }
  0x3f   :  { %474 = vmatprep.subr.bf16.mxu0 %v473_v61 }
  0x41   :  { %412 = vmatpush1.bf16.msra.mxu1 %v411_v0 }
  0x42   :  { %476 = vmatpush1.bf16.msra.mxu0 %v475_v1 }
  0x44   :  { %225 = vmatmul.mubr.f32.vlgmr.msra.gmra.mrb[0].mxu1 %v24_v2 }
  0x45   :  { %302 = vmatmul.mubr.f32.vlgmr.msra.gmra.mrb[0].mxu0 %v26_v3  ;;  %230 = vmatprep.mubr.f32.mxu1 %v29_v4 }
  0x46   :  { %307 = vmatprep.mubr.f32.mxu0 %v31_v5 }
  0x48   :  { %231 = vmatmul.mubr.f32.gmra.mrb[2].mxu1 %v28_v6 }
  0x49   :  { %308 = vmatmul.mubr.f32.gmra.mrb[2].mxu0 %v30_v7 }
 0x117   :  { %v226_v8 = vpop.f32.mrb[0].mxu1 }
 0x118   :  { %v303_v9 = vpop.f32.mrb[0].mxu0  ;;  %v228_v10 = vpop.f32.mrb[1].mxu1 }
 0x119   :  { %v304_v11 = vadd.f32 %v303_v9, %v226_v8  ;;  %v305_v12 = vpop.f32.mrb[1].mxu0 }
 0x11a   :  { %v306_v13 = vadd.f32 %v305_v12, %v228_v10 }
 0x11b   :  { %329 = vst [vmem:[#allocation3] sm:$0xff] %v304_v11  ;;  %v232_v14 = vpop.f32.mrb[2].mxu1 }
 0x11c   :  { %330 = vst [vmem:[#allocation3 + $0x8] sm:$0xff] %v306_v13  ;;  %v309_v15 = vpop.f32.mrb[2].mxu0  ;;  %v234_v16 = vpop.f32.mrb[3].mxu1 }
 0x11d   :  { %v310_v17 = vadd.f32 %v309_v15, %v232_v14  ;;  %v311_v18 = vpop.f32.mrb[3].mxu0 }
 0x11e   :  { %v312_v19 = vadd.f32 %v311_v18, %v234_v16 }
 0x11f   :  { %331 = vst [vmem:[#allocation3 + $0x10] sm:$0xff] %v310_v17 }
 0x120   :  { %332 = vst [vmem:[#allocation3 + $0x18] sm:$0xff] %v312_v19 }
 0x121   :  { %495 = shalt.err (!%p492_p4)
}
 0x122   :  { %s496_s4 = scalar_lea.hbm %s948_s2, 512 }
 0x123   :  { %p497_p5 = scmp.ne.s32.totalorder %s948_s2, %s496_s4  ;;  %p500_p6 = scmp.lt.u32.totalorder %s496_s4, %s948_s2 }
 0x125   :  { %p502_p7 = pnand %p500_p6, %p497_p5 }
 0x127   :  { %505 = shalt.err (!%p502_p7)
}
 0x128   :  { %s509_s9 = smov 256   ;;  %s510_s10 = smov 16  }
 0x129   :  { %344 = dma.vmem_to_hbm [thread:$0]  %s339_s29, 512, %s948_s2, [#allocation4], %s509_s9, %s509_s9, %s510_s10  }
 0x12a   :  { %506 = dma.done.wait [#allocation4], 512  }
 0x12b   :  { %507 = vsyncadd [#allocation4], 4294966784 }
 0x12c   :  { %348 = vsyncpa [#allocation4], 1 }

</bundles_post_ra>
